<compile_context>
chip_gen: v5e
topology: v5e:2x2
jax: 0.10.0
libtpu: 0.0.40
codegen_flags: <defaults>
</compile_context>

<pallas_src>
import math

import jax
import jax.numpy as jnp
from jax.experimental import pallas as pl
from jax.experimental.pallas import tpu as pltpu  # noqa: F401  (TPU backend assumed)

# ----------------------- small synthetic ViT config -----------------------
IMG = 16            # image spatial size
PATCH = 8           # patch size (conv kernel == stride)
CHANNELS = 3        # RGB
HIDDEN = 128        # hidden size (768 in vit-base; scaled down, lane-aligned)
NUM_HEADS = 4
HEAD_DIM = HIDDEN // NUM_HEADS
INTERMEDIATE = 256
NUM_LAYERS = 2
NUM_CLS = 10
CLS_PAD = 128       # lane-dense padded logits width
LN_EPS = 1e-12      # HF ViT layer_norm_eps
NUM_PATCHES = (IMG // PATCH) ** 2
SEQ = NUM_PATCHES + 1          # +1 for CLS token
ATTN_SCALE = 1.0 / math.sqrt(HEAD_DIM)


# ------------------------------ kernel helpers ------------------------------
def _layernorm(v, g, b):
    mu = jnp.mean(v, axis=-1, keepdims=True)
    var = jnp.mean((v - mu) ** 2, axis=-1, keepdims=True)
    return (v - mu) * jax.lax.rsqrt(var + LN_EPS) * g + b


def _gelu(f):
    # TODO(synk): HF ViT uses exact erf GELU; tanh approximation used here (EUP-friendly).
    return 0.5 * f * (1.0 + jnp.tanh(0.7978845608028654 * (f + 0.044715 * f * f * f)))


def _bf16_dot(a, w_bf16):
    # bf16 MXU operands, f32 accumulation
    return jnp.dot(a.astype(jnp.bfloat16), w_bf16, preferred_element_type=jnp.float32)


# ------------------------------- fused kernel -------------------------------
def _fused_vit_kernel(
    patches_ref, w_patch_ref, b_patch_ref, cls_ref, pos_ref,
    ln1_g_ref, ln1_b_ref, w_qkv_ref, b_qkv_ref, w_proj_ref, b_proj_ref,
    ln2_g_ref, ln2_b_ref, w_fc1_ref, b_fc1_ref, w_fc2_ref, b_fc2_ref,
    ln_f_g_ref, ln_f_b_ref, w_fc_ref, b_fc_ref,
    o_ref,
):
    B = patches_ref.shape[0] // NUM_PATCHES

    # ---- patch embedding (conv stride=kernel=PATCH  ==  patch-flatten + matmul) ----
    pe = _bf16_dot(patches_ref[...], w_patch_ref[...]) + b_patch_ref[...]   # (B*NP, H)

    # ---- prepend CLS token and add position embeddings ----
    pos = pos_ref[...]                                   # (SEQ, HIDDEN)
    cls = cls_ref[...]                                   # (1, HIDDEN)
    rows = []
    for b in range(B):
        rows.append(cls + pos[0:1, :])
        rows.append(pe[b * NUM_PATCHES:(b + 1) * NUM_PATCHES, :] + pos[1:SEQ, :])
    x = jnp.concatenate(rows, axis=0)                    # (B*SEQ, HIDDEN), f32

    # ---- transformer encoder layers (weights stacked on leading L axis) ----
    for l in range(NUM_LAYERS):
        # --- pre-LN self-attention ---
        h = _layernorm(x, ln1_g_ref[l], ln1_b_ref[l])
        qkv = _bf16_dot(h, w_qkv_ref[l]) + b_qkv_ref[l]  # (B*SEQ, 3*HIDDEN) f32
        q = qkv[:, 0:HIDDEN].astype(jnp.bfloat16)
        k = qkv[:, HIDDEN:2 * HIDDEN].astype(jnp.bfloat16)
        v = qkv[:, 2 * HIDDEN:3 * HIDDEN].astype(jnp.bfloat16)
        w_proj_l = w_proj_ref[l]                         # (HIDDEN, HIDDEN) bf16

        attn_rows = []
        for b in range(B):
            rsl = slice(b * SEQ, (b + 1) * SEQ)
            acc = jnp.zeros((SEQ, HIDDEN), jnp.float32)
            for hd in range(NUM_HEADS):
                csl = slice(hd * HEAD_DIM, (hd + 1) * HEAD_DIM)
                qh, kh, vh = q[rsl, csl], k[rsl, csl], v[rsl, csl]
                s = jax.lax.dot_general(
                    qh, kh, (((1,), (1,)), ((), ())),
                    preferred_element_type=jnp.float32) * ATTN_SCALE   # (SEQ, SEQ)
                s = s - jnp.max(s, axis=-1, keepdims=True)
                p = jnp.exp(s)
                p = p * pl.reciprocal(jnp.sum(p, axis=-1, keepdims=True), approx=True)
                ctx = jnp.dot(p.astype(jnp.bfloat16), vh,
                              preferred_element_type=jnp.float32)      # (SEQ, HEAD_DIM)
                # fold the head-concat into the output projection (full-width accumulate)
                acc = acc + _bf16_dot(ctx, w_proj_l[csl, :])
            attn_rows.append(acc)
        attn_out = jnp.concatenate(attn_rows, axis=0)    # (B*SEQ, HIDDEN)
        x = x + attn_out + b_proj_ref[l]                 # residual (+ proj bias once)

        # --- pre-LN MLP ---
        h2 = _layernorm(x, ln2_g_ref[l], ln2_b_ref[l])
        f = _bf16_dot(h2, w_fc1_ref[l]) + b_fc1_ref[l]
        f = _gelu(f)
        f = _bf16_dot(f, w_fc2_ref[l]) + b_fc2_ref[l]
        x = x + f                                        # residual

    # ---- final LayerNorm on CLS tokens + fc head (lane-padded logits) ----
    cls_rows = jnp.concatenate([x[b * SEQ:b * SEQ + 1, :] for b in range(B)], axis=0)
    cls_ln = _layernorm(cls_rows, ln_f_g_ref[...], ln_f_b_ref[...])
    o_ref[...] = _bf16_dot(cls_ln, w_fc_ref[...]) + b_fc_ref[...]        # (B, CLS_PAD)


# ------------------------------- model glue ---------------------------------
def extract_patches(x):
    """x: (B, C, H, W) NCHW -> (B*NUM_PATCHES, C*P*P), conv-weight-compatible flatten."""
    B = x.shape[0]
    gh = IMG // PATCH
    x = x.reshape(B, CHANNELS, gh, PATCH, gh, PATCH)
    x = x.transpose(0, 2, 4, 1, 3, 5)                    # (B, gh, gw, C, P, P)
    return x.reshape(B * NUM_PATCHES, CHANNELS * PATCH * PATCH)


def init_vit_params(key):
    keys = iter(jax.random.split(key, 64))

    def nrm(shape, dtype=jnp.float32):
        return (0.02 * jax.random.normal(next(keys), shape, jnp.float32)).astype(dtype)

    L = NUM_LAYERS
    params = {
        # bf16 matmul weights, f32 biases / LN params
        "w_patch": nrm((CHANNELS * PATCH * PATCH, HIDDEN), jnp.bfloat16),
        "b_patch": nrm((1, HIDDEN)),
        "cls_token": nrm((1, HIDDEN)),
        "pos_emb": nrm((SEQ, HIDDEN)),
        "ln1_g": jnp.ones((L, 1, HIDDEN), jnp.float32),
        "ln1_b": jnp.zeros((L, 1, HIDDEN), jnp.float32),
        "w_qkv": nrm((L, HIDDEN, 3 * HIDDEN), jnp.bfloat16),
        "b_qkv": nrm((L, 1, 3 * HIDDEN)),
        "w_proj": nrm((L, HIDDEN, HIDDEN), jnp.bfloat16),
        "b_proj": nrm((L, 1, HIDDEN)),
        "ln2_g": jnp.ones((L, 1, HIDDEN), jnp.float32),
        "ln2_b": jnp.zeros((L, 1, HIDDEN), jnp.float32),
        "w_fc1": nrm((L, HIDDEN, INTERMEDIATE), jnp.bfloat16),
        "b_fc1": nrm((L, 1, INTERMEDIATE)),
        "w_fc2": nrm((L, INTERMEDIATE, HIDDEN), jnp.bfloat16),
        "b_fc2": nrm((L, 1, HIDDEN)),
        "ln_f_g": jnp.ones((1, HIDDEN), jnp.float32),
        "ln_f_b": jnp.zeros((1, HIDDEN), jnp.float32),
    }
    # fc head, lane-padded to CLS_PAD output columns (zero padding)
    w_fc = nrm((HIDDEN, NUM_CLS))
    b_fc = nrm((1, NUM_CLS))
    params["w_fc"] = (jnp.zeros((HIDDEN, CLS_PAD), jnp.bfloat16)
                      .at[:, :NUM_CLS].set(w_fc.astype(jnp.bfloat16)))
    params["b_fc"] = (jnp.zeros((1, CLS_PAD), jnp.float32)
                      .at[:, :NUM_CLS].set(b_fc))
    return params


@jax.jit
def vit_forward(params, x):
    """x: (B, C, IMG, IMG) float32  ->  logits (B, NUM_CLS)"""
    B = x.shape[0]
    patches = extract_patches(x)                         # (B*NP, C*P*P)

    args = (
        patches, params["w_patch"], params["b_patch"], params["cls_token"],
        params["pos_emb"],
        params["ln1_g"], params["ln1_b"], params["w_qkv"], params["b_qkv"],
        params["w_proj"], params["b_proj"], params["ln2_g"], params["ln2_b"],
        params["w_fc1"], params["b_fc1"], params["w_fc2"], params["b_fc2"],
        params["ln_f_g"], params["ln_f_b"], params["w_fc"], params["b_fc"],
    )

    # single fused pallas_call: no grid — everything (weights ~0.5 MiB bf16 + ~5 KiB
    # activations) lives whole-array in VMEM; output is lane-dense (B, 128).
    logits_pad = pl.pallas_call(
        _fused_vit_kernel,
        out_shape=jax.ShapeDtypeStruct((B, CLS_PAD), jnp.float32),
    )(*args)
    return logits_pad[:, :NUM_CLS]


# --------------------------------- main -------------------------------------
if __name__ == "__main__":
    key = jax.random.PRNGKey(0)
    k_param, k_x = jax.random.split(key)
    params = init_vit_params(k_param)

    # deterministic small input, NCHW like the PyTorch module
    x = jax.random.normal(k_x, (2, CHANNELS, IMG, IMG), jnp.float32)

    logits = vit_forward(params, x)
    logits = jax.block_until_ready(logits)
    assert logits.shape == (2, NUM_CLS) and logits.dtype == jnp.float32
    assert bool(jnp.all(jnp.isfinite(logits)))
    print("KERNEL_OK")
</pallas_src>

<mosaic_0001>
module attributes {stable_mosaic.version = 11 : i64} {
  func.func @_fused_vit_kernel(%arg0: memref<8x192xf32, #tpu.memory_space<vmem>>, %arg1: memref<192x128xbf16, #tpu.memory_space<vmem>>, %arg2: memref<1x128xf32, #tpu.memory_space<vmem>>, %arg3: memref<1x128xf32, #tpu.memory_space<vmem>>, %arg4: memref<5x128xf32, #tpu.memory_space<vmem>>, %arg5: memref<2x1x128xf32, #tpu.memory_space<vmem>>, %arg6: memref<2x1x128xf32, #tpu.memory_space<vmem>>, %arg7: memref<2x128x384xbf16, #tpu.memory_space<vmem>>, %arg8: memref<2x1x384xf32, #tpu.memory_space<vmem>>, %arg9: memref<2x128x128xbf16, #tpu.memory_space<vmem>>, %arg10: memref<2x1x128xf32, #tpu.memory_space<vmem>>, %arg11: memref<2x1x128xf32, #tpu.memory_space<vmem>>, %arg12: memref<2x1x128xf32, #tpu.memory_space<vmem>>, %arg13: memref<2x128x256xbf16, #tpu.memory_space<vmem>>, %arg14: memref<2x1x256xf32, #tpu.memory_space<vmem>>, %arg15: memref<2x256x128xbf16, #tpu.memory_space<vmem>>, %arg16: memref<2x1x128xf32, #tpu.memory_space<vmem>>, %arg17: memref<1x128xf32, #tpu.memory_space<vmem>>, %arg18: memref<1x128xf32, #tpu.memory_space<vmem>>, %arg19: memref<128x128xbf16, #tpu.memory_space<vmem>>, %arg20: memref<1x128xf32, #tpu.memory_space<vmem>>, %arg21: memref<2x128xf32, #tpu.memory_space<vmem>>) attributes {dimension_semantics = [], scalar_prefetch = 0 : i64, scratch_operands = 0 : i64, tpu.core_type = #tpu.core_type<tc>} {
    %c0 = arith.constant 0 : index
    %c0_0 = arith.constant 0 : index
    %0 = vector.load %arg0[%c0, %c0_0] : memref<8x192xf32, #tpu.memory_space<vmem>>, vector<8x192xf32>
    %c0_1 = arith.constant 0 : index
    %c0_2 = arith.constant 0 : index
    %1 = vector.load %arg1[%c0_1, %c0_2] : memref<192x128xbf16, #tpu.memory_space<vmem>>, vector<192x128xbf16>
    %2 = arith.truncf %0 : vector<8x192xf32> to vector<8x192xbf16>
    %cst = arith.constant dense<0.000000e+00> : vector<8x128xf32>
    %3 = tpu.matmul %2, %1, %cst {dimension_numbers = #tpu.dot_dimension_numbers<[1], [0], [0], [1], [0, 0, 1, 1], [], []>} : vector<8x192xbf16>, vector<192x128xbf16>, vector<8x128xf32> -> vector<8x128xf32>
    %c0_3 = arith.constant 0 : index
    %c0_4 = arith.constant 0 : index
    %4 = vector.load %arg2[%c0_3, %c0_4] : memref<1x128xf32, #tpu.memory_space<vmem>>, vector<1x128xf32>
    %5 = vector.broadcast %4 : vector<1x128xf32> to vector<8x128xf32>
    %6 = arith.addf %3, %5 : vector<8x128xf32>
    %c0_5 = arith.constant 0 : index
    %c0_6 = arith.constant 0 : index
    %7 = vector.load %arg4[%c0_5, %c0_6] : memref<5x128xf32, #tpu.memory_space<vmem>>, vector<5x128xf32>
    %c0_7 = arith.constant 0 : index
    %c0_8 = arith.constant 0 : index
    %8 = vector.load %arg3[%c0_7, %c0_8] : memref<1x128xf32, #tpu.memory_space<vmem>>, vector<1x128xf32>
    %9 = vector.extract_strided_slice %7 {offsets = [0, 0], sizes = [1, 128], strides = [1, 1]} : vector<5x128xf32> to vector<1x128xf32>
    %10 = arith.addf %8, %9 : vector<1x128xf32>
    %11 = vector.extract_strided_slice %6 {offsets = [0, 0], sizes = [4, 128], strides = [1, 1]} : vector<8x128xf32> to vector<4x128xf32>
    %12 = vector.extract_strided_slice %7 {offsets = [1, 0], sizes = [4, 128], strides = [1, 1]} : vector<5x128xf32> to vector<4x128xf32>
    %13 = arith.addf %11, %12 : vector<4x128xf32>
    %14 = vector.extract_strided_slice %7 {offsets = [0, 0], sizes = [1, 128], strides = [1, 1]} : vector<5x128xf32> to vector<1x128xf32>
    %15 = arith.addf %8, %14 : vector<1x128xf32>
    %16 = vector.extract_strided_slice %6 {offsets = [4, 0], sizes = [4, 128], strides = [1, 1]} : vector<8x128xf32> to vector<4x128xf32>
    %17 = vector.extract_strided_slice %7 {offsets = [1, 0], sizes = [4, 128], strides = [1, 1]} : vector<5x128xf32> to vector<4x128xf32>
    %18 = arith.addf %16, %17 : vector<4x128xf32>
    %19 = tpu.concatenate %10, %13, %15, %18 in 0 : vector<1x128xf32>, vector<4x128xf32>, vector<1x128xf32>, vector<4x128xf32> -> vector<10x128xf32>
    %c0_9 = arith.constant 0 : index
    %c0_10 = arith.constant 0 : index
    %c0_11 = arith.constant 0 : index
    %20 = vector.load %arg5[%c0_9, %c0_10, %c0_11] : memref<2x1x128xf32, #tpu.memory_space<vmem>>, vector<1x1x128xf32>
    %21 = vector.shape_cast %20 : vector<1x1x128xf32> to vector<1x128xf32>
    %c0_12 = arith.constant 0 : index
    %c0_13 = arith.constant 0 : index
    %c0_14 = arith.constant 0 : index
    %22 = vector.load %arg6[%c0_12, %c0_13, %c0_14] : memref<2x1x128xf32, #tpu.memory_space<vmem>>, vector<1x1x128xf32>
    %23 = vector.shape_cast %22 : vector<1x1x128xf32> to vector<1x128xf32>
    %cst_15 = arith.constant dense<0.000000e+00> : vector<10xf32>
    %24 = vector.multi_reduction <add>, %19, %cst_15 [1] : vector<10x128xf32> to vector<10xf32>
    %25 = vector.shape_cast %24 : vector<10xf32> to vector<10x1xf32>
    %cst_16 = arith.constant 1.280000e+02 : f32
    %26 = vector.broadcast %cst_16 : f32 to vector<10x1xf32>
    %27 = arith.divf %25, %26 : vector<10x1xf32>
    %28 = vector.broadcast %27 : vector<10x1xf32> to vector<10x128xf32>
    %29 = arith.subf %19, %28 : vector<10x128xf32>
    %30 = arith.mulf %29, %29 : vector<10x128xf32>
    %cst_17 = arith.constant dense<0.000000e+00> : vector<10xf32>
    %31 = vector.multi_reduction <add>, %30, %cst_17 [1] : vector<10x128xf32> to vector<10xf32>
    %32 = vector.shape_cast %31 : vector<10xf32> to vector<10x1xf32>
    %cst_18 = arith.constant 1.280000e+02 : f32
    %33 = vector.broadcast %cst_18 : f32 to vector<10x1xf32>
    %34 = arith.divf %32, %33 : vector<10x1xf32>
    %35 = vector.broadcast %27 : vector<10x1xf32> to vector<10x128xf32>
    %36 = arith.subf %19, %35 : vector<10x128xf32>
    %cst_19 = arith.constant 9.99999996E-13 : f32
    %37 = vector.broadcast %cst_19 : f32 to vector<10x1xf32>
    %38 = arith.addf %34, %37 : vector<10x1xf32>
    %39 = math.rsqrt %38 : vector<10x1xf32>
    %40 = vector.broadcast %39 : vector<10x1xf32> to vector<10x128xf32>
    %41 = arith.mulf %36, %40 : vector<10x128xf32>
    %42 = vector.broadcast %21 : vector<1x128xf32> to vector<10x128xf32>
    %43 = arith.mulf %41, %42 : vector<10x128xf32>
    %44 = vector.broadcast %23 : vector<1x128xf32> to vector<10x128xf32>
    %45 = arith.addf %43, %44 : vector<10x128xf32>
    %c0_20 = arith.constant 0 : index
    %c0_21 = arith.constant 0 : index
    %c0_22 = arith.constant 0 : index
    %46 = vector.load %arg7[%c0_20, %c0_21, %c0_22] : memref<2x128x384xbf16, #tpu.memory_space<vmem>>, vector<1x128x384xbf16>
    %47 = vector.shape_cast %46 : vector<1x128x384xbf16> to vector<128x384xbf16>
    %48 = arith.truncf %45 : vector<10x128xf32> to vector<10x128xbf16>
    %cst_23 = arith.constant dense<0.000000e+00> : vector<10x384xf32>
    %49 = tpu.matmul %48, %47, %cst_23 {dimension_numbers = #tpu.dot_dimension_numbers<[1], [0], [0], [1], [0, 0, 1, 1], [], []>} : vector<10x128xbf16>, vector<128x384xbf16>, vector<10x384xf32> -> vector<10x384xf32>
    %c0_24 = arith.constant 0 : index
    %c0_25 = arith.constant 0 : index
    %c0_26 = arith.constant 0 : index
    %50 = vector.load %arg8[%c0_24, %c0_25, %c0_26] : memref<2x1x384xf32, #tpu.memory_space<vmem>>, vector<1x1x384xf32>
    %51 = vector.shape_cast %50 : vector<1x1x384xf32> to vector<1x384xf32>
    %52 = vector.broadcast %51 : vector<1x384xf32> to vector<10x384xf32>
    %53 = arith.addf %49, %52 : vector<10x384xf32>
    %54 = vector.extract_strided_slice %53 {offsets = [0, 0], sizes = [10, 128], strides = [1, 1]} : vector<10x384xf32> to vector<10x128xf32>
    %55 = arith.truncf %54 : vector<10x128xf32> to vector<10x128xbf16>
    %56 = vector.extract_strided_slice %53 {offsets = [0, 128], sizes = [10, 128], strides = [1, 1]} : vector<10x384xf32> to vector<10x128xf32>
    %57 = arith.truncf %56 : vector<10x128xf32> to vector<10x128xbf16>
    %58 = vector.extract_strided_slice %53 {offsets = [0, 256], sizes = [10, 128], strides = [1, 1]} : vector<10x384xf32> to vector<10x128xf32>
    %59 = arith.truncf %58 : vector<10x128xf32> to vector<10x128xbf16>
    %c0_27 = arith.constant 0 : index
    %c0_28 = arith.constant 0 : index
    %c0_29 = arith.constant 0 : index
    %60 = vector.load %arg9[%c0_27, %c0_28, %c0_29] : memref<2x128x128xbf16, #tpu.memory_space<vmem>>, vector<1x128x128xbf16>
    %61 = vector.shape_cast %60 : vector<1x128x128xbf16> to vector<128x128xbf16>
    %cst_30 = arith.constant 0.000000e+00 : f32
    %62 = vector.broadcast %cst_30 : f32 to vector<5x128xf32>
    %63 = vector.extract_strided_slice %55 {offsets = [0, 0], sizes = [5, 32], strides = [1, 1]} : vector<10x128xbf16> to vector<5x32xbf16>
    %64 = vector.extract_strided_slice %57 {offsets = [0, 0], sizes = [5, 32], strides = [1, 1]} : vector<10x128xbf16> to vector<5x32xbf16>
    %65 = vector.extract_strided_slice %59 {offsets = [0, 0], sizes = [5, 32], strides = [1, 1]} : vector<10x128xbf16> to vector<5x32xbf16>
    %cst_31 = arith.constant dense<0.000000e+00> : vector<5x5xf32>
    %66 = tpu.matmul %63, %64, %cst_31 {dimension_numbers = #tpu.dot_dimension_numbers<[1], [1], [0], [0], [0, 0, 1, 0], [], []>} : vector<5x32xbf16>, vector<5x32xbf16>, vector<5x5xf32> -> vector<5x5xf32>
    %cst_32 = arith.constant 0.176776692 : f32
    %67 = vector.broadcast %cst_32 : f32 to vector<5x5xf32>
    %68 = arith.mulf %66, %67 : vector<5x5xf32>
    %cst_33 = arith.constant dense<0xFF800000> : vector<5xf32>
    %69 = vector.multi_reduction <maximumf>, %68, %cst_33 [1] : vector<5x5xf32> to vector<5xf32>
    %70 = vector.shape_cast %69 : vector<5xf32> to vector<5x1xf32>
    %71 = vector.broadcast %70 : vector<5x1xf32> to vector<5x5xf32>
    %72 = arith.subf %68, %71 : vector<5x5xf32>
    %73 = math.exp %72 : vector<5x5xf32>
    %cst_34 = arith.constant dense<0.000000e+00> : vector<5xf32>
    %74 = vector.multi_reduction <add>, %73, %cst_34 [1] : vector<5x5xf32> to vector<5xf32>
    %75 = vector.shape_cast %74 : vector<5xf32> to vector<5x1xf32>
    %76 = tpu.reciprocal %75 {approx = true} : vector<5x1xf32> -> vector<5x1xf32>
    %77 = vector.broadcast %76 : vector<5x1xf32> to vector<5x5xf32>
    %78 = arith.mulf %73, %77 : vector<5x5xf32>
    %79 = arith.truncf %78 : vector<5x5xf32> to vector<5x5xbf16>
    %cst_35 = arith.constant dense<0.000000e+00> : vector<5x32xf32>
    %80 = tpu.matmul %79, %65, %cst_35 {dimension_numbers = #tpu.dot_dimension_numbers<[1], [0], [0], [1], [0, 0, 1, 1], [], []>} : vector<5x5xbf16>, vector<5x32xbf16>, vector<5x32xf32> -> vector<5x32xf32>
    %81 = vector.extract_strided_slice %61 {offsets = [0, 0], sizes = [32, 128], strides = [1, 1]} : vector<128x128xbf16> to vector<32x128xbf16>
    %82 = arith.truncf %80 : vector<5x32xf32> to vector<5x32xbf16>
    %cst_36 = arith.constant dense<0.000000e+00> : vector<5x128xf32>
    %83 = tpu.matmul %82, %81, %cst_36 {dimension_numbers = #tpu.dot_dimension_numbers<[1], [0], [0], [1], [0, 0, 1, 1], [], []>} : vector<5x32xbf16>, vector<32x128xbf16>, vector<5x128xf32> -> vector<5x128xf32>
    %84 = arith.addf %62, %83 : vector<5x128xf32>
    %85 = vector.extract_strided_slice %55 {offsets = [0, 32], sizes = [5, 32], strides = [1, 1]} : vector<10x128xbf16> to vector<5x32xbf16>
    %86 = vector.extract_strided_slice %57 {offsets = [0, 32], sizes = [5, 32], strides = [1, 1]} : vector<10x128xbf16> to vector<5x32xbf16>
    %87 = vector.extract_strided_slice %59 {offsets = [0, 32], sizes = [5, 32], strides = [1, 1]} : vector<10x128xbf16> to vector<5x32xbf16>
    %cst_37 = arith.constant dense<0.000000e+00> : vector<5x5xf32>
    %88 = tpu.matmul %85, %86, %cst_37 {dimension_numbers = #tpu.dot_dimension_numbers<[1], [1], [0], [0], [0, 0, 1, 0], [], []>} : vector<5x32xbf16>, vector<5x32xbf16>, vector<5x5xf32> -> vector<5x5xf32>
    %cst_38 = arith.constant 0.176776692 : f32
    %89 = vector.broadcast %cst_38 : f32 to vector<5x5xf32>
    %90 = arith.mulf %88, %89 : vector<5x5xf32>
    %cst_39 = arith.constant dense<0xFF800000> : vector<5xf32>
    %91 = vector.multi_reduction <maximumf>, %90, %cst_39 [1] : vector<5x5xf32> to vector<5xf32>
    %92 = vector.shape_cast %91 : vector<5xf32> to vector<5x1xf32>
    %93 = vector.broadcast %92 : vector<5x1xf32> to vector<5x5xf32>
    %94 = arith.subf %90, %93 : vector<5x5xf32>
    %95 = math.exp %94 : vector<5x5xf32>
    %cst_40 = arith.constant dense<0.000000e+00> : vector<5xf32>
    %96 = vector.multi_reduction <add>, %95, %cst_40 [1] : vector<5x5xf32> to vector<5xf32>
    %97 = vector.shape_cast %96 : vector<5xf32> to vector<5x1xf32>
    %98 = tpu.reciprocal %97 {approx = true} : vector<5x1xf32> -> vector<5x1xf32>
    %99 = vector.broadcast %98 : vector<5x1xf32> to vector<5x5xf32>
    %100 = arith.mulf %95, %99 : vector<5x5xf32>
    %101 = arith.truncf %100 : vector<5x5xf32> to vector<5x5xbf16>
    %cst_41 = arith.constant dense<0.000000e+00> : vector<5x32xf32>
    %102 = tpu.matmul %101, %87, %cst_41 {dimension_numbers = #tpu.dot_dimension_numbers<[1], [0], [0], [1], [0, 0, 1, 1], [], []>} : vector<5x5xbf16>, vector<5x32xbf16>, vector<5x32xf32> -> vector<5x32xf32>
    %103 = vector.extract_strided_slice %61 {offsets = [32, 0], sizes = [32, 128], strides = [1, 1]} : vector<128x128xbf16> to vector<32x128xbf16>
    %104 = arith.truncf %102 : vector<5x32xf32> to vector<5x32xbf16>
    %cst_42 = arith.constant dense<0.000000e+00> : vector<5x128xf32>
    %105 = tpu.matmul %104, %103, %cst_42 {dimension_numbers = #tpu.dot_dimension_numbers<[1], [0], [0], [1], [0, 0, 1, 1], [], []>} : vector<5x32xbf16>, vector<32x128xbf16>, vector<5x128xf32> -> vector<5x128xf32>
    %106 = arith.addf %84, %105 : vector<5x128xf32>
    %107 = vector.extract_strided_slice %55 {offsets = [0, 64], sizes = [5, 32], strides = [1, 1]} : vector<10x128xbf16> to vector<5x32xbf16>
    %108 = vector.extract_strided_slice %57 {offsets = [0, 64], sizes = [5, 32], strides = [1, 1]} : vector<10x128xbf16> to vector<5x32xbf16>
    %109 = vector.extract_strided_slice %59 {offsets = [0, 64], sizes = [5, 32], strides = [1, 1]} : vector<10x128xbf16> to vector<5x32xbf16>
    %cst_43 = arith.constant dense<0.000000e+00> : vector<5x5xf32>
    %110 = tpu.matmul %107, %108, %cst_43 {dimension_numbers = #tpu.dot_dimension_numbers<[1], [1], [0], [0], [0, 0, 1, 0], [], []>} : vector<5x32xbf16>, vector<5x32xbf16>, vector<5x5xf32> -> vector<5x5xf32>
    %cst_44 = arith.constant 0.176776692 : f32
    %111 = vector.broadcast %cst_44 : f32 to vector<5x5xf32>
    %112 = arith.mulf %110, %111 : vector<5x5xf32>
    %cst_45 = arith.constant dense<0xFF800000> : vector<5xf32>
    %113 = vector.multi_reduction <maximumf>, %112, %cst_45 [1] : vector<5x5xf32> to vector<5xf32>
    %114 = vector.shape_cast %113 : vector<5xf32> to vector<5x1xf32>
    %115 = vector.broadcast %114 : vector<5x1xf32> to vector<5x5xf32>
    %116 = arith.subf %112, %115 : vector<5x5xf32>
    %117 = math.exp %116 : vector<5x5xf32>
    %cst_46 = arith.constant dense<0.000000e+00> : vector<5xf32>
    %118 = vector.multi_reduction <add>, %117, %cst_46 [1] : vector<5x5xf32> to vector<5xf32>
    %119 = vector.shape_cast %118 : vector<5xf32> to vector<5x1xf32>
    %120 = tpu.reciprocal %119 {approx = true} : vector<5x1xf32> -> vector<5x1xf32>
    %121 = vector.broadcast %120 : vector<5x1xf32> to vector<5x5xf32>
    %122 = arith.mulf %117, %121 : vector<5x5xf32>
    %123 = arith.truncf %122 : vector<5x5xf32> to vector<5x5xbf16>
    %cst_47 = arith.constant dense<0.000000e+00> : vector<5x32xf32>
    %124 = tpu.matmul %123, %109, %cst_47 {dimension_numbers = #tpu.dot_dimension_numbers<[1], [0], [0], [1], [0, 0, 1, 1], [], []>} : vector<5x5xbf16>, vector<5x32xbf16>, vector<5x32xf32> -> vector<5x32xf32>
    %125 = vector.extract_strided_slice %61 {offsets = [64, 0], sizes = [32, 128], strides = [1, 1]} : vector<128x128xbf16> to vector<32x128xbf16>
    %126 = arith.truncf %124 : vector<5x32xf32> to vector<5x32xbf16>
    %cst_48 = arith.constant dense<0.000000e+00> : vector<5x128xf32>
    %127 = tpu.matmul %126, %125, %cst_48 {dimension_numbers = #tpu.dot_dimension_numbers<[1], [0], [0], [1], [0, 0, 1, 1], [], []>} : vector<5x32xbf16>, vector<32x128xbf16>, vector<5x128xf32> -> vector<5x128xf32>
    %128 = arith.addf %106, %127 : vector<5x128xf32>
    %129 = vector.extract_strided_slice %55 {offsets = [0, 96], sizes = [5, 32], strides = [1, 1]} : vector<10x128xbf16> to vector<5x32xbf16>
    %130 = vector.extract_strided_slice %57 {offsets = [0, 96], sizes = [5, 32], strides = [1, 1]} : vector<10x128xbf16> to vector<5x32xbf16>
    %131 = vector.extract_strided_slice %59 {offsets = [0, 96], sizes = [5, 32], strides = [1, 1]} : vector<10x128xbf16> to vector<5x32xbf16>
    %cst_49 = arith.constant dense<0.000000e+00> : vector<5x5xf32>
    %132 = tpu.matmul %129, %130, %cst_49 {dimension_numbers = #tpu.dot_dimension_numbers<[1], [1], [0], [0], [0, 0, 1, 0], [], []>} : vector<5x32xbf16>, vector<5x32xbf16>, vector<5x5xf32> -> vector<5x5xf32>
    %cst_50 = arith.constant 0.176776692 : f32
    %133 = vector.broadcast %cst_50 : f32 to vector<5x5xf32>
    %134 = arith.mulf %132, %133 : vector<5x5xf32>
    %cst_51 = arith.constant dense<0xFF800000> : vector<5xf32>
    %135 = vector.multi_reduction <maximumf>, %134, %cst_51 [1] : vector<5x5xf32> to vector<5xf32>
    %136 = vector.shape_cast %135 : vector<5xf32> to vector<5x1xf32>
    %137 = vector.broadcast %136 : vector<5x1xf32> to vector<5x5xf32>
    %138 = arith.subf %134, %137 : vector<5x5xf32>
    %139 = math.exp %138 : vector<5x5xf32>
    %cst_52 = arith.constant dense<0.000000e+00> : vector<5xf32>
    %140 = vector.multi_reduction <add>, %139, %cst_52 [1] : vector<5x5xf32> to vector<5xf32>
    %141 = vector.shape_cast %140 : vector<5xf32> to vector<5x1xf32>
    %142 = tpu.reciprocal %141 {approx = true} : vector<5x1xf32> -> vector<5x1xf32>
    %143 = vector.broadcast %142 : vector<5x1xf32> to vector<5x5xf32>
    %144 = arith.mulf %139, %143 : vector<5x5xf32>
    %145 = arith.truncf %144 : vector<5x5xf32> to vector<5x5xbf16>
    %cst_53 = arith.constant dense<0.000000e+00> : vector<5x32xf32>
    %146 = tpu.matmul %145, %131, %cst_53 {dimension_numbers = #tpu.dot_dimension_numbers<[1], [0], [0], [1], [0, 0, 1, 1], [], []>} : vector<5x5xbf16>, vector<5x32xbf16>, vector<5x32xf32> -> vector<5x32xf32>
    %147 = vector.extract_strided_slice %61 {offsets = [96, 0], sizes = [32, 128], strides = [1, 1]} : vector<128x128xbf16> to vector<32x128xbf16>
    %148 = arith.truncf %146 : vector<5x32xf32> to vector<5x32xbf16>
    %cst_54 = arith.constant dense<0.000000e+00> : vector<5x128xf32>
    %149 = tpu.matmul %148, %147, %cst_54 {dimension_numbers = #tpu.dot_dimension_numbers<[1], [0], [0], [1], [0, 0, 1, 1], [], []>} : vector<5x32xbf16>, vector<32x128xbf16>, vector<5x128xf32> -> vector<5x128xf32>
    %150 = arith.addf %128, %149 : vector<5x128xf32>
    %cst_55 = arith.constant 0.000000e+00 : f32
    %151 = vector.broadcast %cst_55 : f32 to vector<5x128xf32>
    %152 = vector.extract_strided_slice %55 {offsets = [5, 0], sizes = [5, 32], strides = [1, 1]} : vector<10x128xbf16> to vector<5x32xbf16>
    %153 = vector.extract_strided_slice %57 {offsets = [5, 0], sizes = [5, 32], strides = [1, 1]} : vector<10x128xbf16> to vector<5x32xbf16>
    %154 = vector.extract_strided_slice %59 {offsets = [5, 0], sizes = [5, 32], strides = [1, 1]} : vector<10x128xbf16> to vector<5x32xbf16>
    %cst_56 = arith.constant dense<0.000000e+00> : vector<5x5xf32>
    %155 = tpu.matmul %152, %153, %cst_56 {dimension_numbers = #tpu.dot_dimension_numbers<[1], [1], [0], [0], [0, 0, 1, 0], [], []>} : vector<5x32xbf16>, vector<5x32xbf16>, vector<5x5xf32> -> vector<5x5xf32>
    %cst_57 = arith.constant 0.176776692 : f32
    %156 = vector.broadcast %cst_57 : f32 to vector<5x5xf32>
    %157 = arith.mulf %155, %156 : vector<5x5xf32>
    %cst_58 = arith.constant dense<0xFF800000> : vector<5xf32>
    %158 = vector.multi_reduction <maximumf>, %157, %cst_58 [1] : vector<5x5xf32> to vector<5xf32>
    %159 = vector.shape_cast %158 : vector<5xf32> to vector<5x1xf32>
    %160 = vector.broadcast %159 : vector<5x1xf32> to vector<5x5xf32>
    %161 = arith.subf %157, %160 : vector<5x5xf32>
    %162 = math.exp %161 : vector<5x5xf32>
    %cst_59 = arith.constant dense<0.000000e+00> : vector<5xf32>
    %163 = vector.multi_reduction <add>, %162, %cst_59 [1] : vector<5x5xf32> to vector<5xf32>
    %164 = vector.shape_cast %163 : vector<5xf32> to vector<5x1xf32>
    %165 = tpu.reciprocal %164 {approx = true} : vector<5x1xf32> -> vector<5x1xf32>
    %166 = vector.broadcast %165 : vector<5x1xf32> to vector<5x5xf32>
    %167 = arith.mulf %162, %166 : vector<5x5xf32>
    %168 = arith.truncf %167 : vector<5x5xf32> to vector<5x5xbf16>
    %cst_60 = arith.constant dense<0.000000e+00> : vector<5x32xf32>
    %169 = tpu.matmul %168, %154, %cst_60 {dimension_numbers = #tpu.dot_dimension_numbers<[1], [0], [0], [1], [0, 0, 1, 1], [], []>} : vector<5x5xbf16>, vector<5x32xbf16>, vector<5x32xf32> -> vector<5x32xf32>
    %170 = vector.extract_strided_slice %61 {offsets = [0, 0], sizes = [32, 128], strides = [1, 1]} : vector<128x128xbf16> to vector<32x128xbf16>
    %171 = arith.truncf %169 : vector<5x32xf32> to vector<5x32xbf16>
    %cst_61 = arith.constant dense<0.000000e+00> : vector<5x128xf32>
    %172 = tpu.matmul %171, %170, %cst_61 {dimension_numbers = #tpu.dot_dimension_numbers<[1], [0], [0], [1], [0, 0, 1, 1], [], []>} : vector<5x32xbf16>, vector<32x128xbf16>, vector<5x128xf32> -> vector<5x128xf32>
    %173 = arith.addf %151, %172 : vector<5x128xf32>
    %174 = vector.extract_strided_slice %55 {offsets = [5, 32], sizes = [5, 32], strides = [1, 1]} : vector<10x128xbf16> to vector<5x32xbf16>
    %175 = vector.extract_strided_slice %57 {offsets = [5, 32], sizes = [5, 32], strides = [1, 1]} : vector<10x128xbf16> to vector<5x32xbf16>
    %176 = vector.extract_strided_slice %59 {offsets = [5, 32], sizes = [5, 32], strides = [1, 1]} : vector<10x128xbf16> to vector<5x32xbf16>
    %cst_62 = arith.constant dense<0.000000e+00> : vector<5x5xf32>
    %177 = tpu.matmul %174, %175, %cst_62 {dimension_numbers = #tpu.dot_dimension_numbers<[1], [1], [0], [0], [0, 0, 1, 0], [], []>} : vector<5x32xbf16>, vector<5x32xbf16>, vector<5x5xf32> -> vector<5x5xf32>
    %cst_63 = arith.constant 0.176776692 : f32
    %178 = vector.broadcast %cst_63 : f32 to vector<5x5xf32>
    %179 = arith.mulf %177, %178 : vector<5x5xf32>
    %cst_64 = arith.constant dense<0xFF800000> : vector<5xf32>
    %180 = vector.multi_reduction <maximumf>, %179, %cst_64 [1] : vector<5x5xf32> to vector<5xf32>
    %181 = vector.shape_cast %180 : vector<5xf32> to vector<5x1xf32>
    %182 = vector.broadcast %181 : vector<5x1xf32> to vector<5x5xf32>
    %183 = arith.subf %179, %182 : vector<5x5xf32>
    %184 = math.exp %183 : vector<5x5xf32>
    %cst_65 = arith.constant dense<0.000000e+00> : vector<5xf32>
    %185 = vector.multi_reduction <add>, %184, %cst_65 [1] : vector<5x5xf32> to vector<5xf32>
    %186 = vector.shape_cast %185 : vector<5xf32> to vector<5x1xf32>
    %187 = tpu.reciprocal %186 {approx = true} : vector<5x1xf32> -> vector<5x1xf32>
    %188 = vector.broadcast %187 : vector<5x1xf32> to vector<5x5xf32>
    %189 = arith.mulf %184, %188 : vector<5x5xf32>
    %190 = arith.truncf %189 : vector<5x5xf32> to vector<5x5xbf16>
    %cst_66 = arith.constant dense<0.000000e+00> : vector<5x32xf32>
    %191 = tpu.matmul %190, %176, %cst_66 {dimension_numbers = #tpu.dot_dimension_numbers<[1], [0], [0], [1], [0, 0, 1, 1], [], []>} : vector<5x5xbf16>, vector<5x32xbf16>, vector<5x32xf32> -> vector<5x32xf32>
    %192 = vector.extract_strided_slice %61 {offsets = [32, 0], sizes = [32, 128], strides = [1, 1]} : vector<128x128xbf16> to vector<32x128xbf16>
    %193 = arith.truncf %191 : vector<5x32xf32> to vector<5x32xbf16>
    %cst_67 = arith.constant dense<0.000000e+00> : vector<5x128xf32>
    %194 = tpu.matmul %193, %192, %cst_67 {dimension_numbers = #tpu.dot_dimension_numbers<[1], [0], [0], [1], [0, 0, 1, 1], [], []>} : vector<5x32xbf16>, vector<32x128xbf16>, vector<5x128xf32> -> vector<5x128xf32>
    %195 = arith.addf %173, %194 : vector<5x128xf32>
    %196 = vector.extract_strided_slice %55 {offsets = [5, 64], sizes = [5, 32], strides = [1, 1]} : vector<10x128xbf16> to vector<5x32xbf16>
    %197 = vector.extract_strided_slice %57 {offsets = [5, 64], sizes = [5, 32], strides = [1, 1]} : vector<10x128xbf16> to vector<5x32xbf16>
    %198 = vector.extract_strided_slice %59 {offsets = [5, 64], sizes = [5, 32], strides = [1, 1]} : vector<10x128xbf16> to vector<5x32xbf16>
    %cst_68 = arith.constant dense<0.000000e+00> : vector<5x5xf32>
    %199 = tpu.matmul %196, %197, %cst_68 {dimension_numbers = #tpu.dot_dimension_numbers<[1], [1], [0], [0], [0, 0, 1, 0], [], []>} : vector<5x32xbf16>, vector<5x32xbf16>, vector<5x5xf32> -> vector<5x5xf32>
    %cst_69 = arith.constant 0.176776692 : f32
    %200 = vector.broadcast %cst_69 : f32 to vector<5x5xf32>
    %201 = arith.mulf %199, %200 : vector<5x5xf32>
    %cst_70 = arith.constant dense<0xFF800000> : vector<5xf32>
    %202 = vector.multi_reduction <maximumf>, %201, %cst_70 [1] : vector<5x5xf32> to vector<5xf32>
    %203 = vector.shape_cast %202 : vector<5xf32> to vector<5x1xf32>
    %204 = vector.broadcast %203 : vector<5x1xf32> to vector<5x5xf32>
    %205 = arith.subf %201, %204 : vector<5x5xf32>
    %206 = math.exp %205 : vector<5x5xf32>
    %cst_71 = arith.constant dense<0.000000e+00> : vector<5xf32>
    %207 = vector.multi_reduction <add>, %206, %cst_71 [1] : vector<5x5xf32> to vector<5xf32>
    %208 = vector.shape_cast %207 : vector<5xf32> to vector<5x1xf32>
    %209 = tpu.reciprocal %208 {approx = true} : vector<5x1xf32> -> vector<5x1xf32>
    %210 = vector.broadcast %209 : vector<5x1xf32> to vector<5x5xf32>
    %211 = arith.mulf %206, %210 : vector<5x5xf32>
    %212 = arith.truncf %211 : vector<5x5xf32> to vector<5x5xbf16>
    %cst_72 = arith.constant dense<0.000000e+00> : vector<5x32xf32>
    %213 = tpu.matmul %212, %198, %cst_72 {dimension_numbers = #tpu.dot_dimension_numbers<[1], [0], [0], [1], [0, 0, 1, 1], [], []>} : vector<5x5xbf16>, vector<5x32xbf16>, vector<5x32xf32> -> vector<5x32xf32>
    %214 = vector.extract_strided_slice %61 {offsets = [64, 0], sizes = [32, 128], strides = [1, 1]} : vector<128x128xbf16> to vector<32x128xbf16>
    %215 = arith.truncf %213 : vector<5x32xf32> to vector<5x32xbf16>
    %cst_73 = arith.constant dense<0.000000e+00> : vector<5x128xf32>
    %216 = tpu.matmul %215, %214, %cst_73 {dimension_numbers = #tpu.dot_dimension_numbers<[1], [0], [0], [1], [0, 0, 1, 1], [], []>} : vector<5x32xbf16>, vector<32x128xbf16>, vector<5x128xf32> -> vector<5x128xf32>
    %217 = arith.addf %195, %216 : vector<5x128xf32>
    %218 = vector.extract_strided_slice %55 {offsets = [5, 96], sizes = [5, 32], strides = [1, 1]} : vector<10x128xbf16> to vector<5x32xbf16>
    %219 = vector.extract_strided_slice %57 {offsets = [5, 96], sizes = [5, 32], strides = [1, 1]} : vector<10x128xbf16> to vector<5x32xbf16>
    %220 = vector.extract_strided_slice %59 {offsets = [5, 96], sizes = [5, 32], strides = [1, 1]} : vector<10x128xbf16> to vector<5x32xbf16>
    %cst_74 = arith.constant dense<0.000000e+00> : vector<5x5xf32>
    %221 = tpu.matmul %218, %219, %cst_74 {dimension_numbers = #tpu.dot_dimension_numbers<[1], [1], [0], [0], [0, 0, 1, 0], [], []>} : vector<5x32xbf16>, vector<5x32xbf16>, vector<5x5xf32> -> vector<5x5xf32>
    %cst_75 = arith.constant 0.176776692 : f32
    %222 = vector.broadcast %cst_75 : f32 to vector<5x5xf32>
    %223 = arith.mulf %221, %222 : vector<5x5xf32>
    %cst_76 = arith.constant dense<0xFF800000> : vector<5xf32>
    %224 = vector.multi_reduction <maximumf>, %223, %cst_76 [1] : vector<5x5xf32> to vector<5xf32>
    %225 = vector.shape_cast %224 : vector<5xf32> to vector<5x1xf32>
    %226 = vector.broadcast %225 : vector<5x1xf32> to vector<5x5xf32>
    %227 = arith.subf %223, %226 : vector<5x5xf32>
    %228 = math.exp %227 : vector<5x5xf32>
    %cst_77 = arith.constant dense<0.000000e+00> : vector<5xf32>
    %229 = vector.multi_reduction <add>, %228, %cst_77 [1] : vector<5x5xf32> to vector<5xf32>
    %230 = vector.shape_cast %229 : vector<5xf32> to vector<5x1xf32>
    %231 = tpu.reciprocal %230 {approx = true} : vector<5x1xf32> -> vector<5x1xf32>
    %232 = vector.broadcast %231 : vector<5x1xf32> to vector<5x5xf32>
    %233 = arith.mulf %228, %232 : vector<5x5xf32>
    %234 = arith.truncf %233 : vector<5x5xf32> to vector<5x5xbf16>
    %cst_78 = arith.constant dense<0.000000e+00> : vector<5x32xf32>
    %235 = tpu.matmul %234, %220, %cst_78 {dimension_numbers = #tpu.dot_dimension_numbers<[1], [0], [0], [1], [0, 0, 1, 1], [], []>} : vector<5x5xbf16>, vector<5x32xbf16>, vector<5x32xf32> -> vector<5x32xf32>
    %236 = vector.extract_strided_slice %61 {offsets = [96, 0], sizes = [32, 128], strides = [1, 1]} : vector<128x128xbf16> to vector<32x128xbf16>
    %237 = arith.truncf %235 : vector<5x32xf32> to vector<5x32xbf16>
    %cst_79 = arith.constant dense<0.000000e+00> : vector<5x128xf32>
    %238 = tpu.matmul %237, %236, %cst_79 {dimension_numbers = #tpu.dot_dimension_numbers<[1], [0], [0], [1], [0, 0, 1, 1], [], []>} : vector<5x32xbf16>, vector<32x128xbf16>, vector<5x128xf32> -> vector<5x128xf32>
    %239 = arith.addf %217, %238 : vector<5x128xf32>
    %240 = tpu.concatenate %150, %239 in 0 : vector<5x128xf32>, vector<5x128xf32> -> vector<10x128xf32>
    %241 = arith.addf %19, %240 : vector<10x128xf32>
    %c0_80 = arith.constant 0 : index
    %c0_81 = arith.constant 0 : index
    %c0_82 = arith.constant 0 : index
    %242 = vector.load %arg10[%c0_80, %c0_81, %c0_82] : memref<2x1x128xf32, #tpu.memory_space<vmem>>, vector<1x1x128xf32>
    %243 = vector.shape_cast %242 : vector<1x1x128xf32> to vector<1x128xf32>
    %244 = vector.broadcast %243 : vector<1x128xf32> to vector<10x128xf32>
    %245 = arith.addf %241, %244 : vector<10x128xf32>
    %c0_83 = arith.constant 0 : index
    %c0_84 = arith.constant 0 : index
    %c0_85 = arith.constant 0 : index
    %246 = vector.load %arg11[%c0_83, %c0_84, %c0_85] : memref<2x1x128xf32, #tpu.memory_space<vmem>>, vector<1x1x128xf32>
    %247 = vector.shape_cast %246 : vector<1x1x128xf32> to vector<1x128xf32>
    %c0_86 = arith.constant 0 : index
    %c0_87 = arith.constant 0 : index
    %c0_88 = arith.constant 0 : index
    %248 = vector.load %arg12[%c0_86, %c0_87, %c0_88] : memref<2x1x128xf32, #tpu.memory_space<vmem>>, vector<1x1x128xf32>
    %249 = vector.shape_cast %248 : vector<1x1x128xf32> to vector<1x128xf32>
    %cst_89 = arith.constant dense<0.000000e+00> : vector<10xf32>
    %250 = vector.multi_reduction <add>, %245, %cst_89 [1] : vector<10x128xf32> to vector<10xf32>
    %251 = vector.shape_cast %250 : vector<10xf32> to vector<10x1xf32>
    %cst_90 = arith.constant 1.280000e+02 : f32
    %252 = vector.broadcast %cst_90 : f32 to vector<10x1xf32>
    %253 = arith.divf %251, %252 : vector<10x1xf32>
    %254 = vector.broadcast %253 : vector<10x1xf32> to vector<10x128xf32>
    %255 = arith.subf %245, %254 : vector<10x128xf32>
    %256 = arith.mulf %255, %255 : vector<10x128xf32>
    %cst_91 = arith.constant dense<0.000000e+00> : vector<10xf32>
    %257 = vector.multi_reduction <add>, %256, %cst_91 [1] : vector<10x128xf32> to vector<10xf32>
    %258 = vector.shape_cast %257 : vector<10xf32> to vector<10x1xf32>
    %cst_92 = arith.constant 1.280000e+02 : f32
    %259 = vector.broadcast %cst_92 : f32 to vector<10x1xf32>
    %260 = arith.divf %258, %259 : vector<10x1xf32>
    %261 = vector.broadcast %253 : vector<10x1xf32> to vector<10x128xf32>
    %262 = arith.subf %245, %261 : vector<10x128xf32>
    %cst_93 = arith.constant 9.99999996E-13 : f32
    %263 = vector.broadcast %cst_93 : f32 to vector<10x1xf32>
    %264 = arith.addf %260, %263 : vector<10x1xf32>
    %265 = math.rsqrt %264 : vector<10x1xf32>
    %266 = vector.broadcast %265 : vector<10x1xf32> to vector<10x128xf32>
    %267 = arith.mulf %262, %266 : vector<10x128xf32>
    %268 = vector.broadcast %247 : vector<1x128xf32> to vector<10x128xf32>
    %269 = arith.mulf %267, %268 : vector<10x128xf32>
    %270 = vector.broadcast %249 : vector<1x128xf32> to vector<10x128xf32>
    %271 = arith.addf %269, %270 : vector<10x128xf32>
    %c0_94 = arith.constant 0 : index
    %c0_95 = arith.constant 0 : index
    %c0_96 = arith.constant 0 : index
    %272 = vector.load %arg13[%c0_94, %c0_95, %c0_96] : memref<2x128x256xbf16, #tpu.memory_space<vmem>>, vector<1x128x256xbf16>
    %273 = vector.shape_cast %272 : vector<1x128x256xbf16> to vector<128x256xbf16>
    %274 = arith.truncf %271 : vector<10x128xf32> to vector<10x128xbf16>
    %cst_97 = arith.constant dense<0.000000e+00> : vector<10x256xf32>
    %275 = tpu.matmul %274, %273, %cst_97 {dimension_numbers = #tpu.dot_dimension_numbers<[1], [0], [0], [1], [0, 0, 1, 1], [], []>} : vector<10x128xbf16>, vector<128x256xbf16>, vector<10x256xf32> -> vector<10x256xf32>
    %c0_98 = arith.constant 0 : index
    %c0_99 = arith.constant 0 : index
    %c0_100 = arith.constant 0 : index
    %276 = vector.load %arg14[%c0_98, %c0_99, %c0_100] : memref<2x1x256xf32, #tpu.memory_space<vmem>>, vector<1x1x256xf32>
    %277 = vector.shape_cast %276 : vector<1x1x256xf32> to vector<1x256xf32>
    %278 = vector.broadcast %277 : vector<1x256xf32> to vector<10x256xf32>
    %279 = arith.addf %275, %278 : vector<10x256xf32>
    %cst_101 = arith.constant 5.000000e-01 : f32
    %280 = vector.broadcast %cst_101 : f32 to vector<10x256xf32>
    %281 = arith.mulf %280, %279 : vector<10x256xf32>
    %cst_102 = arith.constant 4.471500e-02 : f32
    %282 = vector.broadcast %cst_102 : f32 to vector<10x256xf32>
    %283 = arith.mulf %282, %279 : vector<10x256xf32>
    %284 = arith.mulf %283, %279 : vector<10x256xf32>
    %285 = arith.mulf %284, %279 : vector<10x256xf32>
    %286 = arith.addf %279, %285 : vector<10x256xf32>
    %cst_103 = arith.constant 0.797884583 : f32
    %287 = vector.broadcast %cst_103 : f32 to vector<10x256xf32>
    %288 = arith.mulf %287, %286 : vector<10x256xf32>
    %289 = math.tanh %288 : vector<10x256xf32>
    %cst_104 = arith.constant 1.000000e+00 : f32
    %290 = vector.broadcast %cst_104 : f32 to vector<10x256xf32>
    %291 = arith.addf %290, %289 : vector<10x256xf32>
    %292 = arith.mulf %281, %291 : vector<10x256xf32>
    %c0_105 = arith.constant 0 : index
    %c0_106 = arith.constant 0 : index
    %c0_107 = arith.constant 0 : index
    %293 = vector.load %arg15[%c0_105, %c0_106, %c0_107] : memref<2x256x128xbf16, #tpu.memory_space<vmem>>, vector<1x256x128xbf16>
    %294 = vector.shape_cast %293 : vector<1x256x128xbf16> to vector<256x128xbf16>
    %295 = arith.truncf %292 : vector<10x256xf32> to vector<10x256xbf16>
    %cst_108 = arith.constant dense<0.000000e+00> : vector<10x128xf32>
    %296 = tpu.matmul %295, %294, %cst_108 {dimension_numbers = #tpu.dot_dimension_numbers<[1], [0], [0], [1], [0, 0, 1, 1], [], []>} : vector<10x256xbf16>, vector<256x128xbf16>, vector<10x128xf32> -> vector<10x128xf32>
    %c0_109 = arith.constant 0 : index
    %c0_110 = arith.constant 0 : index
    %c0_111 = arith.constant 0 : index
    %297 = vector.load %arg16[%c0_109, %c0_110, %c0_111] : memref<2x1x128xf32, #tpu.memory_space<vmem>>, vector<1x1x128xf32>
    %298 = vector.shape_cast %297 : vector<1x1x128xf32> to vector<1x128xf32>
    %299 = vector.broadcast %298 : vector<1x128xf32> to vector<10x128xf32>
    %300 = arith.addf %296, %299 : vector<10x128xf32>
    %301 = arith.addf %245, %300 : vector<10x128xf32>
    %c1 = arith.constant 1 : index
    %c0_112 = arith.constant 0 : index
    %c0_113 = arith.constant 0 : index
    %302 = vector.load %arg5[%c1, %c0_112, %c0_113] : memref<2x1x128xf32, #tpu.memory_space<vmem>>, vector<1x1x128xf32>
    %303 = vector.shape_cast %302 : vector<1x1x128xf32> to vector<1x128xf32>
    %c1_114 = arith.constant 1 : index
    %c0_115 = arith.constant 0 : index
    %c0_116 = arith.constant 0 : index
    %304 = vector.load %arg6[%c1_114, %c0_115, %c0_116] : memref<2x1x128xf32, #tpu.memory_space<vmem>>, vector<1x1x128xf32>
    %305 = vector.shape_cast %304 : vector<1x1x128xf32> to vector<1x128xf32>
    %cst_117 = arith.constant dense<0.000000e+00> : vector<10xf32>
    %306 = vector.multi_reduction <add>, %301, %cst_117 [1] : vector<10x128xf32> to vector<10xf32>
    %307 = vector.shape_cast %306 : vector<10xf32> to vector<10x1xf32>
    %cst_118 = arith.constant 1.280000e+02 : f32
    %308 = vector.broadcast %cst_118 : f32 to vector<10x1xf32>
    %309 = arith.divf %307, %308 : vector<10x1xf32>
    %310 = vector.broadcast %309 : vector<10x1xf32> to vector<10x128xf32>
    %311 = arith.subf %301, %310 : vector<10x128xf32>
    %312 = arith.mulf %311, %311 : vector<10x128xf32>
    %cst_119 = arith.constant dense<0.000000e+00> : vector<10xf32>
    %313 = vector.multi_reduction <add>, %312, %cst_119 [1] : vector<10x128xf32> to vector<10xf32>
    %314 = vector.shape_cast %313 : vector<10xf32> to vector<10x1xf32>
    %cst_120 = arith.constant 1.280000e+02 : f32
    %315 = vector.broadcast %cst_120 : f32 to vector<10x1xf32>
    %316 = arith.divf %314, %315 : vector<10x1xf32>
    %317 = vector.broadcast %309 : vector<10x1xf32> to vector<10x128xf32>
    %318 = arith.subf %301, %317 : vector<10x128xf32>
    %cst_121 = arith.constant 9.99999996E-13 : f32
    %319 = vector.broadcast %cst_121 : f32 to vector<10x1xf32>
    %320 = arith.addf %316, %319 : vector<10x1xf32>
    %321 = math.rsqrt %320 : vector<10x1xf32>
    %322 = vector.broadcast %321 : vector<10x1xf32> to vector<10x128xf32>
    %323 = arith.mulf %318, %322 : vector<10x128xf32>
    %324 = vector.broadcast %303 : vector<1x128xf32> to vector<10x128xf32>
    %325 = arith.mulf %323, %324 : vector<10x128xf32>
    %326 = vector.broadcast %305 : vector<1x128xf32> to vector<10x128xf32>
    %327 = arith.addf %325, %326 : vector<10x128xf32>
    %c1_122 = arith.constant 1 : index
    %c0_123 = arith.constant 0 : index
    %c0_124 = arith.constant 0 : index
    %328 = vector.load %arg7[%c1_122, %c0_123, %c0_124] : memref<2x128x384xbf16, #tpu.memory_space<vmem>>, vector<1x128x384xbf16>
    %329 = vector.shape_cast %328 : vector<1x128x384xbf16> to vector<128x384xbf16>
    %330 = arith.truncf %327 : vector<10x128xf32> to vector<10x128xbf16>
    %cst_125 = arith.constant dense<0.000000e+00> : vector<10x384xf32>
    %331 = tpu.matmul %330, %329, %cst_125 {dimension_numbers = #tpu.dot_dimension_numbers<[1], [0], [0], [1], [0, 0, 1, 1], [], []>} : vector<10x128xbf16>, vector<128x384xbf16>, vector<10x384xf32> -> vector<10x384xf32>
    %c1_126 = arith.constant 1 : index
    %c0_127 = arith.constant 0 : index
    %c0_128 = arith.constant 0 : index
    %332 = vector.load %arg8[%c1_126, %c0_127, %c0_128] : memref<2x1x384xf32, #tpu.memory_space<vmem>>, vector<1x1x384xf32>
    %333 = vector.shape_cast %332 : vector<1x1x384xf32> to vector<1x384xf32>
    %334 = vector.broadcast %333 : vector<1x384xf32> to vector<10x384xf32>
    %335 = arith.addf %331, %334 : vector<10x384xf32>
    %336 = vector.extract_strided_slice %335 {offsets = [0, 0], sizes = [10, 128], strides = [1, 1]} : vector<10x384xf32> to vector<10x128xf32>
    %337 = arith.truncf %336 : vector<10x128xf32> to vector<10x128xbf16>
    %338 = vector.extract_strided_slice %335 {offsets = [0, 128], sizes = [10, 128], strides = [1, 1]} : vector<10x384xf32> to vector<10x128xf32>
    %339 = arith.truncf %338 : vector<10x128xf32> to vector<10x128xbf16>
    %340 = vector.extract_strided_slice %335 {offsets = [0, 256], sizes = [10, 128], strides = [1, 1]} : vector<10x384xf32> to vector<10x128xf32>
    %341 = arith.truncf %340 : vector<10x128xf32> to vector<10x128xbf16>
    %c1_129 = arith.constant 1 : index
    %c0_130 = arith.constant 0 : index
    %c0_131 = arith.constant 0 : index
    %342 = vector.load %arg9[%c1_129, %c0_130, %c0_131] : memref<2x128x128xbf16, #tpu.memory_space<vmem>>, vector<1x128x128xbf16>
    %343 = vector.shape_cast %342 : vector<1x128x128xbf16> to vector<128x128xbf16>
    %cst_132 = arith.constant 0.000000e+00 : f32
    %344 = vector.broadcast %cst_132 : f32 to vector<5x128xf32>
    %345 = vector.extract_strided_slice %337 {offsets = [0, 0], sizes = [5, 32], strides = [1, 1]} : vector<10x128xbf16> to vector<5x32xbf16>
    %346 = vector.extract_strided_slice %339 {offsets = [0, 0], sizes = [5, 32], strides = [1, 1]} : vector<10x128xbf16> to vector<5x32xbf16>
    %347 = vector.extract_strided_slice %341 {offsets = [0, 0], sizes = [5, 32], strides = [1, 1]} : vector<10x128xbf16> to vector<5x32xbf16>
    %cst_133 = arith.constant dense<0.000000e+00> : vector<5x5xf32>
    %348 = tpu.matmul %345, %346, %cst_133 {dimension_numbers = #tpu.dot_dimension_numbers<[1], [1], [0], [0], [0, 0, 1, 0], [], []>} : vector<5x32xbf16>, vector<5x32xbf16>, vector<5x5xf32> -> vector<5x5xf32>
    %cst_134 = arith.constant 0.176776692 : f32
    %349 = vector.broadcast %cst_134 : f32 to vector<5x5xf32>
    %350 = arith.mulf %348, %349 : vector<5x5xf32>
    %cst_135 = arith.constant dense<0xFF800000> : vector<5xf32>
    %351 = vector.multi_reduction <maximumf>, %350, %cst_135 [1] : vector<5x5xf32> to vector<5xf32>
    %352 = vector.shape_cast %351 : vector<5xf32> to vector<5x1xf32>
    %353 = vector.broadcast %352 : vector<5x1xf32> to vector<5x5xf32>
    %354 = arith.subf %350, %353 : vector<5x5xf32>
    %355 = math.exp %354 : vector<5x5xf32>
    %cst_136 = arith.constant dense<0.000000e+00> : vector<5xf32>
    %356 = vector.multi_reduction <add>, %355, %cst_136 [1] : vector<5x5xf32> to vector<5xf32>
    %357 = vector.shape_cast %356 : vector<5xf32> to vector<5x1xf32>
    %358 = tpu.reciprocal %357 {approx = true} : vector<5x1xf32> -> vector<5x1xf32>
    %359 = vector.broadcast %358 : vector<5x1xf32> to vector<5x5xf32>
    %360 = arith.mulf %355, %359 : vector<5x5xf32>
    %361 = arith.truncf %360 : vector<5x5xf32> to vector<5x5xbf16>
    %cst_137 = arith.constant dense<0.000000e+00> : vector<5x32xf32>
    %362 = tpu.matmul %361, %347, %cst_137 {dimension_numbers = #tpu.dot_dimension_numbers<[1], [0], [0], [1], [0, 0, 1, 1], [], []>} : vector<5x5xbf16>, vector<5x32xbf16>, vector<5x32xf32> -> vector<5x32xf32>
    %363 = vector.extract_strided_slice %343 {offsets = [0, 0], sizes = [32, 128], strides = [1, 1]} : vector<128x128xbf16> to vector<32x128xbf16>
    %364 = arith.truncf %362 : vector<5x32xf32> to vector<5x32xbf16>
    %cst_138 = arith.constant dense<0.000000e+00> : vector<5x128xf32>
    %365 = tpu.matmul %364, %363, %cst_138 {dimension_numbers = #tpu.dot_dimension_numbers<[1], [0], [0], [1], [0, 0, 1, 1], [], []>} : vector<5x32xbf16>, vector<32x128xbf16>, vector<5x128xf32> -> vector<5x128xf32>
    %366 = arith.addf %344, %365 : vector<5x128xf32>
    %367 = vector.extract_strided_slice %337 {offsets = [0, 32], sizes = [5, 32], strides = [1, 1]} : vector<10x128xbf16> to vector<5x32xbf16>
    %368 = vector.extract_strided_slice %339 {offsets = [0, 32], sizes = [5, 32], strides = [1, 1]} : vector<10x128xbf16> to vector<5x32xbf16>
    %369 = vector.extract_strided_slice %341 {offsets = [0, 32], sizes = [5, 32], strides = [1, 1]} : vector<10x128xbf16> to vector<5x32xbf16>
    %cst_139 = arith.constant dense<0.000000e+00> : vector<5x5xf32>
    %370 = tpu.matmul %367, %368, %cst_139 {dimension_numbers = #tpu.dot_dimension_numbers<[1], [1], [0], [0], [0, 0, 1, 0], [], []>} : vector<5x32xbf16>, vector<5x32xbf16>, vector<5x5xf32> -> vector<5x5xf32>
    %cst_140 = arith.constant 0.176776692 : f32
    %371 = vector.broadcast %cst_140 : f32 to vector<5x5xf32>
    %372 = arith.mulf %370, %371 : vector<5x5xf32>
    %cst_141 = arith.constant dense<0xFF800000> : vector<5xf32>
    %373 = vector.multi_reduction <maximumf>, %372, %cst_141 [1] : vector<5x5xf32> to vector<5xf32>
    %374 = vector.shape_cast %373 : vector<5xf32> to vector<5x1xf32>
    %375 = vector.broadcast %374 : vector<5x1xf32> to vector<5x5xf32>
    %376 = arith.subf %372, %375 : vector<5x5xf32>
    %377 = math.exp %376 : vector<5x5xf32>
    %cst_142 = arith.constant dense<0.000000e+00> : vector<5xf32>
    %378 = vector.multi_reduction <add>, %377, %cst_142 [1] : vector<5x5xf32> to vector<5xf32>
    %379 = vector.shape_cast %378 : vector<5xf32> to vector<5x1xf32>
    %380 = tpu.reciprocal %379 {approx = true} : vector<5x1xf32> -> vector<5x1xf32>
    %381 = vector.broadcast %380 : vector<5x1xf32> to vector<5x5xf32>
    %382 = arith.mulf %377, %381 : vector<5x5xf32>
    %383 = arith.truncf %382 : vector<5x5xf32> to vector<5x5xbf16>
    %cst_143 = arith.constant dense<0.000000e+00> : vector<5x32xf32>
    %384 = tpu.matmul %383, %369, %cst_143 {dimension_numbers = #tpu.dot_dimension_numbers<[1], [0], [0], [1], [0, 0, 1, 1], [], []>} : vector<5x5xbf16>, vector<5x32xbf16>, vector<5x32xf32> -> vector<5x32xf32>
    %385 = vector.extract_strided_slice %343 {offsets = [32, 0], sizes = [32, 128], strides = [1, 1]} : vector<128x128xbf16> to vector<32x128xbf16>
    %386 = arith.truncf %384 : vector<5x32xf32> to vector<5x32xbf16>
    %cst_144 = arith.constant dense<0.000000e+00> : vector<5x128xf32>
    %387 = tpu.matmul %386, %385, %cst_144 {dimension_numbers = #tpu.dot_dimension_numbers<[1], [0], [0], [1], [0, 0, 1, 1], [], []>} : vector<5x32xbf16>, vector<32x128xbf16>, vector<5x128xf32> -> vector<5x128xf32>
    %388 = arith.addf %366, %387 : vector<5x128xf32>
    %389 = vector.extract_strided_slice %337 {offsets = [0, 64], sizes = [5, 32], strides = [1, 1]} : vector<10x128xbf16> to vector<5x32xbf16>
    %390 = vector.extract_strided_slice %339 {offsets = [0, 64], sizes = [5, 32], strides = [1, 1]} : vector<10x128xbf16> to vector<5x32xbf16>
    %391 = vector.extract_strided_slice %341 {offsets = [0, 64], sizes = [5, 32], strides = [1, 1]} : vector<10x128xbf16> to vector<5x32xbf16>
    %cst_145 = arith.constant dense<0.000000e+00> : vector<5x5xf32>
    %392 = tpu.matmul %389, %390, %cst_145 {dimension_numbers = #tpu.dot_dimension_numbers<[1], [1], [0], [0], [0, 0, 1, 0], [], []>} : vector<5x32xbf16>, vector<5x32xbf16>, vector<5x5xf32> -> vector<5x5xf32>
    %cst_146 = arith.constant 0.176776692 : f32
    %393 = vector.broadcast %cst_146 : f32 to vector<5x5xf32>
    %394 = arith.mulf %392, %393 : vector<5x5xf32>
    %cst_147 = arith.constant dense<0xFF800000> : vector<5xf32>
    %395 = vector.multi_reduction <maximumf>, %394, %cst_147 [1] : vector<5x5xf32> to vector<5xf32>
    %396 = vector.shape_cast %395 : vector<5xf32> to vector<5x1xf32>
    %397 = vector.broadcast %396 : vector<5x1xf32> to vector<5x5xf32>
    %398 = arith.subf %394, %397 : vector<5x5xf32>
    %399 = math.exp %398 : vector<5x5xf32>
    %cst_148 = arith.constant dense<0.000000e+00> : vector<5xf32>
    %400 = vector.multi_reduction <add>, %399, %cst_148 [1] : vector<5x5xf32> to vector<5xf32>
    %401 = vector.shape_cast %400 : vector<5xf32> to vector<5x1xf32>
    %402 = tpu.reciprocal %401 {approx = true} : vector<5x1xf32> -> vector<5x1xf32>
    %403 = vector.broadcast %402 : vector<5x1xf32> to vector<5x5xf32>
    %404 = arith.mulf %399, %403 : vector<5x5xf32>
    %405 = arith.truncf %404 : vector<5x5xf32> to vector<5x5xbf16>
    %cst_149 = arith.constant dense<0.000000e+00> : vector<5x32xf32>
    %406 = tpu.matmul %405, %391, %cst_149 {dimension_numbers = #tpu.dot_dimension_numbers<[1], [0], [0], [1], [0, 0, 1, 1], [], []>} : vector<5x5xbf16>, vector<5x32xbf16>, vector<5x32xf32> -> vector<5x32xf32>
    %407 = vector.extract_strided_slice %343 {offsets = [64, 0], sizes = [32, 128], strides = [1, 1]} : vector<128x128xbf16> to vector<32x128xbf16>
    %408 = arith.truncf %406 : vector<5x32xf32> to vector<5x32xbf16>
    %cst_150 = arith.constant dense<0.000000e+00> : vector<5x128xf32>
    %409 = tpu.matmul %408, %407, %cst_150 {dimension_numbers = #tpu.dot_dimension_numbers<[1], [0], [0], [1], [0, 0, 1, 1], [], []>} : vector<5x32xbf16>, vector<32x128xbf16>, vector<5x128xf32> -> vector<5x128xf32>
    %410 = arith.addf %388, %409 : vector<5x128xf32>
    %411 = vector.extract_strided_slice %337 {offsets = [0, 96], sizes = [5, 32], strides = [1, 1]} : vector<10x128xbf16> to vector<5x32xbf16>
    %412 = vector.extract_strided_slice %339 {offsets = [0, 96], sizes = [5, 32], strides = [1, 1]} : vector<10x128xbf16> to vector<5x32xbf16>
    %413 = vector.extract_strided_slice %341 {offsets = [0, 96], sizes = [5, 32], strides = [1, 1]} : vector<10x128xbf16> to vector<5x32xbf16>
    %cst_151 = arith.constant dense<0.000000e+00> : vector<5x5xf32>
    %414 = tpu.matmul %411, %412, %cst_151 {dimension_numbers = #tpu.dot_dimension_numbers<[1], [1], [0], [0], [0, 0, 1, 0], [], []>} : vector<5x32xbf16>, vector<5x32xbf16>, vector<5x5xf32> -> vector<5x5xf32>
    %cst_152 = arith.constant 0.176776692 : f32
    %415 = vector.broadcast %cst_152 : f32 to vector<5x5xf32>
    %416 = arith.mulf %414, %415 : vector<5x5xf32>
    %cst_153 = arith.constant dense<0xFF800000> : vector<5xf32>
    %417 = vector.multi_reduction <maximumf>, %416, %cst_153 [1] : vector<5x5xf32> to vector<5xf32>
    %418 = vector.shape_cast %417 : vector<5xf32> to vector<5x1xf32>
    %419 = vector.broadcast %418 : vector<5x1xf32> to vector<5x5xf32>
    %420 = arith.subf %416, %419 : vector<5x5xf32>
    %421 = math.exp %420 : vector<5x5xf32>
    %cst_154 = arith.constant dense<0.000000e+00> : vector<5xf32>
    %422 = vector.multi_reduction <add>, %421, %cst_154 [1] : vector<5x5xf32> to vector<5xf32>
    %423 = vector.shape_cast %422 : vector<5xf32> to vector<5x1xf32>
    %424 = tpu.reciprocal %423 {approx = true} : vector<5x1xf32> -> vector<5x1xf32>
    %425 = vector.broadcast %424 : vector<5x1xf32> to vector<5x5xf32>
    %426 = arith.mulf %421, %425 : vector<5x5xf32>
    %427 = arith.truncf %426 : vector<5x5xf32> to vector<5x5xbf16>
    %cst_155 = arith.constant dense<0.000000e+00> : vector<5x32xf32>
    %428 = tpu.matmul %427, %413, %cst_155 {dimension_numbers = #tpu.dot_dimension_numbers<[1], [0], [0], [1], [0, 0, 1, 1], [], []>} : vector<5x5xbf16>, vector<5x32xbf16>, vector<5x32xf32> -> vector<5x32xf32>
    %429 = vector.extract_strided_slice %343 {offsets = [96, 0], sizes = [32, 128], strides = [1, 1]} : vector<128x128xbf16> to vector<32x128xbf16>
    %430 = arith.truncf %428 : vector<5x32xf32> to vector<5x32xbf16>
    %cst_156 = arith.constant dense<0.000000e+00> : vector<5x128xf32>
    %431 = tpu.matmul %430, %429, %cst_156 {dimension_numbers = #tpu.dot_dimension_numbers<[1], [0], [0], [1], [0, 0, 1, 1], [], []>} : vector<5x32xbf16>, vector<32x128xbf16>, vector<5x128xf32> -> vector<5x128xf32>
    %432 = arith.addf %410, %431 : vector<5x128xf32>
    %cst_157 = arith.constant 0.000000e+00 : f32
    %433 = vector.broadcast %cst_157 : f32 to vector<5x128xf32>
    %434 = vector.extract_strided_slice %337 {offsets = [5, 0], sizes = [5, 32], strides = [1, 1]} : vector<10x128xbf16> to vector<5x32xbf16>
    %435 = vector.extract_strided_slice %339 {offsets = [5, 0], sizes = [5, 32], strides = [1, 1]} : vector<10x128xbf16> to vector<5x32xbf16>
    %436 = vector.extract_strided_slice %341 {offsets = [5, 0], sizes = [5, 32], strides = [1, 1]} : vector<10x128xbf16> to vector<5x32xbf16>
    %cst_158 = arith.constant dense<0.000000e+00> : vector<5x5xf32>
    %437 = tpu.matmul %434, %435, %cst_158 {dimension_numbers = #tpu.dot_dimension_numbers<[1], [1], [0], [0], [0, 0, 1, 0], [], []>} : vector<5x32xbf16>, vector<5x32xbf16>, vector<5x5xf32> -> vector<5x5xf32>
    %cst_159 = arith.constant 0.176776692 : f32
    %438 = vector.broadcast %cst_159 : f32 to vector<5x5xf32>
    %439 = arith.mulf %437, %438 : vector<5x5xf32>
    %cst_160 = arith.constant dense<0xFF800000> : vector<5xf32>
    %440 = vector.multi_reduction <maximumf>, %439, %cst_160 [1] : vector<5x5xf32> to vector<5xf32>
    %441 = vector.shape_cast %440 : vector<5xf32> to vector<5x1xf32>
    %442 = vector.broadcast %441 : vector<5x1xf32> to vector<5x5xf32>
    %443 = arith.subf %439, %442 : vector<5x5xf32>
    %444 = math.exp %443 : vector<5x5xf32>
    %cst_161 = arith.constant dense<0.000000e+00> : vector<5xf32>
    %445 = vector.multi_reduction <add>, %444, %cst_161 [1] : vector<5x5xf32> to vector<5xf32>
    %446 = vector.shape_cast %445 : vector<5xf32> to vector<5x1xf32>
    %447 = tpu.reciprocal %446 {approx = true} : vector<5x1xf32> -> vector<5x1xf32>
    %448 = vector.broadcast %447 : vector<5x1xf32> to vector<5x5xf32>
    %449 = arith.mulf %444, %448 : vector<5x5xf32>
    %450 = arith.truncf %449 : vector<5x5xf32> to vector<5x5xbf16>
    %cst_162 = arith.constant dense<0.000000e+00> : vector<5x32xf32>
    %451 = tpu.matmul %450, %436, %cst_162 {dimension_numbers = #tpu.dot_dimension_numbers<[1], [0], [0], [1], [0, 0, 1, 1], [], []>} : vector<5x5xbf16>, vector<5x32xbf16>, vector<5x32xf32> -> vector<5x32xf32>
    %452 = vector.extract_strided_slice %343 {offsets = [0, 0], sizes = [32, 128], strides = [1, 1]} : vector<128x128xbf16> to vector<32x128xbf16>
    %453 = arith.truncf %451 : vector<5x32xf32> to vector<5x32xbf16>
    %cst_163 = arith.constant dense<0.000000e+00> : vector<5x128xf32>
    %454 = tpu.matmul %453, %452, %cst_163 {dimension_numbers = #tpu.dot_dimension_numbers<[1], [0], [0], [1], [0, 0, 1, 1], [], []>} : vector<5x32xbf16>, vector<32x128xbf16>, vector<5x128xf32> -> vector<5x128xf32>
    %455 = arith.addf %433, %454 : vector<5x128xf32>
    %456 = vector.extract_strided_slice %337 {offsets = [5, 32], sizes = [5, 32], strides = [1, 1]} : vector<10x128xbf16> to vector<5x32xbf16>
    %457 = vector.extract_strided_slice %339 {offsets = [5, 32], sizes = [5, 32], strides = [1, 1]} : vector<10x128xbf16> to vector<5x32xbf16>
    %458 = vector.extract_strided_slice %341 {offsets = [5, 32], sizes = [5, 32], strides = [1, 1]} : vector<10x128xbf16> to vector<5x32xbf16>
    %cst_164 = arith.constant dense<0.000000e+00> : vector<5x5xf32>
    %459 = tpu.matmul %456, %457, %cst_164 {dimension_numbers = #tpu.dot_dimension_numbers<[1], [1], [0], [0], [0, 0, 1, 0], [], []>} : vector<5x32xbf16>, vector<5x32xbf16>, vector<5x5xf32> -> vector<5x5xf32>
    %cst_165 = arith.constant 0.176776692 : f32
    %460 = vector.broadcast %cst_165 : f32 to vector<5x5xf32>
    %461 = arith.mulf %459, %460 : vector<5x5xf32>
    %cst_166 = arith.constant dense<0xFF800000> : vector<5xf32>
    %462 = vector.multi_reduction <maximumf>, %461, %cst_166 [1] : vector<5x5xf32> to vector<5xf32>
    %463 = vector.shape_cast %462 : vector<5xf32> to vector<5x1xf32>
    %464 = vector.broadcast %463 : vector<5x1xf32> to vector<5x5xf32>
    %465 = arith.subf %461, %464 : vector<5x5xf32>
    %466 = math.exp %465 : vector<5x5xf32>
    %cst_167 = arith.constant dense<0.000000e+00> : vector<5xf32>
    %467 = vector.multi_reduction <add>, %466, %cst_167 [1] : vector<5x5xf32> to vector<5xf32>
    %468 = vector.shape_cast %467 : vector<5xf32> to vector<5x1xf32>
    %469 = tpu.reciprocal %468 {approx = true} : vector<5x1xf32> -> vector<5x1xf32>
    %470 = vector.broadcast %469 : vector<5x1xf32> to vector<5x5xf32>
    %471 = arith.mulf %466, %470 : vector<5x5xf32>
    %472 = arith.truncf %471 : vector<5x5xf32> to vector<5x5xbf16>
    %cst_168 = arith.constant dense<0.000000e+00> : vector<5x32xf32>
    %473 = tpu.matmul %472, %458, %cst_168 {dimension_numbers = #tpu.dot_dimension_numbers<[1], [0], [0], [1], [0, 0, 1, 1], [], []>} : vector<5x5xbf16>, vector<5x32xbf16>, vector<5x32xf32> -> vector<5x32xf32>
    %474 = vector.extract_strided_slice %343 {offsets = [32, 0], sizes = [32, 128], strides = [1, 1]} : vector<128x128xbf16> to vector<32x128xbf16>
    %475 = arith.truncf %473 : vector<5x32xf32> to vector<5x32xbf16>
    %cst_169 = arith.constant dense<0.000000e+00> : vector<5x128xf32>
    %476 = tpu.matmul %475, %474, %cst_169 {dimension_numbers = #tpu.dot_dimension_numbers<[1], [0], [0], [1], [0, 0, 1, 1], [], []>} : vector<5x32xbf16>, vector<32x128xbf16>, vector<5x128xf32> -> vector<5x128xf32>
    %477 = arith.addf %455, %476 : vector<5x128xf32>
    %478 = vector.extract_strided_slice %337 {offsets = [5, 64], sizes = [5, 32], strides = [1, 1]} : vector<10x128xbf16> to vector<5x32xbf16>
    %479 = vector.extract_strided_slice %339 {offsets = [5, 64], sizes = [5, 32], strides = [1, 1]} : vector<10x128xbf16> to vector<5x32xbf16>
    %480 = vector.extract_strided_slice %341 {offsets = [5, 64], sizes = [5, 32], strides = [1, 1]} : vector<10x128xbf16> to vector<5x32xbf16>
    %cst_170 = arith.constant dense<0.000000e+00> : vector<5x5xf32>
    %481 = tpu.matmul %478, %479, %cst_170 {dimension_numbers = #tpu.dot_dimension_numbers<[1], [1], [0], [0], [0, 0, 1, 0], [], []>} : vector<5x32xbf16>, vector<5x32xbf16>, vector<5x5xf32> -> vector<5x5xf32>
    %cst_171 = arith.constant 0.176776692 : f32
    %482 = vector.broadcast %cst_171 : f32 to vector<5x5xf32>
    %483 = arith.mulf %481, %482 : vector<5x5xf32>
    %cst_172 = arith.constant dense<0xFF800000> : vector<5xf32>
    %484 = vector.multi_reduction <maximumf>, %483, %cst_172 [1] : vector<5x5xf32> to vector<5xf32>
    %485 = vector.shape_cast %484 : vector<5xf32> to vector<5x1xf32>
    %486 = vector.broadcast %485 : vector<5x1xf32> to vector<5x5xf32>
    %487 = arith.subf %483, %486 : vector<5x5xf32>
    %488 = math.exp %487 : vector<5x5xf32>
    %cst_173 = arith.constant dense<0.000000e+00> : vector<5xf32>
    %489 = vector.multi_reduction <add>, %488, %cst_173 [1] : vector<5x5xf32> to vector<5xf32>
    %490 = vector.shape_cast %489 : vector<5xf32> to vector<5x1xf32>
    %491 = tpu.reciprocal %490 {approx = true} : vector<5x1xf32> -> vector<5x1xf32>
    %492 = vector.broadcast %491 : vector<5x1xf32> to vector<5x5xf32>
    %493 = arith.mulf %488, %492 : vector<5x5xf32>
    %494 = arith.truncf %493 : vector<5x5xf32> to vector<5x5xbf16>
    %cst_174 = arith.constant dense<0.000000e+00> : vector<5x32xf32>
    %495 = tpu.matmul %494, %480, %cst_174 {dimension_numbers = #tpu.dot_dimension_numbers<[1], [0], [0], [1], [0, 0, 1, 1], [], []>} : vector<5x5xbf16>, vector<5x32xbf16>, vector<5x32xf32> -> vector<5x32xf32>
    %496 = vector.extract_strided_slice %343 {offsets = [64, 0], sizes = [32, 128], strides = [1, 1]} : vector<128x128xbf16> to vector<32x128xbf16>
    %497 = arith.truncf %495 : vector<5x32xf32> to vector<5x32xbf16>
    %cst_175 = arith.constant dense<0.000000e+00> : vector<5x128xf32>
    %498 = tpu.matmul %497, %496, %cst_175 {dimension_numbers = #tpu.dot_dimension_numbers<[1], [0], [0], [1], [0, 0, 1, 1], [], []>} : vector<5x32xbf16>, vector<32x128xbf16>, vector<5x128xf32> -> vector<5x128xf32>
    %499 = arith.addf %477, %498 : vector<5x128xf32>
    %500 = vector.extract_strided_slice %337 {offsets = [5, 96], sizes = [5, 32], strides = [1, 1]} : vector<10x128xbf16> to vector<5x32xbf16>
    %501 = vector.extract_strided_slice %339 {offsets = [5, 96], sizes = [5, 32], strides = [1, 1]} : vector<10x128xbf16> to vector<5x32xbf16>
    %502 = vector.extract_strided_slice %341 {offsets = [5, 96], sizes = [5, 32], strides = [1, 1]} : vector<10x128xbf16> to vector<5x32xbf16>
    %cst_176 = arith.constant dense<0.000000e+00> : vector<5x5xf32>
    %503 = tpu.matmul %500, %501, %cst_176 {dimension_numbers = #tpu.dot_dimension_numbers<[1], [1], [0], [0], [0, 0, 1, 0], [], []>} : vector<5x32xbf16>, vector<5x32xbf16>, vector<5x5xf32> -> vector<5x5xf32>
    %cst_177 = arith.constant 0.176776692 : f32
    %504 = vector.broadcast %cst_177 : f32 to vector<5x5xf32>
    %505 = arith.mulf %503, %504 : vector<5x5xf32>
    %cst_178 = arith.constant dense<0xFF800000> : vector<5xf32>
    %506 = vector.multi_reduction <maximumf>, %505, %cst_178 [1] : vector<5x5xf32> to vector<5xf32>
    %507 = vector.shape_cast %506 : vector<5xf32> to vector<5x1xf32>
    %508 = vector.broadcast %507 : vector<5x1xf32> to vector<5x5xf32>
    %509 = arith.subf %505, %508 : vector<5x5xf32>
    %510 = math.exp %509 : vector<5x5xf32>
    %cst_179 = arith.constant dense<0.000000e+00> : vector<5xf32>
    %511 = vector.multi_reduction <add>, %510, %cst_179 [1] : vector<5x5xf32> to vector<5xf32>
    %512 = vector.shape_cast %511 : vector<5xf32> to vector<5x1xf32>
    %513 = tpu.reciprocal %512 {approx = true} : vector<5x1xf32> -> vector<5x1xf32>
    %514 = vector.broadcast %513 : vector<5x1xf32> to vector<5x5xf32>
    %515 = arith.mulf %510, %514 : vector<5x5xf32>
    %516 = arith.truncf %515 : vector<5x5xf32> to vector<5x5xbf16>
    %cst_180 = arith.constant dense<0.000000e+00> : vector<5x32xf32>
    %517 = tpu.matmul %516, %502, %cst_180 {dimension_numbers = #tpu.dot_dimension_numbers<[1], [0], [0], [1], [0, 0, 1, 1], [], []>} : vector<5x5xbf16>, vector<5x32xbf16>, vector<5x32xf32> -> vector<5x32xf32>
    %518 = vector.extract_strided_slice %343 {offsets = [96, 0], sizes = [32, 128], strides = [1, 1]} : vector<128x128xbf16> to vector<32x128xbf16>
    %519 = arith.truncf %517 : vector<5x32xf32> to vector<5x32xbf16>
    %cst_181 = arith.constant dense<0.000000e+00> : vector<5x128xf32>
    %520 = tpu.matmul %519, %518, %cst_181 {dimension_numbers = #tpu.dot_dimension_numbers<[1], [0], [0], [1], [0, 0, 1, 1], [], []>} : vector<5x32xbf16>, vector<32x128xbf16>, vector<5x128xf32> -> vector<5x128xf32>
    %521 = arith.addf %499, %520 : vector<5x128xf32>
    %522 = tpu.concatenate %432, %521 in 0 : vector<5x128xf32>, vector<5x128xf32> -> vector<10x128xf32>
    %523 = arith.addf %301, %522 : vector<10x128xf32>
    %c1_182 = arith.constant 1 : index
    %c0_183 = arith.constant 0 : index
    %c0_184 = arith.constant 0 : index
    %524 = vector.load %arg10[%c1_182, %c0_183, %c0_184] : memref<2x1x128xf32, #tpu.memory_space<vmem>>, vector<1x1x128xf32>
    %525 = vector.shape_cast %524 : vector<1x1x128xf32> to vector<1x128xf32>
    %526 = vector.broadcast %525 : vector<1x128xf32> to vector<10x128xf32>
    %527 = arith.addf %523, %526 : vector<10x128xf32>
    %c1_185 = arith.constant 1 : index
    %c0_186 = arith.constant 0 : index
    %c0_187 = arith.constant 0 : index
    %528 = vector.load %arg11[%c1_185, %c0_186, %c0_187] : memref<2x1x128xf32, #tpu.memory_space<vmem>>, vector<1x1x128xf32>
    %529 = vector.shape_cast %528 : vector<1x1x128xf32> to vector<1x128xf32>
    %c1_188 = arith.constant 1 : index
    %c0_189 = arith.constant 0 : index
    %c0_190 = arith.constant 0 : index
    %530 = vector.load %arg12[%c1_188, %c0_189, %c0_190] : memref<2x1x128xf32, #tpu.memory_space<vmem>>, vector<1x1x128xf32>
    %531 = vector.shape_cast %530 : vector<1x1x128xf32> to vector<1x128xf32>
    %cst_191 = arith.constant dense<0.000000e+00> : vector<10xf32>
    %532 = vector.multi_reduction <add>, %527, %cst_191 [1] : vector<10x128xf32> to vector<10xf32>
    %533 = vector.shape_cast %532 : vector<10xf32> to vector<10x1xf32>
    %cst_192 = arith.constant 1.280000e+02 : f32
    %534 = vector.broadcast %cst_192 : f32 to vector<10x1xf32>
    %535 = arith.divf %533, %534 : vector<10x1xf32>
    %536 = vector.broadcast %535 : vector<10x1xf32> to vector<10x128xf32>
    %537 = arith.subf %527, %536 : vector<10x128xf32>
    %538 = arith.mulf %537, %537 : vector<10x128xf32>
    %cst_193 = arith.constant dense<0.000000e+00> : vector<10xf32>
    %539 = vector.multi_reduction <add>, %538, %cst_193 [1] : vector<10x128xf32> to vector<10xf32>
    %540 = vector.shape_cast %539 : vector<10xf32> to vector<10x1xf32>
    %cst_194 = arith.constant 1.280000e+02 : f32
    %541 = vector.broadcast %cst_194 : f32 to vector<10x1xf32>
    %542 = arith.divf %540, %541 : vector<10x1xf32>
    %543 = vector.broadcast %535 : vector<10x1xf32> to vector<10x128xf32>
    %544 = arith.subf %527, %543 : vector<10x128xf32>
    %cst_195 = arith.constant 9.99999996E-13 : f32
    %545 = vector.broadcast %cst_195 : f32 to vector<10x1xf32>
    %546 = arith.addf %542, %545 : vector<10x1xf32>
    %547 = math.rsqrt %546 : vector<10x1xf32>
    %548 = vector.broadcast %547 : vector<10x1xf32> to vector<10x128xf32>
    %549 = arith.mulf %544, %548 : vector<10x128xf32>
    %550 = vector.broadcast %529 : vector<1x128xf32> to vector<10x128xf32>
    %551 = arith.mulf %549, %550 : vector<10x128xf32>
    %552 = vector.broadcast %531 : vector<1x128xf32> to vector<10x128xf32>
    %553 = arith.addf %551, %552 : vector<10x128xf32>
    %c1_196 = arith.constant 1 : index
    %c0_197 = arith.constant 0 : index
    %c0_198 = arith.constant 0 : index
    %554 = vector.load %arg13[%c1_196, %c0_197, %c0_198] : memref<2x128x256xbf16, #tpu.memory_space<vmem>>, vector<1x128x256xbf16>
    %555 = vector.shape_cast %554 : vector<1x128x256xbf16> to vector<128x256xbf16>
    %556 = arith.truncf %553 : vector<10x128xf32> to vector<10x128xbf16>
    %cst_199 = arith.constant dense<0.000000e+00> : vector<10x256xf32>
    %557 = tpu.matmul %556, %555, %cst_199 {dimension_numbers = #tpu.dot_dimension_numbers<[1], [0], [0], [1], [0, 0, 1, 1], [], []>} : vector<10x128xbf16>, vector<128x256xbf16>, vector<10x256xf32> -> vector<10x256xf32>
    %c1_200 = arith.constant 1 : index
    %c0_201 = arith.constant 0 : index
    %c0_202 = arith.constant 0 : index
    %558 = vector.load %arg14[%c1_200, %c0_201, %c0_202] : memref<2x1x256xf32, #tpu.memory_space<vmem>>, vector<1x1x256xf32>
    %559 = vector.shape_cast %558 : vector<1x1x256xf32> to vector<1x256xf32>
    %560 = vector.broadcast %559 : vector<1x256xf32> to vector<10x256xf32>
    %561 = arith.addf %557, %560 : vector<10x256xf32>
    %cst_203 = arith.constant 5.000000e-01 : f32
    %562 = vector.broadcast %cst_203 : f32 to vector<10x256xf32>
    %563 = arith.mulf %562, %561 : vector<10x256xf32>
    %cst_204 = arith.constant 4.471500e-02 : f32
    %564 = vector.broadcast %cst_204 : f32 to vector<10x256xf32>
    %565 = arith.mulf %564, %561 : vector<10x256xf32>
    %566 = arith.mulf %565, %561 : vector<10x256xf32>
    %567 = arith.mulf %566, %561 : vector<10x256xf32>
    %568 = arith.addf %561, %567 : vector<10x256xf32>
    %cst_205 = arith.constant 0.797884583 : f32
    %569 = vector.broadcast %cst_205 : f32 to vector<10x256xf32>
    %570 = arith.mulf %569, %568 : vector<10x256xf32>
    %571 = math.tanh %570 : vector<10x256xf32>
    %cst_206 = arith.constant 1.000000e+00 : f32
    %572 = vector.broadcast %cst_206 : f32 to vector<10x256xf32>
    %573 = arith.addf %572, %571 : vector<10x256xf32>
    %574 = arith.mulf %563, %573 : vector<10x256xf32>
    %c1_207 = arith.constant 1 : index
    %c0_208 = arith.constant 0 : index
    %c0_209 = arith.constant 0 : index
    %575 = vector.load %arg15[%c1_207, %c0_208, %c0_209] : memref<2x256x128xbf16, #tpu.memory_space<vmem>>, vector<1x256x128xbf16>
    %576 = vector.shape_cast %575 : vector<1x256x128xbf16> to vector<256x128xbf16>
    %577 = arith.truncf %574 : vector<10x256xf32> to vector<10x256xbf16>
    %cst_210 = arith.constant dense<0.000000e+00> : vector<10x128xf32>
    %578 = tpu.matmul %577, %576, %cst_210 {dimension_numbers = #tpu.dot_dimension_numbers<[1], [0], [0], [1], [0, 0, 1, 1], [], []>} : vector<10x256xbf16>, vector<256x128xbf16>, vector<10x128xf32> -> vector<10x128xf32>
    %c1_211 = arith.constant 1 : index
    %c0_212 = arith.constant 0 : index
    %c0_213 = arith.constant 0 : index
    %579 = vector.load %arg16[%c1_211, %c0_212, %c0_213] : memref<2x1x128xf32, #tpu.memory_space<vmem>>, vector<1x1x128xf32>
    %580 = vector.shape_cast %579 : vector<1x1x128xf32> to vector<1x128xf32>
    %581 = vector.broadcast %580 : vector<1x128xf32> to vector<10x128xf32>
    %582 = arith.addf %578, %581 : vector<10x128xf32>
    %583 = arith.addf %527, %582 : vector<10x128xf32>
    %584 = vector.extract_strided_slice %583 {offsets = [0, 0], sizes = [1, 128], strides = [1, 1]} : vector<10x128xf32> to vector<1x128xf32>
    %585 = vector.extract_strided_slice %583 {offsets = [5, 0], sizes = [1, 128], strides = [1, 1]} : vector<10x128xf32> to vector<1x128xf32>
    %586 = tpu.concatenate %584, %585 in 0 : vector<1x128xf32>, vector<1x128xf32> -> vector<2x128xf32>
    %c0_214 = arith.constant 0 : index
    %c0_215 = arith.constant 0 : index
    %587 = vector.load %arg17[%c0_214, %c0_215] : memref<1x128xf32, #tpu.memory_space<vmem>>, vector<1x128xf32>
    %c0_216 = arith.constant 0 : index
    %c0_217 = arith.constant 0 : index
    %588 = vector.load %arg18[%c0_216, %c0_217] : memref<1x128xf32, #tpu.memory_space<vmem>>, vector<1x128xf32>
    %cst_218 = arith.constant dense<0.000000e+00> : vector<2xf32>
    %589 = vector.multi_reduction <add>, %586, %cst_218 [1] : vector<2x128xf32> to vector<2xf32>
    %590 = vector.shape_cast %589 : vector<2xf32> to vector<2x1xf32>
    %cst_219 = arith.constant 1.280000e+02 : f32
    %591 = vector.broadcast %cst_219 : f32 to vector<2x1xf32>
    %592 = arith.divf %590, %591 : vector<2x1xf32>
    %593 = vector.broadcast %592 : vector<2x1xf32> to vector<2x128xf32>
    %594 = arith.subf %586, %593 : vector<2x128xf32>
    %595 = arith.mulf %594, %594 : vector<2x128xf32>
    %cst_220 = arith.constant dense<0.000000e+00> : vector<2xf32>
    %596 = vector.multi_reduction <add>, %595, %cst_220 [1] : vector<2x128xf32> to vector<2xf32>
    %597 = vector.shape_cast %596 : vector<2xf32> to vector<2x1xf32>
    %cst_221 = arith.constant 1.280000e+02 : f32
    %598 = vector.broadcast %cst_221 : f32 to vector<2x1xf32>
    %599 = arith.divf %597, %598 : vector<2x1xf32>
    %600 = vector.broadcast %592 : vector<2x1xf32> to vector<2x128xf32>
    %601 = arith.subf %586, %600 : vector<2x128xf32>
    %cst_222 = arith.constant 9.99999996E-13 : f32
    %602 = vector.broadcast %cst_222 : f32 to vector<2x1xf32>
    %603 = arith.addf %599, %602 : vector<2x1xf32>
    %604 = math.rsqrt %603 : vector<2x1xf32>
    %605 = vector.broadcast %604 : vector<2x1xf32> to vector<2x128xf32>
    %606 = arith.mulf %601, %605 : vector<2x128xf32>
    %607 = vector.broadcast %587 : vector<1x128xf32> to vector<2x128xf32>
    %608 = arith.mulf %606, %607 : vector<2x128xf32>
    %609 = vector.broadcast %588 : vector<1x128xf32> to vector<2x128xf32>
    %610 = arith.addf %608, %609 : vector<2x128xf32>
    %c0_223 = arith.constant 0 : index
    %c0_224 = arith.constant 0 : index
    %611 = vector.load %arg19[%c0_223, %c0_224] : memref<128x128xbf16, #tpu.memory_space<vmem>>, vector<128x128xbf16>
    %612 = arith.truncf %610 : vector<2x128xf32> to vector<2x128xbf16>
    %cst_225 = arith.constant dense<0.000000e+00> : vector<2x128xf32>
    %613 = tpu.matmul %612, %611, %cst_225 {dimension_numbers = #tpu.dot_dimension_numbers<[1], [0], [0], [1], [0, 0, 1, 1], [], []>} : vector<2x128xbf16>, vector<128x128xbf16>, vector<2x128xf32> -> vector<2x128xf32>
    %c0_226 = arith.constant 0 : index
    %c0_227 = arith.constant 0 : index
    %614 = vector.load %arg20[%c0_226, %c0_227] : memref<1x128xf32, #tpu.memory_space<vmem>>, vector<1x128xf32>
    %615 = vector.broadcast %614 : vector<1x128xf32> to vector<2x128xf32>
    %616 = arith.addf %613, %615 : vector<2x128xf32>
    %c0_228 = arith.constant 0 : index
    %c0_229 = arith.constant 0 : index
    %617 = vector.load %arg21[%c0_228, %c0_229] : memref<2x128xf32, #tpu.memory_space<vmem>>, vector<2x128xf32>
    tpu.vector_store %arg21[%c0_228, %c0_229], %616 {strides = array<i32>} : memref<2x128xf32, #tpu.memory_space<vmem>>, vector<2x128xf32>,
    return
  }
}

</mosaic_0001>

<bundles_post_ra>
// kernel: vit_forward.1
= control target key start
LH: loop header
LB: loop body
LE: loop exit
PB: predicated region body
PF: predicated region fallthrough
CT: control target
= control target key end

     0   :  { %s5685_s0 = inlined_call_operand.vmem [shape: f32[8,192], index: 0, kind: input, shape index: {}]   ;;  %s5686_s1 = inlined_call_operand.vmem [shape: bf16[192,128], index: 1, kind: input, shape index: {}]   ;;  %s5687_s2 = inlined_call_operand.hbm [shape: f32[1,128], index: 2, kind: input, shape index: {}]   ;;  %s5688_s3 = inlined_call_operand.hbm [shape: f32[1,128], index: 3, kind: input, shape index: {}]   ;;  %s5689_s4 = inlined_call_operand.vmem [shape: f32[5,128], index: 4, kind: input, shape index: {}]   ;;  %s5690_s5 = inlined_call_operand.vmem [shape: f32[2,1,128], index: 5, kind: input, shape index: {}]   ;;  %s5691_s6 = inlined_call_operand.hbm [shape: f32[2,1,128], index: 6, kind: input, shape index: {}]   ;;  %s5692_s7 = inlined_call_operand.vmem [shape: bf16[2,128,384], index: 7, kind: input, shape index: {}]   ;;  %s5693_s8 = inlined_call_operand.vmem [shape: f32[2,1,384], index: 8, kind: input, shape index: {}]   ;;  %s5694_s9 = inlined_call_operand.vmem [shape: bf16[2,128,128], index: 9, kind: input, shape index: {}]   ;;  %s5695_s10 = inlined_call_operand.hbm [shape: f32[2,1,128], index: 10, kind: input, shape index: {}]   ;;  %s5696_s11 = inlined_call_operand.vmem [shape: f32[2,1,128], index: 11, kind: input, shape index: {}]   ;;  %s5697_s12 = inlined_call_operand.hbm [shape: f32[2,1,128], index: 12, kind: input, shape index: {}]   ;;  %s5698_s13 = inlined_call_operand.vmem [shape: bf16[2,128,256], index: 13, kind: input, shape index: {}]   ;;  %s5699_s14 = inlined_call_operand.hbm [shape: f32[2,1,256], index: 14, kind: input, shape index: {}]   ;;  %s5700_s15 = inlined_call_operand.hbm [shape: bf16[2,256,128], index: 15, kind: input, shape index: {}]   ;;  %s5701_s16 = inlined_call_operand.hbm [shape: f32[2,1,128], index: 16, kind: input, shape index: {}]   ;;  %s5702_s17 = inlined_call_operand.vmem [shape: f32[1,128], index: 17, kind: input, shape index: {}]   ;;  %s5703_s18 = inlined_call_operand.vmem [shape: f32[1,128], index: 18, kind: input, shape index: {}]   ;;  %s5704_s19 = inlined_call_operand.hbm [shape: bf16[128,128], index: 19, kind: input, shape index: {}]   ;;  %s5705_s20 = inlined_call_operand.hbm [shape: f32[1,128], index: 20, kind: input, shape index: {}]   ;;  %s5706_s21 = inlined_call_operand.hbm [shape: f32[2,128], index: 21, kind: output, shape index: {}]  }
   0x1   :  { %5710 = sst [smem:[#allocation27_spill]] %s5685_s0 }
   0x2   :  { %5711 = sst [smem:[#allocation28_spill]] %s5686_s1 }
   0x3   :  { %5712 = sst [smem:[#allocation29_spill]] %s5687_s2 }
   0x4   :  { %5713 = sst [smem:[#allocation30_spill]] %s5688_s3 }
   0x5   :  { %5714 = sst [smem:[#allocation31_spill]] %s5689_s4 }
   0x6   :  { %5715 = sst [smem:[#allocation32_spill]] %s5690_s5 }
   0x7   :  { %5716 = sst [smem:[#allocation33_spill]] %s5706_s21 }
   0x8   :  { %26 = vsyncpa [#allocation3], 0 }
   0x9   :  { %27 = vsyncpa [#allocation6], 0 }
   0xa   :  { %28 = vsyncpa [#allocation9], 0 }
   0xb   :  { %29 = vsyncpa [#allocation12], 0 }
   0xc   :  { %30 = vsyncpa [#allocation15], 0 }
   0xd   :  { %31 = vsyncpa [#allocation18], 0  ;;  %s5717_s26 = sld [smem:[#allocation30_spill]] }
  0x13   :  { %s53_s27 = sshll.u32 %s5717_s26, 4  ;;  %s54_s27 = int_to_ptr.hbm [resolvable:$true] %s53_s27 }
  0x14   :  { %32 = vsyncpa [#allocation4], 0  ;;  %s4529_s3 = smov [#allocation5]   ;;  %s86_s4 = sshll.u32 %s5695_s10, 4  ;;  %s87_s4 = int_to_ptr.hbm [resolvable:$true] %s86_s4 }
  0x15   :  { %s55_s28 = sshll.u32 %s4529_s3, 4  ;;  %s4530_s30 = smov [#allocation8]   ;;  %s56_s28 = int_to_ptr.vmem [resolvable:$true] %s55_s28 }
  0x16   :  { %58 = dma.hbm_to_vmem [thread:$0]  %s54_s27, 16, %s56_s28, [#allocation6]  }
  0x17   :  { %s88_s5 = sshll.u32 %s4530_s30, 4  ;;  %s116_s1 = sshll.u32 %s5699_s14, 4  ;;  %s89_s5 = int_to_ptr.vmem [resolvable:$true] %s88_s5  ;;  %s117_s1 = int_to_ptr.hbm [resolvable:$true] %s116_s1 }
  0x18   :  { %s4531_s24 = smov 16   ;;  %s4532_s2 = smov 1  }
  0x19   :  { %94 = dma.hbm_to_vmem [thread:$0]  %s87_s4, 32, %s89_s5, [#allocation9], %s4531_s24, %s4531_s24, %s4532_s2  }
  0x1a   :  { %s4533_s25 = smov [#allocation11]   ;;  %s142_s3 = sshll.u32 %s5701_s16, 4  ;;  %s143_s3 = int_to_ptr.hbm [resolvable:$true] %s142_s3 }
  0x1b   :  { %s118_s26 = sshll.u32 %s4533_s25, 4  ;;  %s4534_s28 = smov 32   ;;  %s119_s26 = int_to_ptr.vmem [resolvable:$true] %s118_s26 }
  0x1c   :  { %s4535_s29 = smov 2   ;;  %s4536_s14 = smov [#allocation14]  }
  0x1d   :  { %124 = dma.hbm_to_vmem [thread:$0]  %s117_s1, 64, %s119_s26, [#allocation12], %s4534_s28, %s4534_s28, %s4535_s29  }
  0x1e   :  { %s144_s0 = sshll.u32 %s4536_s14, 4  ;;  %s5718_s23 = sld [smem:[#allocation29_spill]]  ;;  %s145_s0 = int_to_ptr.vmem [resolvable:$true] %s144_s0 }
  0x1f   :  { %150 = dma.hbm_to_vmem [thread:$0]  %s143_s3, 32, %s145_s0, [#allocation15], %s4531_s24, %s4531_s24, %s4532_s2  }
  0x20   :  { %s67_s5 = sshll.u32 %s5691_s6, 4  ;;  %s4537_s25 = smov [#allocation2]   ;;  %s68_s5 = int_to_ptr.hbm [resolvable:$true] %s67_s5 }
  0x21   :  { %s44_s27 = sshll.u32 %s4537_s25, 4  ;;  %s4538_s1 = smov [#allocation7]   ;;  %s45_s27 = int_to_ptr.vmem [resolvable:$true] %s44_s27 }
  0x22   :  { %s69_s26 = sshll.u32 %s4538_s1, 4  ;;  %s101_s14 = sshll.u32 %s5697_s12, 4  ;;  %s70_s26 = int_to_ptr.vmem [resolvable:$true] %s69_s26  ;;  %s102_s14 = int_to_ptr.hbm [resolvable:$true] %s101_s14 }
  0x23   :  { %75 = dma.hbm_to_vmem [thread:$0]  %s68_s5, 32, %s70_s26, [#allocation6], %s4531_s24, %s4531_s24, %s4532_s2  }
  0x24   :  { %s42_s21 = sshll.u32 %s5718_s23, 4  ;;  %s129_s6 = sshll.u32 %s5700_s15, 4  ;;  %s43_s21 = int_to_ptr.hbm [resolvable:$true] %s42_s21  ;;  %s130_s6 = int_to_ptr.hbm [resolvable:$true] %s129_s6 }
  0x25   :  { %47 = dma.hbm_to_vmem [thread:$0]  %s43_s21, 16, %s45_s27, [#allocation3]  }
  0x26   :  { %s4539_s30 = smov [#allocation10]   ;;  %s4540_s21 = smov [#allocation13]  }
  0x27   :  { %s103_s22 = sshll.u32 %s4539_s30, 4  ;;  %s131_s12 = sshll.u32 %s4540_s21, 4  ;;  %s104_s22 = int_to_ptr.vmem [resolvable:$true] %s103_s22  ;;  %s132_s12 = int_to_ptr.vmem [resolvable:$true] %s131_s12 }
  0x28   :  { %109 = dma.hbm_to_vmem [thread:$0]  %s102_s14, 32, %s104_s22, [#allocation9], %s4531_s24, %s4531_s24, %s4532_s2  }
  0x29   :  { %s4541_s23 = smov 64   ;;  %s4542_s4 = smov 4  }
  0x2a   :  { %137 = dma.hbm_to_vmem [thread:$0]  %s130_s6, 4096, %s132_s12, [#allocation12], %s4541_s23, %s4541_s23, %s4542_s4  }
  0x2b   :  { %s159_s15 = sshll.u32 %s5704_s19, 4  ;;  %s4543_s25 = smov [#allocation16]   ;;  %s160_s15 = int_to_ptr.hbm [resolvable:$true] %s159_s15 }
  0x2c   :  { %s161_s27 = sshll.u32 %s4543_s25, 4  ;;  %s173_s24 = sshll.u32 %s5705_s20, 4  ;;  %s162_s27 = int_to_ptr.vmem [resolvable:$true] %s161_s27  ;;  %s174_s24 = int_to_ptr.hbm [resolvable:$true] %s173_s24 }
  0x2d   :  { %167 = dma.hbm_to_vmem [thread:$0]  %s160_s15, 1024, %s162_s27, [#allocation15], %s4541_s23, %s4541_s23, %s4542_s4  }
  0x2e   :  { %s4544_s2 = smov [#allocation17]  }
  0x2f   :  { %s175_s10 = sshll.u32 %s4544_s2, 4  ;;  %s176_s10 = int_to_ptr.vmem [resolvable:$true] %s175_s10 }
  0x30   :  { %178 = dma.hbm_to_vmem [thread:$0]  %s174_s24, 16, %s176_s10, [#allocation18]  }
  0x31   :  { %4515 = dma.done.wait [#allocation3], 16  }
  0x32   :  { %4516 = vsyncadd [#allocation3], 4294967280 }
  0x33   :  { %4517 = dma.done.wait [#allocation6], 48  }
  0x34   :  { %4518 = vsyncadd [#allocation6], 4294967248 }
  0x35   :  { %4519 = dma.done.wait [#allocation9], 64  }
  0x36   :  { %4520 = vsyncadd [#allocation9], 4294967232 }
  0x37   :  { %4521 = dma.done.wait [#allocation12], 4160  }
  0x38   :  { %4522 = vsyncadd [#allocation12], 4294963136 }
  0x39   :  { %4523 = dma.done.wait [#allocation15], 1056  }
  0x3a   :  { %4524 = vsyncadd [#allocation15], 4294966240 }
  0x3b   :  { %4525 = dma.done.wait [#allocation18], 16  }
  0x3c   :  { %4526 = vsyncadd [#allocation18], 4294967280  ;;  %s5719_s29 = sld [smem:[#allocation28_spill]]  ;;  %vm324_vm0 = vcmask 523264   ;;  %v4135_v18 = vld [vmem:[#allocation2] ss:$0 sm:$0xff] }
  0x3d   :  { %s5720_s24 = sld [smem:[#allocation27_spill]]  ;;  %v355_v25 = vld [vmem:[#allocation5] sm:$0x1]  ;;  %vm383_vm1 = vcmask 1041408   ;;  %vm373_vm2 = vcmask 1040384   ;;  %vm375_vm3 = vcmask 1044480  }
  0x3e   :  { %s5721_s4 = sld [smem:[#allocation31_spill]]  ;;  %vm377_vm4 = vcmask 1045504   ;;  %v4545_v37 = vmov 128.0   ;;  %v3394_v53 = vld [vmem:[%s5692_s7 + $0xa8] sm:$0xf]  ;;  %vm712_vm12 = vcmask 1042432  }
  0x3f   :  { %4151 = vrcp.f32 %v4545_v37  ;;  %v4001_v54 = vld [vmem:[%s5692_s7 + $0xb0] sm:$0xf0]  ;;  %v4000_v55 = vld [vmem:[%s5692_s7 + $0xac] sm:$0xf]  ;;  %v3396_v57 = vld [vmem:[%s5692_s7 + $0xb4] sm:$0xf0] }
  0x40   :  { %v3395_v56 = vor.u32 %v4001_v54, %v3394_v53  ;;  %v3402_v58 = vld [vmem:[%s5692_s7 + $0xb0] sm:$0xf]  ;;  %v4002_v59 = vld [vmem:[%s5692_s7 + $0xb8] sm:$0xf0]  ;;  %v3399_v60 = vor.u32 %v4000_v55, %v3396_v57  ;;  %v3330_v53 = vld [vmem:[%s5692_s7 + $0x20] sm:$0xf] }
  0x41   :  { %v3403_v61 = vor.u32 %v4002_v59, %v3402_v58  ;;  %v3382_v62 = vld [vmem:[%s5692_s7 + $0x90] sm:$0xf]  ;;  %v3998_v63 = vld [vmem:[%s5692_s7 + $0x98] sm:$0xf0]  ;;  %v3984_v54 = vld [vmem:[%s5692_s7 + $0x28] sm:$0xf0] }
  0x42   :  { %v3974_v0 = vld [vmem:[%s5719_s29 + $0x38] sm:$0xff]  ;;  %v3973_v2 = vld [vmem:[%s5719_s29 + $0x30] sm:$0xff]  ;;  %v3972_v4 = vld [vmem:[%s5719_s29 + $0x28] sm:$0xff]  ;;  %610 = vmatpush.bf16.msra.mxu2 %v3395_v56  ;;  %624 = vmatpush.bf16.msra.mxu3 %v3399_v60  ;;  %v3331_v56 = vor.u32 %v3984_v54, %v3330_v53  ;;  %s5722_s10 = sld [smem:[#allocation32_spill]]  ;;  %vm674_vm13 = vcmask 261120   ;;  %s4547_s14 = smov 96  }
  0x43   :  { %v3978_v1 = vld [vmem:[%s5719_s29 + $0x58] sm:$0xff]  ;;  %328 = vmatpush.bf16.msra.mxu0 %v3974_v0  ;;  %v3977_v3 = vld [vmem:[%s5719_s29 + $0x50] sm:$0xff]  ;;  %v3976_v5 = vld [vmem:[%s5719_s29 + $0x48] sm:$0xff]  ;;  %vm695_vm14 = vcmask 36864   ;;  %vm708_vm15 = vcmask 39936   ;;  %s4548_s6 = smov [#allocation19]  }
  0x44   :  { %345 = vmatpush.bf16.msra.mxu1 %v3978_v1  ;;  %v3971_v6 = vld [vmem:[%s5719_s29 + $0x20] sm:$0xff]  ;;  %v221_v8 = vld [vmem:[%s5720_s24 + $0x8] sm:$0xff]  ;;  %v3970_v9 = vld [vmem:[%s5719_s29 + $0x18] sm:$0xff]  ;;  %v3383_v1 = vor.u32 %v3998_v63, %v3382_v62  ;;  %s3242_s30 = sshll.u32 %s4548_s6, 4  ;;  %s5723_s12 = sld [smem:[#allocation33_spill]]  ;;  %s3243_s30 = int_to_ptr.vmem [resolvable:$true] %s3242_s30 }
  0x45   :  { %v3975_v7 = vld [vmem:[%s5719_s29 + $0x40] sm:$0xff]  ;;  %v247_v10 = vpack.c.bf16 %v221_v8, %v221_v8  ;;  %v3969_v11 = vld [vmem:[%s5719_s29 + $0x10] sm:$0xff]  ;;  %v3968_v12 = vld [vmem:[%s5719_s29 + $0x8] sm:$0xff]  ;;  %v4152_v38 = vpop.eup %4151 }
  0x46   :  { %v3967_v13 = vld [vmem:[%s5719_s29] sm:$0xff]  ;;  %v388_v39 = vmul.f32 128.0, %v4152_v38  ;;  %vm392_vm5 = vweird.f32 %v4152_v38  ;;  %v3997_v0 = vld [vmem:[%s5692_s7 + $0x94] sm:$0xf]  ;;  %611 = vmatpush.bf16.msra.mxu2 %v3383_v1  ;;  %v3986_v37 = vld [vmem:[%s5692_s7 + $0x38] sm:$0xf0] }
  0x47   :  { %329 = vmatpush.bf16.msra.mxu0 %v3973_v2  ;;  %v220_v14 = vld [vmem:[%s5720_s24] sm:$0xff]  ;;  %v3980_v58 = vld [vmem:[%s5692_s7 + $0x8] sm:$0xf0]  ;;  %v3312_v62 = vld [vmem:[%s5692_s7 + $0xc] sm:$0xf0] }
  0x48   :  { %346 = vmatpush.bf16.msra.mxu1 %v3977_v3  ;;  %v246_v15 = vpack.c.bf16 %v220_v14, %v220_v14  ;;  %v354_v19 = vld [vmem:[%s5721_s4] sm:$0x1f]  ;;  %v389_v40 = vsub.f32 1.0, %v388_v39  ;;  %v3390_v3 = vld [vmem:[%s5692_s7 + $0x98] sm:$0xf] }
  0x49   :  { %v358_v22 = vrot.slane %v354_v19, 1  ;;  %v361_v23 = vrot.slane %v354_v19, 5  ;;  %v356_v28 = vadd.f32 %v355_v25, %v354_v19  ;;  %v3384_v2 = vld [vmem:[%s5692_s7 + $0x9c] sm:$0xf0]  ;;  %v3995_v8 = vld [vmem:[%s5692_s7 + $0x80] sm:$0xf0] }
  0x4a   :  { %v390_v41 = vmul.f32 %v4152_v38, %v389_v40  ;;  %v3346_v25 = vld [vmem:[%s5692_s7 + $0x48] sm:$0xf]  ;;  %v3336_v40 = vld [vmem:[%s5692_s7 + $0x3c] sm:$0xf0]  ;;  %v3979_v59 = vld [vmem:[%s5692_s7 + $0x4] sm:$0xf] }
  0x4b   :  { %330 = vmatpush.bf16.msra.mxu0 %v3972_v4  ;;  %v368_v33 = vperm.slane %v356_v28, 0  ;;  %v3999_v4 = vld [vmem:[%s5692_s7 + $0xa0] sm:$0xf0]  ;;  %v3310_v57 = vld [vmem:[%s5692_s7] sm:$0xf]  ;;  %s3244_s4 = sshll.u32 %s5723_s12, 4  ;;  %s3245_s4 = int_to_ptr.hbm [resolvable:$true] %s3244_s4 }
  0x4c   :  { %347 = vmatpush.bf16.msra.mxu1 %v3976_v5  ;;  %v391_v43 = vadd.f32 %v4152_v38, %v390_v41  ;;  %v3387_v5 = vor.u32 %v3997_v0, %v3384_v2  ;;  %v3342_v41 = vld [vmem:[%s5692_s7 + $0x38] sm:$0xf]  ;;  %v3318_v63 = vld [vmem:[%s5692_s7 + $0x8] sm:$0xf]  ;;  %v3981_v0 = vld [vmem:[%s5692_s7 + $0x10] sm:$0xf0]  ;;  %v3315_v2 = vor.u32 %v3979_v59, %v3312_v62 }
  0x4e   :  { %v4762_v44 = vsel %vm392_vm5, %v4152_v38, %v391_v43  ;;  %625 = vmatpush.bf16.msra.mxu3 %v3387_v5  ;;  %v3985_v38 = vld [vmem:[%s5692_s7 + $0x34] sm:$0xf] }
  0x4f   :  { %331 = vmatpush.bf16.msra.mxu0 %v3971_v6  ;;  %v3391_v6 = vor.u32 %v3999_v4, %v3390_v3  ;;  %v3339_v43 = vor.u32 %v3985_v38, %v3336_v40  ;;  %v3319_v3 = vor.u32 %v3981_v0, %v3318_v63 }
  0x50   :  { %348 = vmatpush.bf16.msra.mxu1 %v3975_v7  ;;  %v3370_v7 = vld [vmem:[%s5692_s7 + $0x78] sm:$0xf] }
  0x53   :  { %332 = vmatpush.bf16.msra.mxu0 %v3970_v9  ;;  %3307 = vmatmul.msk.bf16.vlgmr.msra.gmra.mxu1 %vm324_vm0, %v247_v10  ;;  %v3994_v9 = vld [vmem:[%s5692_s7 + $0x7c] sm:$0xf]  ;;  %v3371_v10 = vor.u32 %v3995_v8, %v3370_v7 }
  0x54   :  { %638 = vmatpush.bf16.msrb.mxu1 %v3403_v61  ;;  %v3311_v61 = vor.u32 %v3980_v58, %v3310_v57 }
  0x55   :  { %612 = vmatpush.bf16.msra.mxu2 %v3371_v10 }
  0x57   :  { %333 = vmatpush.bf16.msra.mxu0 %v3969_v11  ;;  %v3372_v11 = vld [vmem:[%s5692_s7 + $0x84] sm:$0xf0] }
  0x58   :  { %639 = vmatpush.bf16.msrb.mxu1 %v3391_v6  ;;  %v3375_v14 = vor.u32 %v3994_v9, %v3372_v11 }
  0x5a   :  { %626 = vmatpush.bf16.msra.mxu3 %v3375_v14 }
  0x5b   :  { %334 = vmatpush.bf16.msra.mxu0 %v3968_v12  ;;  %v3378_v12 = vld [vmem:[%s5692_s7 + $0x80] sm:$0xf] }
  0x5f   :  { %335 = vmatpush.bf16.msra.mxu0 %v3967_v13  ;;  %v3996_v13 = vld [vmem:[%s5692_s7 + $0x88] sm:$0xf0] }
  0x62   :  { %336 = vmatmul.bf16.vlgmr.msra.gmra.mxu0 %v246_v15  ;;  %v3379_v15 = vor.u32 %v3996_v13, %v3378_v12 }
  0x64   :  { %640 = vmatpush.bf16.msrb.mxu1 %v3379_v15 }
  0xd0   :  { %v350_v16 = vpop.f32.mrf.mxu1 }
  0xd8   :  { %v352_v17 = vpop.f32.mrf.mxu1 }
  0xd9   :  { %v3992_v17 = vld [vmem:[%s5692_s7 + $0x68] sm:$0xf0] }
  0xdf   :  { %v337_v20 = vpop.f32.mrf.mxu0 }
  0xe0   :  { %v338_v21 = vadd.f32 %v4135_v18, %v337_v20  ;;  %v3991_v18 = vld [vmem:[%s5692_s7 + $0x64] sm:$0xf]  ;;  %v3360_v20 = vld [vmem:[%s5692_s7 + $0x6c] sm:$0xf0] }
  0xe2   :  { %v351_v24 = vadd.f32 %v350_v16, %v338_v21  ;;  %v3358_v16 = vld [vmem:[%s5692_s7 + $0x60] sm:$0xf]  ;;  %v3366_v21 = vld [vmem:[%s5692_s7 + $0x68] sm:$0xf] }
  0xe3   :  { %v3359_v19 = vor.u32 %v3992_v17, %v3358_v16 }
  0xe4   :  { %v360_v26 = vadd.f32 %v358_v22, %v351_v24  ;;  %v363_v27 = vadd.f32 %v361_v23, %v351_v24  ;;  %v3993_v22 = vld [vmem:[%s5692_s7 + $0x70] sm:$0xf0]  ;;  %v3363_v23 = vor.u32 %v3991_v18, %v3360_v20 }
  0xe5   :  { %v3367_v24 = vor.u32 %v3993_v22, %v3366_v21  ;;  %613 = vmatpush.bf16.msra.mxu2 %v3359_v19  ;;  %v4136_v21 = vld [vmem:[%s5722_s10] ss:$0 sm:$0xff] }
  0xe6   :  { %v365_v29 = vrot.slane %v360_v26, 7  ;;  %v4752_v30 = vrot.slane %v363_v27, 6  ;;  %627 = vmatpush.bf16.msra.mxu3 %v3363_v23  ;;  %v3989_v26 = vld [vmem:[%s5692_s7 + $0x50] sm:$0xf0]  ;;  %v3988_v27 = vld [vmem:[%s5692_s7 + $0x4c] sm:$0xf] }
  0xe7   :  { %v339_v31 = vpop.f32.mrf.mxu0  ;;  %641 = vmatpush.bf16.msrb.mxu1 %v3367_v24 }
  0xe8   :  { %v384_v32 = vsel %vm383_vm1, %v4752_v30, 0.0  ;;  %v374_v34 = vsel %vm373_vm2, %v356_v28, %v365_v29  ;;  %v3347_v28 = vor.u32 %v3989_v26, %v3346_v25  ;;  %v3348_v29 = vld [vmem:[%s5692_s7 + $0x54] sm:$0xf0]  ;;  %v3354_v31 = vld [vmem:[%s5692_s7 + $0x50] sm:$0xf] }
  0xe9   :  { %385 = vadd.xlane.f32.xlu0 %v384_v32  ;;  %v376_v35 = vsel %vm375_vm3, %v374_v34, %v368_v33  ;;  %v3990_v32 = vld [vmem:[%s5692_s7 + $0x58] sm:$0xf0]  ;;  %v3351_v33 = vor.u32 %v3988_v27, %v3348_v29  ;;  %v4137_v26 = vld [vmem:[#allocation7] ss:$0 sm:$0xff] }
  0xea   :  { %v4759_v36 = vsel %vm377_vm4, %v376_v35, %v4752_v30  ;;  %v3355_v34 = vor.u32 %v3990_v32, %v3354_v31  ;;  %614 = vmatpush.bf16.msra.mxu2 %v3347_v28  ;;  %v3334_v35 = vld [vmem:[%s5692_s7 + $0x30] sm:$0xf] }
  0xeb   :  { %628 = vmatpush.bf16.msra.mxu3 %v3351_v33  ;;  %v3335_v39 = vor.u32 %v3986_v37, %v3334_v35  ;;  %v4546_v33 = vmov 65535  }
  0xec   :  { %642 = vmatpush.bf16.msrb.mxu1 %v3355_v34  ;;  %v713_v34 = vsel %vm383_vm1, 4294967295, %v4546_v33 }
  0xed   :  { %v4932_v37 = vsel %vm712_vm12, %v713_v34, 0 }
  0xee   :  { %615 = vmatpush.bf16.msra.mxu2 %v3335_v39 }
  0xef   :  { %629 = vmatpush.bf16.msra.mxu3 %v3339_v43 }
  0xf1   :  { %381 = vadd.xlane.f32.xlu0 %v4759_v36 }
 0x15c   :  { %v386_v42 = vpop.xlane.xlu0 %385 }
 0x15d   :  { %v395_v47 = vmul.f32 %v4762_v44, %v386_v42  ;;  %v3987_v42 = vld [vmem:[%s5692_s7 + $0x40] sm:$0xf0] }
 0x15f   :  { %v4772_v50 = vsub.f32 %v4752_v30, %v395_v47  ;;  %v3983_v47 = vld [vmem:[%s5692_s7 + $0x20] sm:$0xf0] }
 0x161   :  { %v399_v51 = vmul.f32 %v4772_v50, %v4772_v50 }
 0x163   :  { %v402_v52 = vsel %vm383_vm1, %v399_v51, 0.0 }
 0x164   :  { %v382_v45 = vpop.xlane.xlu0 %381 }
 0x165   :  { %v394_v46 = vmul.f32 %v4762_v44, %v382_v45  ;;  %v3343_v45 = vor.u32 %v3987_v42, %v3342_v41 }
 0x167   :  { %v4767_v48 = vsub.f32 %v4759_v36, %v394_v46  ;;  %643 = vmatpush.bf16.msrb.mxu1 %v3343_v45  ;;  %v3322_v46 = vld [vmem:[%s5692_s7 + $0x18] sm:$0xf] }
 0x168   :  { %v3323_v51 = vor.u32 %v3983_v47, %v3322_v46 }
 0x169   :  { %v398_v49 = vmul.f32 %v4767_v48, %v4767_v48 }
 0x16a   :  { %616 = vmatpush.bf16.msra.mxu2 %v3323_v51 }
 0x16b   :  { %400 = vadd.xlane.f32.xlu1 %v398_v49  ;;  %v3982_v49 = vld [vmem:[%s5692_s7 + $0x1c] sm:$0xf]  ;;  %644 = vmatpush.bf16.msrb.mxu1 %v3331_v56 }
 0x16e   :  { %617 = vmatpush.bf16.msra.mxu2 %v3311_v61 }
 0x16f   :  { %645 = vmatpush.bf16.msrb.mxu1 %v3319_v3 }
 0x173   :  { %403 = vadd.xlane.f32.xlu1 %v402_v52  ;;  %v3324_v52 = vld [vmem:[%s5692_s7 + $0x24] sm:$0xf0] }
 0x174   :  { %v3327_v55 = vor.u32 %v3982_v49, %v3324_v52 }
 0x176   :  { %630 = vmatpush.bf16.msra.mxu3 %v3327_v55 }
 0x17a   :  { %631 = vmatpush.bf16.msra.mxu3 %v3315_v2 }
 0x1de   :  { %v401_v60 = vpop.xlane.xlu1 %400 }
 0x1df   :  { %v405_v1 = vmul.f32 %v401_v60, %v4762_v44 }
 0x1e1   :  { %v407_v4 = vadd.f32 1e-12, %v405_v1 }
 0x1e3   :  { %4153 = vrsqrt.f32 %v407_v4  ;;  %vm415_vm7 = vweird.f32 %v407_v4 }
 0x1e6   :  { %v404_v5 = vpop.xlane.xlu1 %403 }
 0x1e7   :  { %v406_v6 = vmul.f32 %v404_v5, %v4762_v44 }
 0x1e9   :  { %v4154_v7 = vpop.eup %4153  ;;  %v408_v8 = vadd.f32 1e-12, %v406_v6 }
 0x1ea   :  { %v410_v9 = vmul.f32 %v4154_v7, %v407_v4  ;;  %vm416_vm6 = vweird.f32 %v4154_v7 }
 0x1eb   :  { %4155 = vrsqrt.f32 %v408_v8  ;;  %vm417_vm8 = vmor %vm415_vm7, %vm416_vm6  ;;  %vm425_vm10 = vweird.f32 %v408_v8 }
 0x1ec   :  { %v411_v10 = vmul.f32 %v4154_v7, %v410_v9 }
 0x1ee   :  { %v412_v11 = vmul.f32 0.5, %v411_v10 }
 0x1f0   :  { %v413_v12 = vsub.f32 1.5, %v412_v11 }
 0x1f1   :  { %v4156_v13 = vpop.eup %4155 }
 0x1f2   :  { %v414_v14 = vmul.f32 %v4154_v7, %v413_v12  ;;  %v420_v15 = vmul.f32 %v4156_v13, %v408_v8  ;;  %vm426_vm9 = vweird.f32 %v4156_v13 }
 0x1f3   :  { %vm427_vm11 = vmor %vm425_vm10, %vm426_vm9 }
 0x1f4   :  { %v421_v16 = vmul.f32 %v4156_v13, %v420_v15  ;;  %v418_v17 = vsel %vm417_vm8, %v4154_v7, %v414_v14 }
 0x1f5   :  { %v429_v20 = vmul.f32 %v418_v17, %v4767_v48  ;;  %v474_v48 = vld [vmem:[%s5693_s8] sm:$0x7] }
 0x1f6   :  { %v422_v18 = vmul.f32 0.5, %v421_v16  ;;  %v478_v32 = vperm.slane %v474_v48, 2  ;;  %v476_v38 = vperm.slane %v474_v48, 0  ;;  %v477_v39 = vperm.slane %v474_v48, 1 }
 0x1f7   :  { %v434_v25 = vmul.f32 %v4136_v21, %v429_v20 }
 0x1f8   :  { %v423_v19 = vsub.f32 1.5, %v422_v18 }
 0x1f9   :  { %v439_v28 = vadd.f32 %v4137_v26, %v434_v25 }
 0x1fa   :  { %v424_v22 = vmul.f32 %v4156_v13, %v423_v19 }
 0x1fc   :  { %v428_v23 = vsel %vm427_vm11, %v4156_v13, %v424_v22 }
 0x1fd   :  { %v430_v24 = vmul.f32 %v428_v23, %v4772_v50 }
 0x1ff   :  { %v435_v27 = vmul.f32 %v4136_v21, %v430_v24 }
 0x201   :  { %v440_v29 = vadd.f32 %v4137_v26, %v435_v27 }
 0x203   :  { %v473_v31 = vpack.c.bf16 %v440_v29, %v439_v28 }
 0x205   :  { %618 = vmatmul.bf16.vlgmr.msra.gmra.mxu2 %v473_v31  ;;  %632 = vmatmul.bf16.vlgmr.msra.gmra.mxu3 %v473_v31 }
 0x206   :  { %646 = vmatmul.bf16.vlgmr.msrb.gmra.mxu1 %v473_v31 }
 0x283   :  { %v647_v35 = vpop.f32.mrf.mxu1 }
 0x284   :  { %v648_v50 = vadd.f32 %v647_v35, %v478_v32 }
 0x286   :  { %v656_v40 = vpack.c.bf16 %v648_v50, %v648_v50 }
 0x288   :  { %v619_v41 = vpop.f32.mrf.mxu2  ;;  %v633_v42 = vpop.f32.mrf.mxu3  ;;  %v716_v43 = vand.u32 %v4932_v37, %v656_v40  ;;  %v775_v59 = vunpack.c.l.b16 %v656_v40 }
 0x289   :  { %v620_v45 = vadd.f32 %v619_v41, %v476_v38  ;;  %v634_v46 = vadd.f32 %v633_v42, %v477_v39 }
 0x28a   :  { %725 = vmatpush.bf16.msrb.mxu2 %v716_v43  ;;  %v776_v22 = vpack.c.b16 %v775_v59, %v775_v59 }
 0x28b   :  { %v652_v47 = vpack.c.bf16 %v620_v45, %v620_v45  ;;  %v654_v49 = vpack.c.bf16 %v634_v46, %v634_v46  ;;  %v649_v51 = vpop.f32.mrf.mxu1 }
 0x28c   :  { %v650_v52 = vadd.f32 %v649_v51, %v478_v32 }
 0x28d   :  { %v733_v53 = vunpack.c.l.b16 %v652_v47  ;;  %v738_v54 = vunpack.c.l.b16 %v654_v49  ;;  %v679_v55 = vsel %vm674_vm13, %v654_v49, 0 }
 0x28e   :  { %v657_v56 = vpack.c.bf16 %v650_v52, %v650_v52  ;;  %688 = vmatpush.bf16.xpose.msrb.mxu0 %v679_v55 }
 0x28f   :  { %v739_v57 = vpack.c.b16 %v738_v54, %v738_v54  ;;  %v4936_v58 = vpack.c.b16 %v733_v53, %v733_v53 }
 0x290   :  { %v1084_v60 = vunpack.c.l.b16 %v657_v56  ;;  %v621_v61 = vpop.f32.mrf.mxu2  ;;  %v635_v62 = vpop.f32.mrf.mxu3 }
 0x291   :  { %v622_v63 = vadd.f32 %v621_v61, %v476_v38  ;;  %v636_v0 = vadd.f32 %v635_v62, %v477_v39  ;;  %857 = vrot.lane.b32.xlu0 %v739_v57, %s4541_s23  ;;  %740 = vrot.lane.b32.xlu2 %v739_v57, %s4547_s14 }
 0x292   :  { %v4940_v1 = vpack.c.b16 %v1084_v60, %v775_v59  ;;  %855 = vrot.lane.b32.xlu1 %v4936_v58, %s4541_s23 }
 0x293   :  { %v653_v2 = vpack.c.bf16 %v622_v63, %v622_v63  ;;  %v655_v3 = vpack.c.bf16 %v636_v0, %v636_v0 }
 0x295   :  { %v1030_v4 = vunpack.c.l.b16 %v653_v2  ;;  %v1041_v5 = vunpack.c.l.b16 %v655_v3  ;;  %3404 = vmatmul.msk.bf16.vlgmr.msrb.gmra.mxu0 %vm674_vm13, %v652_v47 }
 0x297   :  { %v1031_v6 = vpack.c.b16 %v1030_v4, %v733_v53  ;;  %v4945_v7 = vpack.c.b16 %v1041_v5, %v738_v54  ;;  %v4006_v5 = vld [vmem:[%s5694_s9 + $0x18] sm:$0xff] }
 0x298   :  { %820 = vmatpush.bf16.msra.mxu1 %v4006_v5 }
 0x299   :  { %735 = vrot.lane.b32.xlu2 %v4936_v58, %s4547_s14  ;;  %v1033_v42 = vshrl.u32 %v1031_v6, 16  ;;  %v1036_v43 = vshll.u32 %v1031_v6, 16  ;;  %v1044_v47 = vshrl.u32 %v4945_v7, 16  ;;  %v1047_v49 = vshll.u32 %v4945_v7, 16  ;;  %v4005_v7 = vld [vmem:[%s5694_s9 + $0x10] sm:$0xff] }
 0x29b   :  { %v1035_v45 = vrot.slane %v1033_v42, 2  ;;  %v1038_v46 = vrot.slane %v1036_v43, 3  ;;  %v1046_v52 = vrot.slane %v1044_v47, 2  ;;  %v1049_v53 = vrot.slane %v1047_v49, 3 }
 0x29c   :  { %821 = vmatpush.bf16.msra.mxu1 %v4005_v7 }
 0x29d   :  { %v4968_v51 = vor.u32 %v1038_v46, %v1035_v45  ;;  %v4972_v54 = vor.u32 %v1049_v53, %v1046_v52 }
 0x2eb   :  { %v741_v8 = vpop.permute.xlu2 %740 }
 0x2ec   :  { %v746_v9 = vsel %vm674_vm13, %v741_v8, 0  ;;  %v4008_v8 = vld [vmem:[%s5694_s9 + $0x28] sm:$0xff] }
 0x2ed   :  { %755 = vmatpush.bf16.xpose.msrb.mxu3 %v746_v9  ;;  %934 = vmatpush.bf16.msrb.mxu1 %v4008_v8 }
 0x2f3   :  { %v736_v10 = vpop.permute.xlu2 %735 }
 0x2f4   :  { %3406 = vmatmul.msk.bf16.vlgmr.msrb.gmra.mxu3 %vm674_vm13, %v736_v10 }
 0x303   :  { %v858_v11 = vpop.permute.xlu0 %857 }
 0x304   :  { %v863_v12 = vsel %vm674_vm13, %v858_v11, 0  ;;  %v856_v13 = vpop.permute.xlu1 %855  ;;  %v4007_v11 = vld [vmem:[%s5694_s9 + $0x20] sm:$0xff] }
 0x305   :  { %872 = vmatpush.bf16.xpose.msra.mxu3 %v863_v12  ;;  %935 = vmatpush.bf16.msrb.mxu1 %v4007_v11  ;;  %v4004_v12 = vld [vmem:[%s5694_s9 + $0x8] sm:$0xff] }
 0x306   :  { %848 = vmatpush.bf16.msra.mxu2 %v4004_v12 }
 0x30c   :  { %3426 = vmatmul.msk.bf16.vlgmr.msra.gmra.mxu3 %vm674_vm13, %v856_v13  ;;  %v4003_v13 = vld [vmem:[%s5694_s9] sm:$0xff] }
 0x30d   :  { %849 = vmatpush.bf16.msra.mxu2 %v4003_v13 }
 0x312   :  { %v690_v14 = vpop.f32.mrf.mxu0 }
 0x313   :  { %v694_v32 = vmul.f32 0.17677669, %v690_v14 }
 0x315   :  { %v696_v35 = vsel %vm695_vm14, %v694_v32, -inf }
 0x31a   :  { %v692_v15 = vpop.f32.mrf.mxu0 }
 0x377   :  { %v757_v16 = vpop.f32.mrf.mxu3 }
 0x378   :  { %v761_v17 = vmul.f32 0.17677669, %v757_v16 }
 0x37a   :  { %v762_v18 = vsel %vm695_vm14, %v761_v17, -inf }
 0x37b   :  { %763 = vmax.xlane.f32.xlu2 %v762_v18 }
 0x37f   :  { %v759_v19 = vpop.f32.mrf.mxu3 }
 0x38f   :  { %v874_v20 = vpop.f32.mrf.mxu3 }
 0x390   :  { %v878_v21 = vmul.f32 0.17677669, %v874_v20 }
 0x392   :  { %v879_v23 = vsel %vm695_vm14, %v878_v21, -inf }
 0x393   :  { %777 = vrot.lane.b32.xlu2 %v776_v22, %s4547_s14  ;;  %880 = vmax.xlane.f32.xlu0 %v879_v23 }
 0x397   :  { %v876_v24 = vpop.f32.mrf.mxu3 }
 0x39b   :  { %891 = vrot.lane.b32.xlu2 %v776_v22, %s4541_s23 }
 0x3a3   :  { %944 = vrot.lane.b32.xlu2 %v739_v57, %s4534_s28 }
 0x3ee   :  { %v764_v25 = vpop.xlane.xlu2 %763 }
 0x3ef   :  { %v765_v26 = vsub.f32 %v761_v17, %v764_v25  ;;  %v1055_v17 = vsel %vm674_vm13, %v4972_v54, 0 }
 0x3f1   :  { %v766_v27 = vmul.f32 1.442695, %v765_v26 }
 0x3f3   :  { %4157 = vpow2.f32 %v766_v27 }
 0x3f6   :  { %v778_v28 = vpop.permute.xlu2 %777 }
 0x3f7   :  { %v783_v29 = vand.u32 %v778_v28, %v4932_v37  ;;  %v1087_v28 = vshrl.u32 %v4940_v1, 16 }
 0x3f9   :  { %v4158_v31 = vpop.eup %4157  ;;  %792 = vmatpush.bf16.msra.mxu0 %v783_v29  ;;  %v1090_v29 = vshll.u32 %v4940_v1, 16 }
 0x3fa   :  { %v768_v48 = vsel %vm695_vm14, %v4158_v31, 0.0 }
 0x3fb   :  { %769 = vadd.xlane.f32.xlu1 %v768_v48  ;;  %v1092_v48 = vrot.slane %v1090_v29, 3 }
 0x3fe   :  { %v892_v33 = vpop.permute.xlu2 %891 }
 0x3ff   :  { %v897_v34 = vand.u32 %v892_v33, %v4932_v37 }
 0x401   :  { %906 = vmatpush.bf16.msrb.mxu0 %v897_v34 }
 0x403   :  { %697 = vmax.xlane.f32.xlu1 %v696_v35 }
 0x406   :  { %v881_v50 = vpop.xlane.xlu0 %880  ;;  %v945_v20 = vpop.permute.xlu2 %944 }
 0x407   :  { %v882_v38 = vsub.f32 %v878_v21, %v881_v50  ;;  %v950_v23 = vsel %vm674_vm13, %v945_v20, 0 }
 0x409   :  { %v883_v39 = vmul.f32 1.442695, %v882_v38 }
 0x40b   :  { %4159 = vpow2.f32 %v883_v39 }
 0x411   :  { %v4160_v40 = vpop.eup %4159 }
 0x412   :  { %v885_v41 = vsel %vm695_vm14, %v4160_v40, 0.0 }
 0x413   :  { %886 = vadd.xlane.f32.xlu0 %v885_v41 }
 0x41c   :  { %942 = vrot.lane.b32.xlu1 %v4936_v58, %s4534_s28 }
 0x424   :  { %978 = vrot.lane.b32.xlu1 %v776_v22, %s4534_s28 }
 0x42c   :  { %1114 = vrot.lane.b32.xlu1 %v4968_v51, %s4547_s14 }
 0x434   :  { %1281 = vrot.lane.b32.xlu1 %v4972_v54, %s4534_s28 }
 0x43c   :  { %1204 = vrot.lane.b32.xlu1 %v4968_v51, %s4541_s23 }
 0x46e   :  { %v770_v55 = vpop.xlane.xlu1 %769 }
 0x46f   :  { %4161 = vrcp.f32 %v770_v55 }
 0x475   :  { %v4162_v56 = vpop.eup %4161 }
 0x476   :  { %v772_v57 = vmul.f32 %v4162_v56, %v4158_v31  ;;  %v698_v58 = vpop.xlane.xlu1 %697  ;;  %v1089_v31 = vrot.slane %v1087_v28, 2 }
 0x477   :  { %v699_v59 = vsub.f32 %v694_v32, %v698_v58 }
 0x478   :  { %v773_v60 = vpack.c.bf16 %v772_v57, %v772_v57  ;;  %v5012_v33 = vor.u32 %v1092_v48, %v1089_v31 }
 0x479   :  { %v700_v61 = vmul.f32 1.442695, %v699_v59 }
 0x47a   :  { %3407 = vmatmul.msk.bf16.vlgmr.msra.gmra.mxu0 %vm708_vm15, %v773_v60  ;;  %v1098_v50 = vand.u32 %v5012_v33, %v4932_v37 }
 0x47b   :  { %4163 = vpow2.f32 %v700_v61 }
 0x481   :  { %v4164_v62 = vpop.eup %4163 }
 0x482   :  { %v702_v63 = vsel %vm695_vm14, %v4164_v62, 0.0 }
 0x483   :  { %703 = vadd.xlane.f32.xlu0 %v702_v63 }
 0x486   :  { %v887_v0 = vpop.xlane.xlu0 %886 }
 0x487   :  { %4165 = vrcp.f32 %v887_v0 }
 0x48d   :  { %v4166_v2 = vpop.eup %4165 }
 0x48e   :  { %v889_v3 = vmul.f32 %v4166_v2, %v4160_v40  ;;  %v943_v4 = vpop.permute.xlu1 %942 }
 0x490   :  { %v890_v6 = vpack.c.bf16 %v889_v3, %v889_v3 }
 0x492   :  { %3427 = vmatmul.msk.bf16.vlgmr.msrb.gmra.mxu0 %vm708_vm15, %v890_v6 }
 0x496   :  { %v979_v9 = vpop.permute.xlu1 %978 }
 0x497   :  { %v984_v10 = vand.u32 %v979_v9, %v4932_v37 }
 0x499   :  { %993 = vmatpush.bf16.msrb.mxu3 %v984_v10 }
 0x49e   :  { %v1115_v63 = vpop.permute.xlu1 %1114 }
 0x4a6   :  { %v1282_v6 = vpop.permute.xlu1 %1281 }
 0x4ae   :  { %v1205_v20 = vpop.permute.xlu1 %1204 }
 0x4f6   :  { %v704_v14 = vpop.xlane.xlu0 %703 }
 0x4f7   :  { %4167 = vrcp.f32 %v704_v14  ;;  %v794_v15 = vpop.f32.mrf.mxu0 }
 0x4f8   :  { %v798_v16 = vpack.c.bf16 %v794_v15, %v794_v15 }
 0x4fa   :  { %3416 = vmatmul.msk.bf16.vlgmr.msra.gmra.mxu1 %vm674_vm13, %v798_v16 }
 0x4fb   :  { %1064 = vmatpush.bf16.xpose.msra.mxu1 %v1055_v17 }
 0x4fd   :  { %v4168_v18 = vpop.eup %4167 }
 0x4fe   :  { %v706_v19 = vmul.f32 %v4168_v18, %v4164_v62 }
 0x4ff   :  { %v796_v21 = vpop.f32.mrf.mxu0 }
 0x500   :  { %v707_v22 = vpack.c.bf16 %v706_v19, %v706_v19  ;;  %v5050_v21 = vld [vmem:[%s5694_s9 + $0x30] sm:$0xff] }
 0x502   :  { %3405 = vmatmul.msk.bf16.vlgmr.msrb.gmra.mxu2 %vm708_vm15, %v707_v22 }
 0x503   :  { %959 = vmatpush.bf16.xpose.msrb.mxu2 %v950_v23 }
 0x50f   :  { %v908_v24 = vpop.f32.mrf.mxu0 }
 0x510   :  { %v912_v25 = vpack.c.bf16 %v908_v24, %v908_v24 }
 0x512   :  { %3436 = vmatmul.msk.bf16.vlgmr.msrb.gmra.mxu1 %vm674_vm13, %v912_v25 }
 0x513   :  { %1181 = vmatpush.bf16.msrb.mxu1 %v4006_v5 }
 0x517   :  { %v910_v26 = vpop.f32.mrf.mxu0  ;;  %1182 = vmatpush.bf16.msrb.mxu1 %v4005_v7 }
 0x522   :  { %3448 = vmatmul.msk.bf16.vlgmr.msra.gmra.mxu1 %vm674_vm13, %v4968_v51 }
 0x523   :  { %1271 = vmatpush.bf16.msra.mxu1 %v4008_v8  ;;  %v1287_v8 = vsel %vm674_vm13, %v1282_v6, 0 }
 0x527   :  { %1272 = vmatpush.bf16.msra.mxu1 %v4007_v11 }
 0x577   :  { %v5008_v27 = vpop.f32.mrf.mxu1 }
 0x57f   :  { %v825_v32 = vpop.f32.mrf.mxu1 }
 0x585   :  { %v727_v34 = vpop.f32.mrf.mxu2 }
 0x586   :  { %v731_v35 = vpack.c.bf16 %v727_v34, %v727_v34 }
 0x588   :  { %3425 = vmatmul.msk.bf16.vlgmr.msra.gmra.mxu2 %vm674_vm13, %v731_v35 }
 0x589   :  { %1107 = vmatpush.bf16.msra.mxu2 %v1098_v50 }
 0x58d   :  { %v729_v38 = vpop.f32.mrf.mxu2 }
 0x58f   :  { %v5017_v39 = vpop.f32.mrf.mxu1 }
 0x597   :  { %v939_v40 = vpop.f32.mrf.mxu1 }
 0x598   :  { %3437 = vmatmul.msk.bf16.vlgmr.msrb.gmra.mxu2 %vm674_vm13, %v943_v4 }
 0x599   :  { %1197 = vmatpush.bf16.msrb.mxu2 %v4004_v12  ;;  %v5038_v12 = vld [vmem:[%s5694_s9 + $0x38] sm:$0xff] }
 0x59a   :  { %1021 = vmatpush.bf16.msra.mxu0 %v5038_v12 }
 0x59d   :  { %1198 = vmatpush.bf16.msrb.mxu2 %v4003_v13 }
 0x59e   :  { %1022 = vmatpush.bf16.msra.mxu0 %v5050_v21 }
 0x59f   :  { %v1066_v1 = vpop.f32.mrf.mxu1 }
 0x5a0   :  { %v1070_v41 = vmul.f32 0.17677669, %v1066_v1 }
 0x5a2   :  { %v1071_v42 = vsel %vm695_vm14, %v1070_v41, -inf }
 0x5a3   :  { %1072 = vmax.xlane.f32.xlu0 %v1071_v42 }
 0x5a7   :  { %v1068_v43 = vpop.f32.mrf.mxu1 }
 0x60b   :  { %v5021_v45 = vpop.f32.mrf.mxu2 }
 0x60c   :  { %v852_v42 = vadd.f32 %v5021_v45, %v5008_v27 }
 0x60e   :  { %v941_v43 = vadd.f32 %v5017_v39, %v852_v42 }
 0x613   :  { %v853_v46 = vpop.f32.mrf.mxu2 }
 0x616   :  { %v1073_v47 = vpop.xlane.xlu0 %1072 }
 0x617   :  { %v1074_v49 = vsub.f32 %v1070_v41, %v1073_v47 }
 0x619   :  { %v1075_v52 = vmul.f32 1.442695, %v1074_v49 }
 0x61b   :  { %4169 = vpow2.f32 %v1075_v52  ;;  %v961_v53 = vpop.f32.mrf.mxu2 }
 0x61c   :  { %v965_v55 = vmul.f32 0.17677669, %v961_v53 }
 0x61e   :  { %v966_v56 = vsel %vm695_vm14, %v965_v55, -inf }
 0x61f   :  { %967 = vmax.xlane.f32.xlu0 %v966_v56 }
 0x621   :  { %v4170_v57 = vpop.eup %4169 }
 0x622   :  { %v1077_v58 = vsel %vm695_vm14, %v4170_v57, 0.0 }
 0x623   :  { %v963_v59 = vpop.f32.mrf.mxu2  ;;  %1078 = vadd.xlane.f32.xlu2 %v1077_v58 }
 0x63b   :  { %1279 = vrot.lane.b32.xlu2 %v4968_v51, %s4534_s28 }
 0x692   :  { %v968_v60 = vpop.xlane.xlu0 %967 }
 0x693   :  { %v969_v61 = vsub.f32 %v965_v55, %v968_v60 }
 0x695   :  { %v970_v62 = vmul.f32 1.442695, %v969_v61 }
 0x696   :  { %v1079_v0 = vpop.xlane.xlu2 %1078 }
 0x697   :  { %4171 = vpow2.f32 %v970_v62 }
 0x698   :  { %4173 = vrcp.f32 %v1079_v0 }
 0x69d   :  { %v4172_v2 = vpop.eup %4171 }
 0x69e   :  { %v4174_v3 = vpop.eup %4173  ;;  %v972_v4 = vsel %vm695_vm14, %v4172_v2, 0.0  ;;  %v1280_v19 = vpop.permute.xlu2 %1279 }
 0x69f   :  { %v1081_v5 = vmul.f32 %v4174_v3, %v4170_v57  ;;  %973 = vadd.xlane.f32.xlu0 %v972_v4 }
 0x6a1   :  { %v1082_v7 = vpack.c.bf16 %v1081_v5, %v1081_v5 }
 0x6a3   :  { %3449 = vmatmul.msk.bf16.vlgmr.msra.gmra.mxu2 %vm708_vm15, %v1082_v7 }
 0x6a4   :  { %1296 = vmatpush.bf16.xpose.msra.mxu2 %v1287_v8 }
 0x6b3   :  { %1116 = vrot.lane.b32.xlu0 %v4972_v54, %s4547_s14 }
 0x6bb   :  { %1206 = vrot.lane.b32.xlu0 %v4972_v54, %s4541_s23 }
 0x712   :  { %v974_v51 = vpop.xlane.xlu0 %973 }
 0x713   :  { %4175 = vrcp.f32 %v974_v51 }
 0x719   :  { %v4176_v9 = vpop.eup %4175 }
 0x71a   :  { %v976_v10 = vmul.f32 %v4176_v9, %v4172_v2 }
 0x71c   :  { %v977_v11 = vpack.c.bf16 %v976_v10, %v976_v10 }
 0x71e   :  { %3438 = vmatmul.msk.bf16.vlgmr.msrb.gmra.mxu3 %vm708_vm15, %v977_v11 }
 0x725   :  { %v1117_v13 = vpop.permute.xlu0 %1116 }
 0x726   :  { %v1109_v14 = vpop.f32.mrf.mxu2  ;;  %v1122_v15 = vsel %vm674_vm13, %v1117_v13, 0 }
 0x727   :  { %v1113_v16 = vpack.c.bf16 %v1109_v14, %v1109_v14  ;;  %1131 = vmatpush.bf16.xpose.msra.mxu3 %v1122_v15 }
 0x729   :  { %3453 = vmatmul.msk.bf16.vlgmr.msrb.gmra.mxu2 %vm674_vm13, %v1113_v16 }
 0x72d   :  { %v1207_v54 = vpop.permute.xlu0 %1206 }
 0x72e   :  { %v1111_v17 = vpop.f32.mrf.mxu2  ;;  %v1212_v18 = vsel %vm674_vm13, %v1207_v54, 0  ;;  %3450 = vmatmul.msk.bf16.vlgmr.msra.gmra.mxu3 %vm674_vm13, %v1115_v63 }
 0x72f   :  { %1221 = vmatpush.bf16.xpose.msrb.mxu3 %v1212_v18 }
 0x739   :  { %3457 = vmatmul.msk.bf16.vlgmr.msra.gmra.mxu2 %vm674_vm13, %v1280_v19 }
 0x73e   :  { %3454 = vmatmul.msk.bf16.vlgmr.msrb.gmra.mxu3 %vm674_vm13, %v1205_v20 }
 0x7a1   :  { %v995_v22 = vpop.f32.mrf.mxu3 }
 0x7a2   :  { %v999_v23 = vpack.c.bf16 %v995_v22, %v995_v22 }
 0x7a4   :  { %3447 = vmatmul.msk.bf16.vlgmr.msra.gmra.mxu0 %vm674_vm13, %v999_v23 }
 0x7a9   :  { %v997_v24 = vpop.f32.mrf.mxu3 }
 0x7ac   :  { %v5054_v25 = vpop.f32.mrf.mxu2 }
 0x7b1   :  { %v1133_v26 = vpop.f32.mrf.mxu3 }
 0x7b2   :  { %v1137_v28 = vmul.f32 0.17677669, %v1133_v26 }
 0x7b4   :  { %v1202_v29 = vpop.f32.mrf.mxu2  ;;  %v1138_v31 = vsel %vm695_vm14, %v1137_v28, -inf }
 0x7b5   :  { %1139 = vmax.xlane.f32.xlu0 %v1138_v31 }
 0x7b9   :  { %v1135_v48 = vpop.f32.mrf.mxu3 }
 0x7bc   :  { %v1298_v32 = vpop.f32.mrf.mxu2 }
 0x7bd   :  { %v1302_v34 = vmul.f32 0.17677669, %v1298_v32 }
 0x7bf   :  { %v1303_v35 = vsel %vm695_vm14, %v1302_v34, -inf }
 0x7c0   :  { %1304 = vmax.xlane.f32.xlu1 %v1303_v35 }
 0x7c1   :  { %v1223_v50 = vpop.f32.mrf.mxu3 }
 0x7c2   :  { %v1227_v38 = vmul.f32 0.17677669, %v1223_v50 }
 0x7c4   :  { %v1300_v40 = vpop.f32.mrf.mxu2  ;;  %v1228_v1 = vsel %vm695_vm14, %v1227_v38, -inf }
 0x7c5   :  { %1229 = vmax.xlane.f32.xlu2 %v1228_v1  ;;  %v4138_v40 = vld [vmem:[#allocation8] ss:$0 sm:$0xff] }
 0x7c9   :  { %v1225_v41 = vpop.f32.mrf.mxu3 }
 0x7d9   :  { %1150 = vrot.lane.b32.xlu1 %v5012_v33, %s4547_s14 }
 0x821   :  { %v1024_v46 = vpop.f32.mrf.mxu0 }
 0x822   :  { %v5064_v47 = vadd.f32 %v1024_v46, %v941_v43 }
 0x828   :  { %v1140_v49 = vpop.xlane.xlu0 %1139 }
 0x829   :  { %v1141_v52 = vsub.f32 %v1137_v28, %v1140_v49  ;;  %v1026_v53 = vpop.f32.mrf.mxu0 }
 0x82b   :  { %v1142_v55 = vmul.f32 1.442695, %v1141_v52 }
 0x82d   :  { %4177 = vpow2.f32 %v1142_v55 }
 0x833   :  { %v4178_v56 = vpop.eup %4177  ;;  %v1305_v57 = vpop.xlane.xlu1 %1304 }
 0x834   :  { %v1306_v58 = vsub.f32 %v1302_v34, %v1305_v57  ;;  %v1144_v59 = vsel %vm695_vm14, %v4178_v56, 0.0 }
 0x835   :  { %1145 = vadd.xlane.f32.xlu0 %v1144_v59  ;;  %v3518_v59 = vld [vmem:[%s5698_s13 + $0x70] sm:$0xf] }
 0x836   :  { %v1307_v60 = vmul.f32 1.442695, %v1306_v58 }
 0x838   :  { %4179 = vpow2.f32 %v1307_v60  ;;  %v1230_v61 = vpop.xlane.xlu2 %1229  ;;  %v4026_v60 = vld [vmem:[%s5698_s13 + $0x74] sm:$0xf0] }
 0x839   :  { %v1231_v27 = vsub.f32 %v1227_v38, %v1230_v61  ;;  %v4025_v61 = vld [vmem:[%s5698_s13 + $0x74] sm:$0xf] }
 0x83b   :  { %v1232_v45 = vmul.f32 1.442695, %v1231_v27  ;;  %v3519_v27 = vor.u32 %v4026_v60, %v3518_v59 }
 0x83d   :  { %4181 = vpow2.f32 %v1232_v45  ;;  %v3520_v45 = vld [vmem:[%s5698_s13 + $0x78] sm:$0xf0] }
 0x83e   :  { %v4180_v39 = vpop.eup %4179 }
 0x83f   :  { %v1309_v62 = vsel %vm695_vm14, %v4180_v39, 0.0 }
 0x840   :  { %1310 = vadd.xlane.f32.xlu0 %v1309_v62  ;;  %v3510_v62 = vld [vmem:[%s5698_s13 + $0x60] sm:$0xf] }
 0x843   :  { %v4182_v63 = vpop.eup %4181 }
 0x844   :  { %v1234_v0 = vsel %vm695_vm14, %v4182_v63, 0.0 }
 0x845   :  { %1235 = vadd.xlane.f32.xlu2 %v1234_v0  ;;  %v4023_v0 = vld [vmem:[%s5698_s13 + $0x64] sm:$0xf] }
 0x84b   :  { %v1151_v2 = vpop.permute.xlu1 %1150 }
 0x84c   :  { %v1156_v3 = vand.u32 %v1151_v2, %v4932_v37 }
 0x84e   :  { %1165 = vmatpush.bf16.msrb.mxu0 %v1156_v3  ;;  %v3512_v3 = vld [vmem:[%s5698_s13 + $0x68] sm:$0xf0] }
 0x854   :  { %1315 = vrot.lane.b32.xlu0 %v5012_v33, %s4534_s28 }
 0x85d   :  { %1240 = vrot.lane.b32.xlu2 %v5012_v33, %s4541_s23 }
 0x8a8   :  { %v1146_v4 = vpop.xlane.xlu0 %1145 }
 0x8a9   :  { %4183 = vrcp.f32 %v1146_v4  ;;  %v3515_v4 = vor.u32 %v4023_v0, %v3512_v3  ;;  %v4139_v0 = vld [vmem:[%s5696_s11] ss:$0 sm:$0xff] }
 0x8af   :  { %v4184_v5 = vpop.eup %4183 }
 0x8b0   :  { %v1148_v6 = vmul.f32 %v4184_v5, %v4178_v56  ;;  %v3502_v5 = vld [vmem:[%s5698_s13 + $0x50] sm:$0xf] }
 0x8b2   :  { %v1149_v7 = vpack.c.bf16 %v1148_v6, %v1148_v6  ;;  %v4022_v6 = vld [vmem:[%s5698_s13 + $0x54] sm:$0xf0] }
 0x8b3   :  { %v1311_v51 = vpop.xlane.xlu0 %1310 }
 0x8b4   :  { %3451 = vmatmul.msk.bf16.vlgmr.msrb.gmra.mxu0 %vm708_vm15, %v1149_v7  ;;  %v4021_v7 = vld [vmem:[%s5698_s13 + $0x54] sm:$0xf] }
 0x8b8   :  { %v1236_v8 = vpop.xlane.xlu2 %1235 }
 0x8b9   :  { %4185 = vrcp.f32 %v1236_v8  ;;  %v3503_v8 = vor.u32 %v4022_v6, %v3502_v5  ;;  %v4140_v5 = vld [vmem:[#allocation10] ss:$0 sm:$0xff] }
 0x8ba   :  { %4187 = vrcp.f32 %v1311_v51  ;;  %v3504_v51 = vld [vmem:[%s5698_s13 + $0x58] sm:$0xf0] }
 0x8bf   :  { %v4186_v9 = vpop.eup %4185 }
 0x8c0   :  { %v1238_v10 = vmul.f32 %v4186_v9, %v4182_v63  ;;  %v1241_v11 = vpop.permute.xlu2 %1240  ;;  %v4188_v14 = vpop.eup %4187  ;;  %v4024_v63 = vld [vmem:[%s5698_s13 + $0x64] sm:$0xf0]  ;;  %v3507_v9 = vor.u32 %v4021_v7, %v3504_v51 }
 0x8c1   :  { %v1246_v13 = vand.u32 %v1241_v11, %v4932_v37  ;;  %v1313_v33 = vmul.f32 %v4188_v14, %v4180_v39  ;;  %v3523_v39 = vor.u32 %v4025_v61, %v3520_v45  ;;  %v3511_v2 = vor.u32 %v4024_v63, %v3510_v62  ;;  %v4020_v11 = vld [vmem:[%s5698_s13 + $0x44] sm:$0xf0] }
 0x8c2   :  { %v1239_v15 = vpack.c.bf16 %v1238_v10, %v1238_v10  ;;  %v3494_v10 = vld [vmem:[%s5698_s13 + $0x40] sm:$0xf] }
 0x8c3   :  { %1255 = vmatpush.bf16.msra.mxu0 %v1246_v13  ;;  %v1314_v17 = vpack.c.bf16 %v1313_v33, %v1313_v33  ;;  %1537 = vmatpush.bf16.msrb.mxu2 %v3523_v39  ;;  %v4019_v13 = vld [vmem:[%s5698_s13 + $0x44] sm:$0xf]  ;;  %v3495_v14 = vor.u32 %v4020_v11, %v3494_v10 }
 0x8c4   :  { %v4034_v11 = vld [vmem:[#allocation13 + $0x38] sm:$0xff] }
 0x8c6   :  { %v1316_v16 = vpop.permute.xlu0 %1315  ;;  %3455 = vmatmul.msk.bf16.vlgmr.msra.gmra.mxu0 %vm708_vm15, %v1239_v15  ;;  %v3496_v15 = vld [vmem:[%s5698_s13 + $0x48] sm:$0xf0] }
 0x8c7   :  { %1346 = vmatpush.bf16.msrb.mxu0 %v5038_v12  ;;  %v1321_v54 = vand.u32 %v1316_v16, %v4932_v37  ;;  %1538 = vmatpush.bf16.msrb.mxu2 %v3515_v4  ;;  %v3499_v33 = vor.u32 %v4019_v13, %v3496_v15  ;;  %v3486_v16 = vld [vmem:[%s5698_s13 + $0x30] sm:$0xf]  ;;  %v4033_v13 = vld [vmem:[#allocation13 + $0x30] sm:$0xff]  ;;  %v4032_v15 = vld [vmem:[#allocation13 + $0x28] sm:$0xff] }
 0x8c9   :  { %1330 = vmatpush.bf16.msra.mxu3 %v1321_v54  ;;  %v4018_v54 = vld [vmem:[%s5698_s13 + $0x34] sm:$0xf0] }
 0x8cb   :  { %1347 = vmatpush.bf16.msrb.mxu0 %v5050_v21  ;;  %1539 = vmatpush.bf16.msrb.mxu2 %v3507_v9 }
 0x8cc   :  { %3458 = vmatmul.msk.bf16.vlgmr.msra.gmra.mxu3 %vm708_vm15, %v1314_v17  ;;  %v4017_v17 = vld [vmem:[%s5698_s13 + $0x34] sm:$0xf] }
 0x8cd   :  { %1721 = vmatpush.bf16.msrb.mxu3 %v4034_v11 }
 0x8cf   :  { %1540 = vmatpush.bf16.msrb.mxu2 %v3499_v33  ;;  %v4031_v33 = vld [vmem:[#allocation13 + $0x20] sm:$0xff] }
 0x8d1   :  { %1722 = vmatpush.bf16.msrb.mxu3 %v4033_v13 }
 0x8d5   :  { %1723 = vmatpush.bf16.msrb.mxu3 %v4032_v15 }
 0x8d9   :  { %1724 = vmatpush.bf16.msrb.mxu3 %v4031_v33  ;;  %v4141_v33 = vld [vmem:[#allocation14] ss:$0 sm:$0xff] }
 0x931   :  { %v1167_v18 = vpop.f32.mrf.mxu0 }
 0x932   :  { %v1171_v19 = vpack.c.bf16 %v1167_v18, %v1167_v18  ;;  %v3487_v18 = vor.u32 %v4018_v54, %v3486_v16  ;;  %v4030_v16 = vld [vmem:[#allocation13 + $0x18] sm:$0xff]  ;;  %v4039_v54 = vld [vmem:[#allocation13 + $0x60] sm:$0xff] }
 0x933   :  { %1725 = vmatpush.bf16.msrb.mxu3 %v4030_v16 }
 0x934   :  { %3452 = vmatmul.msk.bf16.vlgmr.msrb.gmra.mxu1 %vm674_vm13, %v1171_v19  ;;  %v3488_v19 = vld [vmem:[%s5698_s13 + $0x38] sm:$0xf0] }
 0x935   :  { %1523 = vmatpush.bf16.msrb.mxu1 %v3519_v27 }
 0x939   :  { %v1169_v20 = vpop.f32.mrf.mxu0  ;;  %1524 = vmatpush.bf16.msrb.mxu1 %v3511_v2 }
 0x93a   :  { %v3491_v20 = vor.u32 %v4017_v17, %v3488_v19  ;;  %v4029_v17 = vld [vmem:[#allocation13 + $0x10] sm:$0xff]  ;;  %v4028_v19 = vld [vmem:[#allocation13 + $0x8] sm:$0xff] }
 0x93b   :  { %1726 = vmatpush.bf16.msrb.mxu3 %v4029_v17 }
 0x93c   :  { %1541 = vmatpush.bf16.msrb.mxu2 %v3491_v20  ;;  %v1437_v20 = vld [vmem:[#allocation11] sm:$0x3] }
 0x93d   :  { %1525 = vmatpush.bf16.msrb.mxu1 %v3503_v8 }
 0x93f   :  { %1727 = vmatpush.bf16.msrb.mxu3 %v4028_v19 }
 0x941   :  { %1526 = vmatpush.bf16.msrb.mxu1 %v3495_v14  ;;  %v4042_v14 = vld [vmem:[#allocation13 + $0x78] sm:$0xff] }
 0x942   :  { %1735 = vmatpush.bf16.msra.mxu0 %v4042_v14 }
 0x943   :  { %v1257_v22 = vpop.f32.mrf.mxu0 }
 0x944   :  { %v1261_v23 = vpack.c.bf16 %v1257_v22, %v1257_v22  ;;  %v3478_v22 = vld [vmem:[%s5698_s13 + $0x20] sm:$0xf] }
 0x945   :  { %1527 = vmatpush.bf16.msrb.mxu1 %v3487_v18  ;;  %v4038_v18 = vld [vmem:[#allocation13 + $0x58] sm:$0xff] }
 0x946   :  { %3456 = vmatmul.msk.bf16.vlgmr.msra.gmra.mxu1 %vm674_vm13, %v1261_v23  ;;  %v4016_v23 = vld [vmem:[%s5698_s13 + $0x24] sm:$0xf0] }
 0x94b   :  { %v1259_v12 = vpop.f32.mrf.mxu0 }
 0x94c   :  { %v4015_v12 = vld [vmem:[%s5698_s13 + $0x24] sm:$0xf] }
 0x94f   :  { %v1332_v24 = vpop.f32.mrf.mxu3 }
 0x950   :  { %v1336_v26 = vpack.c.bf16 %v1332_v24, %v1332_v24  ;;  %v3479_v24 = vor.u32 %v4016_v23, %v3478_v22  ;;  %v4037_v22 = vld [vmem:[#allocation13 + $0x50] sm:$0xff]  ;;  %v4027_v23 = vld [vmem:[#allocation13] sm:$0xff] }
 0x951   :  { %1728 = vmatpush.bf16.msrb.mxu3 %v4027_v23 }
 0x952   :  { %3459 = vmatmul.msk.bf16.vlgmr.msrb.gmra.mxu0 %vm674_vm13, %v1336_v26  ;;  %v3480_v26 = vld [vmem:[%s5698_s13 + $0x28] sm:$0xf0]  ;;  %1528 = vmatpush.bf16.msrb.mxu1 %v3479_v24  ;;  %v4036_v24 = vld [vmem:[#allocation13 + $0x48] sm:$0xff] }
 0x957   :  { %v1334_v28 = vpop.f32.mrf.mxu3 }
 0x958   :  { %v3483_v28 = vor.u32 %v4015_v12, %v3480_v26  ;;  %v1439_v12 = vperm.slane %v1437_v20, 0 }
 0x95a   :  { %1542 = vmatpush.bf16.msrb.mxu2 %v3483_v28 }
 0x9b1   :  { %v1184_v21 = vpop.f32.mrf.mxu1 }
 0x9b2   :  { %v1201_v32 = vadd.f32 %v5054_v25, %v1184_v21  ;;  %v3470_v21 = vld [vmem:[%s5698_s13 + $0x10] sm:$0xf] }
 0x9b9   :  { %v1186_v29 = vpop.f32.mrf.mxu1 }
 0x9ba   :  { %v4014_v29 = vld [vmem:[%s5698_s13 + $0x14] sm:$0xf0] }
 0x9c3   :  { %v1274_v31 = vpop.f32.mrf.mxu1 }
 0x9c4   :  { %v1278_v34 = vadd.f32 %v1274_v31, %v1201_v32  ;;  %v4013_v31 = vld [vmem:[%s5698_s13 + $0x14] sm:$0xf]  ;;  %v3472_v32 = vld [vmem:[%s5698_s13 + $0x18] sm:$0xf0] }
 0x9cb   :  { %v1276_v48 = vpop.f32.mrf.mxu1 }
 0x9cc   :  { %v3471_v48 = vor.u32 %v4014_v29, %v3470_v21  ;;  %v4035_v21 = vld [vmem:[#allocation13 + $0x40] sm:$0xff] }
 0x9ce   :  { %1529 = vmatpush.bf16.msrb.mxu1 %v3471_v48 }
 0x9cf   :  { %v1349_v35 = vpop.f32.mrf.mxu0 }
 0x9d0   :  { %v1353_v50 = vadd.f32 %v1349_v35, %v1278_v34  ;;  %v3462_v34 = vld [vmem:[%s5698_s13] sm:$0xf]  ;;  %v4012_v35 = vld [vmem:[%s5698_s13 + $0x4] sm:$0xf0] }
 0x9d2   :  { %v1355_v38 = vrot.slane %v1353_v50, 3  ;;  %v3475_v50 = vor.u32 %v4013_v31, %v3472_v32  ;;  %v1440_v31 = vperm.slane %v1437_v20, 1 }
 0x9d4   :  { %v1357_v1 = vsel %vm375_vm3, %v5064_v47, %v1355_v38  ;;  %v1359_v41 = vadd.f32 %v1355_v38, %v4752_v30  ;;  %v4011_v38 = vld [vmem:[%s5698_s13 + $0x4] sm:$0xf]  ;;  %1543 = vmatpush.bf16.msrb.mxu2 %v3475_v50 }
 0x9d5   :  { %v1358_v42 = vadd.f32 %v1357_v1, %v4759_v36  ;;  %v3463_v1 = vor.u32 %v4012_v35, %v3462_v34 }
 0x9d6   :  { %v5089_v43 = vadd.f32 %v4138_v40, %v1359_v41 }
 0x9d7   :  { %v1351_v46 = vpop.f32.mrf.mxu0  ;;  %v5091_v49 = vadd.f32 %v4138_v40, %v1358_v42  ;;  %v3464_v40 = vld [vmem:[%s5698_s13 + $0x8] sm:$0xf0]  ;;  %1530 = vmatpush.bf16.msrb.mxu1 %v3463_v1 }
 0x9d8   :  { %v1370_v25 = vsel %vm383_vm1, %v5089_v43, 0.0  ;;  %v3467_v41 = vor.u32 %v4011_v38, %v3464_v40 }
 0x9d9   :  { %1371 = vadd.xlane.f32.xlu1 %v1370_v25  ;;  %1368 = vadd.xlane.f32.xlu0 %v5091_v49 }
 0x9da   :  { %1544 = vmatpush.bf16.msrb.mxu2 %v3467_v41 }
 0xa4c   :  { %v1372_v52 = vpop.xlane.xlu1 %1371  ;;  %v1369_v53 = vpop.xlane.xlu0 %1368 }
 0xa4d   :  { %v1374_v55 = vmul.f32 %v1372_v52, %v4762_v44  ;;  %v1373_v47 = vmul.f32 %v1369_v53, %v4762_v44 }
 0xa4f   :  { %v5099_v30 = vsub.f32 %v5089_v43, %v1374_v55  ;;  %v5102_v36 = vsub.f32 %v5091_v49, %v1373_v47 }
 0xa51   :  { %v1377_v56 = vmul.f32 %v5102_v36, %v5102_v36  ;;  %v1378_v57 = vmul.f32 %v5099_v30, %v5099_v30 }
 0xa53   :  { %1379 = vadd.xlane.f32.xlu2 %v1377_v56  ;;  %v1381_v58 = vsel %vm383_vm1, %v1378_v57, 0.0 }
 0xa54   :  { %1382 = vadd.xlane.f32.xlu1 %v1381_v58 }
 0xac6   :  { %v1380_v42 = vpop.xlane.xlu2 %1379 }
 0xac7   :  { %v1384_v46 = vmul.f32 %v1380_v42, %v4762_v44  ;;  %v1383_v25 = vpop.xlane.xlu1 %1382 }
 0xac8   :  { %v1385_v52 = vmul.f32 %v1383_v25, %v4762_v44 }
 0xac9   :  { %v1386_v53 = vadd.f32 1e-12, %v1384_v46 }
 0xaca   :  { %v1387_v55 = vadd.f32 1e-12, %v1385_v52 }
 0xacb   :  { %4189 = vrsqrt.f32 %v1386_v53  ;;  %vm1394_vm5 = vweird.f32 %v1386_v53 }
 0xacc   :  { %4191 = vrsqrt.f32 %v1387_v55  ;;  %vm1404_vm7 = vweird.f32 %v1387_v55 }
 0xad1   :  { %v4190_v47 = vpop.eup %4189 }
 0xad2   :  { %v4192_v56 = vpop.eup %4191  ;;  %v1389_v57 = vmul.f32 %v4190_v47, %v1386_v53  ;;  %vm1395_vm0 = vweird.f32 %v4190_v47 }
 0xad3   :  { %v1399_v58 = vmul.f32 %v4192_v56, %v1387_v55  ;;  %vm1405_vm4 = vweird.f32 %v4192_v56  ;;  %vm1396_vm6 = vmor %vm1394_vm5, %vm1395_vm0 }
 0xad4   :  { %v1390_v59 = vmul.f32 %v4190_v47, %v1389_v57  ;;  %vm1406_vm8 = vmor %vm1404_vm7, %vm1405_vm4 }
 0xad5   :  { %v1400_v60 = vmul.f32 %v4192_v56, %v1399_v58 }
 0xad6   :  { %v1391_v61 = vmul.f32 0.5, %v1390_v59 }
 0xad7   :  { %v1401_v27 = vmul.f32 0.5, %v1400_v60 }
 0xad8   :  { %v1392_v45 = vsub.f32 1.5, %v1391_v61 }
 0xad9   :  { %v1402_v39 = vsub.f32 1.5, %v1401_v27 }
 0xada   :  { %v1393_v62 = vmul.f32 %v4190_v47, %v1392_v45 }
 0xadb   :  { %v1403_v63 = vmul.f32 %v4192_v56, %v1402_v39 }
 0xadc   :  { %v1397_v2 = vsel %vm1396_vm6, %v4190_v47, %v1393_v62 }
 0xadd   :  { %v1408_v3 = vmul.f32 %v1397_v2, %v5102_v36  ;;  %v1407_v4 = vsel %vm1406_vm8, %v4192_v56, %v1403_v63  ;;  %v4041_v36 = vld [vmem:[#allocation13 + $0x70] sm:$0xff] }
 0xade   :  { %v1409_v6 = vmul.f32 %v1407_v4, %v5099_v30  ;;  %1736 = vmatpush.bf16.msra.mxu0 %v4041_v36  ;;  %v4040_v30 = vld [vmem:[#allocation13 + $0x68] sm:$0xff] }
 0xadf   :  { %v1413_v7 = vmul.f32 %v4139_v0, %v1408_v3 }
 0xae0   :  { %v1414_v8 = vmul.f32 %v4139_v0, %v1409_v6 }
 0xae1   :  { %v1418_v51 = vadd.f32 %v4140_v5, %v1413_v7 }
 0xae2   :  { %v1419_v9 = vadd.f32 %v4140_v5, %v1414_v8  ;;  %1737 = vmatpush.bf16.msra.mxu0 %v4040_v30 }
 0xae4   :  { %v1436_v10 = vpack.c.bf16 %v1419_v9, %v1418_v51 }
 0xae6   :  { %1531 = vmatmul.bf16.vlgmr.msrb.gmra.mxu1 %v1436_v10  ;;  %1545 = vmatmul.bf16.vlgmr.msrb.gmra.mxu2 %v1436_v10 }
 0xae7   :  { %1738 = vmatpush.bf16.msra.mxu0 %v4039_v54 }
 0xaeb   :  { %1739 = vmatpush.bf16.msra.mxu0 %v4038_v18 }
 0xaef   :  { %1740 = vmatpush.bf16.msra.mxu0 %v4037_v22 }
 0xaf3   :  { %1741 = vmatpush.bf16.msra.mxu0 %v4036_v24 }
 0xaf7   :  { %1742 = vmatpush.bf16.msra.mxu0 %v4035_v21 }
 0xb63   :  { %v1532_v26 = vpop.f32.mrf.mxu1 }
 0xb64   :  { %v1533_v28 = vadd.f32 %v1532_v26, %v1439_v12 }
 0xb66   :  { %v1555_v29 = vmul.f32 0.044715, %v1533_v28  ;;  %v1551_v2 = vmul.f32 0.5, %v1533_v28 }
 0xb68   :  { %v1559_v48 = vmul.f32 %v1555_v29, %v1533_v28 }
 0xb69   :  { %v1546_v32 = vpop.f32.mrf.mxu2 }
 0xb6a   :  { %v1563_v34 = vmul.f32 %v1559_v48, %v1533_v28  ;;  %v1547_v35 = vadd.f32 %v1546_v32, %v1440_v31 }
 0xb6b   :  { %v1534_v50 = vpop.f32.mrf.mxu1 }
 0xb6c   :  { %v1567_v38 = vadd.f32 %v1563_v34, %v1533_v28  ;;  %v1556_v40 = vmul.f32 0.044715, %v1547_v35  ;;  %v1535_v1 = vadd.f32 %v1534_v50, %v1439_v12  ;;  %v1552_v10 = vmul.f32 0.5, %v1547_v35  ;;  %v3708_v34 = vld [vmem:[%s5692_s7 + $0x168] sm:$0xf] }
 0xb6d   :  { %v4064_v50 = vld [vmem:[%s5692_s7 + $0x16c] sm:$0xf] }
 0xb6e   :  { %v1560_v41 = vmul.f32 %v1556_v40, %v1547_v35  ;;  %v1557_v42 = vmul.f32 0.044715, %v1535_v1  ;;  %v1571_v46 = vmul.f32 0.7978846, %v1567_v38  ;;  %v1553_v3 = vmul.f32 0.5, %v1535_v1 }
 0xb6f   :  { %v3710_v40 = vld [vmem:[%s5692_s7 + $0x174] sm:$0xf0] }
 0xb70   :  { %v1564_v25 = vmul.f32 %v1560_v41, %v1547_v35  ;;  %v1561_v52 = vmul.f32 %v1557_v42, %v1535_v1  ;;  %4193 = vtanh.f32 %v1571_v46  ;;  %v4066_v41 = vld [vmem:[%s5692_s7 + $0x178] sm:$0xf0]  ;;  %v3713_v42 = vor.u32 %v4064_v50, %v3710_v40  ;;  %v3638_v50 = vld [vmem:[%s5692_s7 + $0xe4] sm:$0xf0]  ;;  %v4048_v40 = vld [vmem:[%s5692_s7 + $0xe8] sm:$0xf0] }
 0xb71   :  { %v1548_v53 = vpop.f32.mrf.mxu2 }
 0xb72   :  { %v1568_v55 = vadd.f32 %v1564_v25, %v1547_v35  ;;  %v1565_v47 = vmul.f32 %v1561_v52, %v1535_v1  ;;  %v1549_v56 = vadd.f32 %v1548_v53, %v1440_v31  ;;  %v4065_v35 = vld [vmem:[%s5692_s7 + $0x170] sm:$0xf0]  ;;  %1992 = vmatpush.bf16.msra.mxu2 %v3713_v42  ;;  %v3696_v25 = vld [vmem:[%s5692_s7 + $0x150] sm:$0xf]  ;;  %v4062_v52 = vld [vmem:[%s5692_s7 + $0x158] sm:$0xf0] }
 0xb73   :  { %v3709_v38 = vor.u32 %v4065_v35, %v3708_v34  ;;  %v4061_v53 = vld [vmem:[%s5692_s7 + $0x154] sm:$0xf]  ;;  %v3624_v42 = vld [vmem:[%s5692_s7 + $0xc0] sm:$0xf] }
 0xb74   :  { %v1569_v57 = vadd.f32 %v1565_v47, %v1535_v1  ;;  %v1558_v58 = vmul.f32 0.044715, %v1549_v56  ;;  %v1572_v59 = vmul.f32 0.7978846, %v1568_v55  ;;  %v1554_v11 = vmul.f32 0.5, %v1549_v56 }
 0xb75   :  { %v3716_v1 = vld [vmem:[%s5692_s7 + $0x170] sm:$0xf]  ;;  %1978 = vmatpush.bf16.msra.mxu1 %v3709_v38  ;;  %v3697_v55 = vor.u32 %v4062_v52, %v3696_v25  ;;  %v3698_v47 = vld [vmem:[%s5692_s7 + $0x15c] sm:$0xf0]  ;;  %v4043_v25 = vld [vmem:[%s5692_s7 + $0xc4] sm:$0xf] }
 0xb76   :  { %v1573_v60 = vmul.f32 0.7978846, %v1569_v57  ;;  %v1562_v61 = vmul.f32 %v1558_v58, %v1549_v56  ;;  %v4194_v45 = vpop.eup %4193  ;;  %v3717_v46 = vor.u32 %v4066_v41, %v3716_v1  ;;  %v4063_v57 = vld [vmem:[%s5692_s7 + $0x160] sm:$0xf0]  ;;  %v3701_v58 = vor.u32 %v4061_v53, %v3698_v47  ;;  %v3644_v38 = vld [vmem:[%s5692_s7 + $0xe0] sm:$0xf] }
 0xb77   :  { %v1579_v63 = vadd.f32 1.0, %v4194_v45  ;;  %v3645_v41 = vor.u32 %v4048_v40, %v3644_v38  ;;  %v3632_v47 = vld [vmem:[%s5692_s7 + $0xc8] sm:$0xf] }
 0xb78   :  { %v1566_v27 = vmul.f32 %v1562_v61, %v1549_v56  ;;  %4195 = vtanh.f32 %v1573_v60  ;;  %2006 = vmatpush.bf16.msra.mxu3 %v3717_v46  ;;  %1993 = vmatpush.bf16.msra.mxu2 %v3701_v58  ;;  %v3684_v60 = vld [vmem:[%s5692_s7 + $0x138] sm:$0xf]  ;;  %v4059_v61 = vld [vmem:[%s5692_s7 + $0x140] sm:$0xf0]  ;;  %v4044_v46 = vld [vmem:[%s5692_s7 + $0xc8] sm:$0xf0] }
 0xb79   :  { %4197 = vtanh.f32 %v1572_v59  ;;  %v1583_v6 = vmul.f32 %v1579_v63, %v1551_v2  ;;  %1979 = vmatpush.bf16.msra.mxu1 %v3697_v55  ;;  %v3685_v45 = vor.u32 %v4059_v61, %v3684_v60  ;;  %v4060_v63 = vld [vmem:[%s5692_s7 + $0x148] sm:$0xf0]  ;;  %v3625_v53 = vor.u32 %v4044_v46, %v3624_v42  ;;  %v3626_v55 = vld [vmem:[%s5692_s7 + $0xcc] sm:$0xf0] }
 0xb7a   :  { %v1570_v39 = vadd.f32 %v1566_v27, %v1549_v56  ;;  %v3704_v56 = vld [vmem:[%s5692_s7 + $0x158] sm:$0xf]  ;;  %v4058_v27 = vld [vmem:[%s5692_s7 + $0x13c] sm:$0xf] }
 0xb7b   :  { %v3705_v59 = vor.u32 %v4063_v57, %v3704_v56  ;;  %v3629_v56 = vor.u32 %v4043_v25, %v3626_v55  ;;  %v4045_v57 = vld [vmem:[%s5692_s7 + $0xd0] sm:$0xf0] }
 0xb7c   :  { %v1574_v62 = vmul.f32 0.7978846, %v1570_v39  ;;  %v3686_v39 = vld [vmem:[%s5692_s7 + $0x144] sm:$0xf0]  ;;  %v3633_v58 = vor.u32 %v4045_v57, %v3632_v47 }
 0xb7d   :  { %2007 = vmatpush.bf16.msra.mxu3 %v3705_v59  ;;  %1980 = vmatpush.bf16.msra.mxu1 %v3685_v45 }
 0xb7e   :  { %v4196_v0 = vpop.eup %4195  ;;  %4199 = vtanh.f32 %v1574_v62  ;;  %v3692_v62 = vld [vmem:[%s5692_s7 + $0x140] sm:$0xf] }
 0xb7f   :  { %v1581_v4 = vadd.f32 1.0, %v4196_v0  ;;  %v4198_v5 = vpop.eup %4197  ;;  %v3689_v0 = vor.u32 %v4058_v27, %v3686_v39  ;;  %v3693_v2 = vor.u32 %v4060_v63, %v3692_v62 }
 0xb80   :  { %v1580_v51 = vadd.f32 1.0, %v4198_v5  ;;  %v4055_v5 = vld [vmem:[%s5692_s7 + $0x124] sm:$0xf] }
 0xb81   :  { %v1585_v7 = vmul.f32 %v1581_v4, %v1553_v3  ;;  %1994 = vmatpush.bf16.msra.mxu2 %v3689_v0  ;;  %2008 = vmatpush.bf16.msra.mxu3 %v3693_v2  ;;  %v3672_v3 = vld [vmem:[%s5692_s7 + $0x120] sm:$0xf]  ;;  %v4056_v4 = vld [vmem:[%s5692_s7 + $0x128] sm:$0xf0] }
 0xb82   :  { %v1584_v14 = vmul.f32 %v1580_v51, %v1552_v10  ;;  %v4057_v51 = vld [vmem:[%s5692_s7 + $0x130] sm:$0xf0] }
 0xb83   :  { %v1619_v8 = vpack.c.bf16 %v1585_v7, %v1583_v6  ;;  %v3673_v6 = vor.u32 %v4056_v4, %v3672_v3  ;;  %v3674_v7 = vld [vmem:[%s5692_s7 + $0x12c] sm:$0xf0] }
 0xb84   :  { %v4200_v9 = vpop.eup %4199 }
 0xb85   :  { %1729 = vmatmul.bf16.vlgmr.msrb.gmra.mxu3 %v1619_v8  ;;  %v1582_v13 = vadd.f32 1.0, %v4200_v9  ;;  %v3680_v8 = vld [vmem:[%s5692_s7 + $0x128] sm:$0xf]  ;;  %v3677_v9 = vor.u32 %v4055_v5, %v3674_v7  ;;  %1981 = vmatpush.bf16.msra.mxu1 %v3673_v6 }
 0xb86   :  { %v3681_v10 = vor.u32 %v4057_v51, %v3680_v8  ;;  %v4142_v51 = vld [vmem:[%s5722_s10 + $0x1] ss:$0 sm:$0xff] }
 0xb87   :  { %v1586_v15 = vmul.f32 %v1582_v13, %v1554_v11  ;;  %1995 = vmatpush.bf16.msra.mxu2 %v3677_v9  ;;  %v3660_v11 = vld [vmem:[%s5692_s7 + $0x108] sm:$0xf]  ;;  %v4053_v13 = vld [vmem:[%s5692_s7 + $0x110] sm:$0xf0] }
 0xb88   :  { %2009 = vmatpush.bf16.msra.mxu3 %v3681_v10 }
 0xb89   :  { %v1620_v36 = vpack.c.bf16 %v1586_v15, %v1584_v14  ;;  %v4052_v14 = vld [vmem:[%s5692_s7 + $0x10c] sm:$0xf]  ;;  %v3661_v15 = vor.u32 %v4053_v13, %v3660_v11 }
 0xb8b   :  { %1743 = vmatmul.bf16.vlgmr.msra.gmra.mxu0 %v1620_v36  ;;  %v3662_v36 = vld [vmem:[%s5692_s7 + $0x114] sm:$0xf0]  ;;  %1982 = vmatpush.bf16.msra.mxu1 %v3661_v15 }
 0xc08   :  { %v1730_v30 = vpop.f32.mrf.mxu3  ;;  %v1744_v16 = vpop.f32.mrf.mxu0 }
 0xc09   :  { %v1731_v54 = vadd.f32 %v4141_v33, %v1730_v30  ;;  %v4054_v30 = vld [vmem:[%s5692_s7 + $0x118] sm:$0xf0] }
 0xc0b   :  { %v1745_v17 = vadd.f32 %v1744_v16, %v1731_v54  ;;  %v3665_v16 = vor.u32 %v4052_v14, %v3662_v36  ;;  %v4143_v14 = vld [vmem:[#allocation7 + $0x1] ss:$0 sm:$0xff] }
 0xc0d   :  { %v5213_v18 = vadd.f32 %v1745_v17, %v5091_v49  ;;  %1996 = vmatpush.bf16.msra.mxu2 %v3665_v16  ;;  %v3648_v17 = vld [vmem:[%s5692_s7 + $0xf0] sm:$0xf] }
 0xc0f   :  { %1755 = vadd.xlane.f32.xlu0 %v5213_v18 }
 0xc10   :  { %v1732_v19 = vpop.f32.mrf.mxu3  ;;  %v1746_v22 = vpop.f32.mrf.mxu0 }
 0xc11   :  { %v1733_v20 = vadd.f32 %v4141_v33, %v1732_v19  ;;  %v3668_v33 = vld [vmem:[%s5692_s7 + $0x110] sm:$0xf]  ;;  %v4050_v19 = vld [vmem:[%s5692_s7 + $0xf8] sm:$0xf0] }
 0xc12   :  { %v3669_v54 = vor.u32 %v4054_v30, %v3668_v33 }
 0xc13   :  { %v1747_v23 = vadd.f32 %v1746_v22, %v1733_v20  ;;  %v4049_v20 = vld [vmem:[%s5692_s7 + $0xf4] sm:$0xf]  ;;  %v3649_v22 = vor.u32 %v4050_v19, %v3648_v17 }
 0xc14   :  { %2010 = vmatpush.bf16.msra.mxu3 %v3669_v54 }
 0xc15   :  { %v5217_v12 = vadd.f32 %v1747_v23, %v5089_v43  ;;  %v3650_v23 = vld [vmem:[%s5692_s7 + $0xfc] sm:$0xf0]  ;;  %1983 = vmatpush.bf16.msra.mxu1 %v3649_v22 }
 0xc17   :  { %v1757_v24 = vsel %vm383_vm1, %v5217_v12, 0.0 }
 0xc18   :  { %1758 = vadd.xlane.f32.xlu1 %v1757_v24  ;;  %v3656_v24 = vld [vmem:[%s5692_s7 + $0xf8] sm:$0xf] }
 0xc82   :  { %v1756_v26 = vpop.xlane.xlu0 %1755 }
 0xc83   :  { %v1760_v28 = vmul.f32 %v1756_v26, %v4762_v44  ;;  %v4051_v26 = vld [vmem:[%s5692_s7 + $0x100] sm:$0xf0] }
 0xc85   :  { %v5223_v21 = vsub.f32 %v5213_v18, %v1760_v28  ;;  %v3653_v28 = vor.u32 %v4049_v20, %v3650_v23 }
 0xc87   :  { %v1764_v49 = vmul.f32 %v5223_v21, %v5223_v21  ;;  %1997 = vmatpush.bf16.msra.mxu2 %v3653_v28 }
 0xc89   :  { %1766 = vadd.xlane.f32.xlu1 %v1764_v49  ;;  %v3657_v49 = vor.u32 %v4051_v26, %v3656_v24 }
 0xc8b   :  { %v1759_v29 = vpop.xlane.xlu1 %1758  ;;  %2011 = vmatpush.bf16.msra.mxu3 %v3657_v49 }
 0xc8c   :  { %v1761_v31 = vmul.f32 %v1759_v29, %v4762_v44 }
 0xc8e   :  { %v5229_v43 = vsub.f32 %v5217_v12, %v1761_v31  ;;  %v3636_v31 = vld [vmem:[%s5692_s7 + $0xd8] sm:$0xf] }
 0xc8f   :  { %2012 = vmatpush.bf16.msra.mxu3 %v3645_v41 }
 0xc90   :  { %v1765_v48 = vmul.f32 %v5229_v43, %v5229_v43 }
 0xc92   :  { %v1768_v32 = vsel %vm383_vm1, %v1765_v48, 0.0  ;;  %v4047_v48 = vld [vmem:[%s5692_s7 + $0xe0] sm:$0xf0] }
 0xc93   :  { %1769 = vadd.xlane.f32.xlu0 %v1768_v32  ;;  %v4046_v32 = vld [vmem:[%s5692_s7 + $0xdc] sm:$0xf]  ;;  %v3637_v35 = vor.u32 %v4047_v48, %v3636_v31  ;;  %2013 = vmatpush.bf16.msra.mxu3 %v3633_v58 }
 0xc94   :  { %v3641_v1 = vor.u32 %v4046_v32, %v3638_v50 }
 0xc95   :  { %1984 = vmatpush.bf16.msra.mxu1 %v3637_v35 }
 0xc96   :  { %1998 = vmatpush.bf16.msra.mxu2 %v3641_v1 }
 0xc99   :  { %1985 = vmatpush.bf16.msra.mxu1 %v3625_v53 }
 0xc9a   :  { %1999 = vmatpush.bf16.msra.mxu2 %v3629_v56 }
 0xcfc   :  { %v1767_v29 = vpop.xlane.xlu1 %1766 }
 0xcfd   :  { %v1771_v34 = vmul.f32 %v1767_v29, %v4762_v44 }
 0xcff   :  { %v1773_v52 = vadd.f32 1e-12, %v1771_v34 }
 0xd01   :  { %4201 = vrsqrt.f32 %v1773_v52  ;;  %vm1781_vm10 = vweird.f32 %v1773_v52 }
 0xd06   :  { %v1770_v59 = vpop.xlane.xlu0 %1769 }
 0xd07   :  { %v4202_v60 = vpop.eup %4201  ;;  %v1772_v61 = vmul.f32 %v1770_v59, %v4762_v44 }
 0xd08   :  { %v1776_v27 = vmul.f32 %v4202_v60, %v1773_v52  ;;  %vm1782_vm9 = vweird.f32 %v4202_v60 }
 0xd09   :  { %v1774_v45 = vadd.f32 1e-12, %v1772_v61  ;;  %vm1783_vm11 = vmor %vm1781_vm10, %vm1782_vm9 }
 0xd0a   :  { %v1777_v39 = vmul.f32 %v4202_v60, %v1776_v27 }
 0xd0b   :  { %4203 = vrsqrt.f32 %v1774_v45  ;;  %vm1791_vm0 = vweird.f32 %v1774_v45 }
 0xd0c   :  { %v1778_v62 = vmul.f32 0.5, %v1777_v39 }
 0xd0e   :  { %v1779_v63 = vsub.f32 1.5, %v1778_v62 }
 0xd10   :  { %v1780_v2 = vmul.f32 %v4202_v60, %v1779_v63 }
 0xd11   :  { %v4204_v0 = vpop.eup %4203 }
 0xd12   :  { %v1786_v3 = vmul.f32 %v4204_v0, %v1774_v45  ;;  %v1784_v5 = vsel %vm1783_vm11, %v4202_v60, %v1780_v2  ;;  %vm1792_vm12 = vweird.f32 %v4204_v0 }
 0xd13   :  { %v1795_v8 = vmul.f32 %v1784_v5, %v5223_v21  ;;  %vm1793_vm4 = vmor %vm1791_vm0, %vm1792_vm12  ;;  %v3621_v21 = vld [vmem:[%s5693_s8 + $0x3] sm:$0x7] }
 0xd14   :  { %v1787_v4 = vmul.f32 %v4204_v0, %v1786_v3  ;;  %v1844_v16 = vperm.slane %v3621_v21, 0  ;;  %v1845_v20 = vperm.slane %v3621_v21, 1  ;;  %v1846_v22 = vperm.slane %v3621_v21, 2 }
 0xd15   :  { %v1800_v13 = vmul.f32 %v4142_v51, %v1795_v8 }
 0xd16   :  { %v1788_v6 = vmul.f32 0.5, %v1787_v4 }
 0xd17   :  { %v1805_v36 = vadd.f32 %v4143_v14, %v1800_v13 }
 0xd18   :  { %v1789_v7 = vsub.f32 1.5, %v1788_v6 }
 0xd1a   :  { %v1790_v9 = vmul.f32 %v4204_v0, %v1789_v7 }
 0xd1c   :  { %v1794_v10 = vsel %vm1793_vm4, %v4204_v0, %v1790_v9 }
 0xd1d   :  { %v1796_v11 = vmul.f32 %v1794_v10, %v5229_v43 }
 0xd1f   :  { %v1801_v15 = vmul.f32 %v4142_v51, %v1796_v11 }
 0xd21   :  { %v1806_v33 = vadd.f32 %v4143_v14, %v1801_v15 }
 0xd23   :  { %v1840_v30 = vpack.c.bf16 %v1806_v33, %v1805_v36 }
 0xd25   :  { %1986 = vmatmul.bf16.vlgmr.msra.gmra.mxu1 %v1840_v30  ;;  %2000 = vmatmul.bf16.vlgmr.msra.gmra.mxu2 %v1840_v30 }
 0xd26   :  { %2014 = vmatmul.bf16.vlgmr.msra.gmra.mxu3 %v1840_v30 }
 0xda2   :  { %v1987_v54 = vpop.f32.mrf.mxu1 }
 0xda3   :  { %v1988_v17 = vadd.f32 %v1987_v54, %v1844_v16 }
 0xda5   :  { %v2020_v19 = vpack.c.bf16 %v1988_v17, %v1988_v17 }
 0xda7   :  { %v2096_v43 = vunpack.c.l.b16 %v2020_v19 }
 0xda8   :  { %v2001_v23 = vpop.f32.mrf.mxu2 }
 0xda9   :  { %v2002_v24 = vadd.f32 %v2001_v23, %v1845_v20  ;;  %v2015_v26 = vpop.f32.mrf.mxu3  ;;  %v5388_v28 = vpack.c.b16 %v2096_v43, %v2096_v43 }
 0xdaa   :  { %v2016_v49 = vadd.f32 %v2015_v26, %v1846_v22  ;;  %v1989_v29 = vpop.f32.mrf.mxu1 }
 0xdab   :  { %v2022_v31 = vpack.c.bf16 %v2002_v24, %v2002_v24  ;;  %v1990_v48 = vadd.f32 %v1989_v29, %v1844_v16  ;;  %2098 = vrot.lane.b32.xlu1 %v5388_v28, %s4547_s14 }
 0xdac   :  { %v2024_v32 = vpack.c.bf16 %v2016_v49, %v2016_v49 }
 0xdad   :  { %v2047_v34 = vsel %vm674_vm13, %v2022_v31, 0  ;;  %v2101_v35 = vunpack.c.l.b16 %v2022_v31  ;;  %v2021_v50 = vpack.c.bf16 %v1990_v48, %v1990_v48  ;;  %v4069_v31 = vld [vmem:[%s5694_s9 + $0x50] sm:$0xff]  ;;  %v4072_v48 = vld [vmem:[%s5694_s9 + $0x68] sm:$0xff] }
 0xdae   :  { %v2079_v38 = vand.u32 %v2024_v32, %v4932_v37  ;;  %2056 = vmatpush.bf16.xpose.msrb.mxu0 %v2047_v34  ;;  %v2138_v56 = vunpack.c.l.b16 %v2024_v32 }
 0xdaf   :  { %v2393_v40 = vunpack.c.l.b16 %v2021_v50  ;;  %v5394_v1 = vpack.c.b16 %v2101_v35, %v2101_v35 }
 0xdb0   :  { %v2003_v41 = vpop.f32.mrf.mxu2  ;;  %v5415_v51 = vpack.c.b16 %v2138_v56, %v2138_v56 }
 0xdb1   :  { %v5396_v42 = vpack.c.b16 %v2393_v40, %v2096_v43  ;;  %v2004_v46 = vadd.f32 %v2003_v41, %v1845_v20  ;;  %v2017_v25 = vpop.f32.mrf.mxu3  ;;  %2220 = vrot.lane.b32.xlu0 %v5394_v1, %s4541_s23  ;;  %2103 = vrot.lane.b32.xlu2 %v5394_v1, %s4547_s14 }
 0xdb2   :  { %v2018_v52 = vadd.f32 %v2017_v25, %v1846_v22  ;;  %v4068_v25 = vld [vmem:[%s5694_s9 + $0x48] sm:$0xff] }
 0xdb3   :  { %v2023_v53 = vpack.c.bf16 %v2004_v46, %v2004_v46  ;;  %v4071_v46 = vld [vmem:[%s5694_s9 + $0x60] sm:$0xff] }
 0xdb4   :  { %v2025_v55 = vpack.c.bf16 %v2018_v52, %v2018_v52  ;;  %v4067_v52 = vld [vmem:[%s5694_s9 + $0x40] sm:$0xff] }
 0xdb5   :  { %v2404_v47 = vunpack.c.l.b16 %v2023_v53  ;;  %3734 = vmatmul.msk.bf16.vlgmr.msrb.gmra.mxu0 %vm674_vm13, %v2020_v19 }
 0xdb6   :  { %2088 = vmatpush.bf16.msra.mxu0 %v2079_v38  ;;  %v2447_v57 = vunpack.c.l.b16 %v2025_v55 }
 0xdb7   :  { %v5403_v58 = vpack.c.b16 %v2404_v47, %v2101_v35 }
 0xdb8   :  { %v5405_v59 = vpack.c.b16 %v2447_v57, %v2138_v56 }
 0xdb9   :  { %2218 = vrot.lane.b32.xlu2 %v5388_v28, %s4541_s23  ;;  %v2407_v53 = vshrl.u32 %v5403_v58, 16  ;;  %v2410_v55 = vshll.u32 %v5403_v58, 16 }
 0xdba   :  { %2211 = vmatpush.bf16.msrb.mxu0 %v4068_v25 }
 0xdbb   :  { %v2409_v47 = vrot.slane %v2407_v53, 2  ;;  %v2412_v56 = vrot.slane %v2410_v55, 3 }
 0xdbd   :  { %v5453_v57 = vor.u32 %v2412_v56, %v2409_v47 }
 0xdbe   :  { %2212 = vmatpush.bf16.msrb.mxu0 %v4067_v52 }
 0xe0b   :  { %v2104_v60 = vpop.permute.xlu2 %2103 }
 0xe0c   :  { %v2109_v61 = vsel %vm674_vm13, %v2104_v60, 0 }
 0xe0d   :  { %2118 = vmatpush.bf16.xpose.msrb.mxu1 %v2109_v61 }
 0xe13   :  { %v2219_v62 = vpop.permute.xlu2 %2218 }
 0xe1d   :  { %v2099_v27 = vpop.permute.xlu1 %2098 }
 0xe1e   :  { %3736 = vmatmul.msk.bf16.vlgmr.msrb.gmra.mxu1 %vm674_vm13, %v2099_v27  ;;  %v2418_v27 = vsel %vm674_vm13, %v5453_v57, 0 }
 0xe23   :  { %v2221_v45 = vpop.permute.xlu0 %2220 }
 0xe24   :  { %v2226_v39 = vsel %vm674_vm13, %v2221_v45, 0 }
 0xe25   :  { %2235 = vmatpush.bf16.xpose.msra.mxu1 %v2226_v39 }
 0xe2e   :  { %3756 = vmatmul.msk.bf16.vlgmr.msra.gmra.mxu1 %vm674_vm13, %v2219_v62 }
 0xe32   :  { %v2058_v63 = vpop.f32.mrf.mxu0 }
 0xe33   :  { %v2062_v19 = vmul.f32 0.17677669, %v2058_v63 }
 0xe35   :  { %v2063_v20 = vsel %vm695_vm14, %v2062_v19, -inf }
 0xe3a   :  { %v2060_v0 = vpop.f32.mrf.mxu0 }
 0xe9b   :  { %v2120_v2 = vpop.f32.mrf.mxu1 }
 0xe9c   :  { %v2124_v3 = vmul.f32 0.17677669, %v2120_v2 }
 0xe9e   :  { %v2125_v4 = vsel %vm695_vm14, %v2124_v3, -inf }
 0xe9f   :  { %2126 = vmax.xlane.f32.xlu0 %v2125_v4 }
 0xea3   :  { %v2122_v5 = vpop.f32.mrf.mxu1 }
 0xeab   :  { %v2237_v6 = vpop.f32.mrf.mxu1 }
 0xeac   :  { %v2241_v7 = vmul.f32 0.17677669, %v2237_v6  ;;  %v2396_v6 = vshrl.u32 %v5396_v42, 16 }
 0xeae   :  { %v2242_v8 = vsel %vm695_vm14, %v2241_v7, -inf }
 0xeaf   :  { %2243 = vmax.xlane.f32.xlu1 %v2242_v8  ;;  %v2398_v8 = vrot.slane %v2396_v6, 2 }
 0xeb3   :  { %2140 = vrot.lane.b32.xlu0 %v5415_v51, %s4547_s14  ;;  %v2239_v9 = vpop.f32.mrf.mxu1 }
 0xf12   :  { %v2127_v10 = vpop.xlane.xlu0 %2126 }
 0xf13   :  { %v2128_v11 = vsub.f32 %v2124_v3, %v2127_v10 }
 0xf15   :  { %v2129_v13 = vmul.f32 1.442695, %v2128_v11 }
 0xf17   :  { %4205 = vpow2.f32 %v2129_v13  ;;  %v2450_v13 = vshrl.u32 %v5405_v59, 16 }
 0xf1d   :  { %v4206_v14 = vpop.eup %4205 }
 0xf1e   :  { %v2131_v15 = vsel %vm695_vm14, %v4206_v14, 0.0 }
 0xf1f   :  { %2132 = vadd.xlane.f32.xlu2 %v2131_v15  ;;  %v2452_v15 = vrot.slane %v2450_v13, 2 }
 0xf22   :  { %v2244_v36 = vpop.xlane.xlu1 %2243 }
 0xf23   :  { %v2245_v33 = vsub.f32 %v2241_v7, %v2244_v36  ;;  %v2399_v7 = vshll.u32 %v5396_v42, 16 }
 0xf25   :  { %v2246_v30 = vmul.f32 1.442695, %v2245_v33  ;;  %v2141_v21 = vpop.permute.xlu0 %2140  ;;  %v2401_v9 = vrot.slane %v2399_v7, 3  ;;  %v5506_v7 = vld [vmem:[%s5694_s9 + $0x78] sm:$0xff] }
 0xf26   :  { %v2146_v16 = vand.u32 %v2141_v21, %v4932_v37 }
 0xf27   :  { %4207 = vpow2.f32 %v2246_v30  ;;  %v2402_v10 = vor.u32 %v2401_v9, %v2398_v8  ;;  %v5512_v8 = vld [vmem:[%s5694_s9 + $0x70] sm:$0xff] }
 0xf28   :  { %2155 = vmatpush.bf16.msrb.mxu2 %v2146_v16 }
 0xf2d   :  { %v4208_v54 = vpop.eup %4207 }
 0xf2e   :  { %v2248_v17 = vsel %vm695_vm14, %v4208_v54, 0.0 }
 0xf2f   :  { %2249 = vadd.xlane.f32.xlu1 %v2248_v17 }
 0xf37   :  { %2254 = vrot.lane.b32.xlu2 %v5415_v51, %s4541_s23  ;;  %2064 = vmax.xlane.f32.xlu1 %v2063_v20 }
 0xf3f   :  { %2305 = vrot.lane.b32.xlu2 %v5388_v28, %s4534_s28  ;;  %v4070_v28 = vld [vmem:[%s5694_s9 + $0x58] sm:$0xff] }
 0xf40   :  { %2183 = vmatpush.bf16.msrb.mxu3 %v4070_v28 }
 0xf44   :  { %2184 = vmatpush.bf16.msrb.mxu3 %v4069_v31 }
 0xf48   :  { %2297 = vmatpush.bf16.msra.mxu3 %v4072_v48 }
 0xf4c   :  { %2298 = vmatpush.bf16.msra.mxu3 %v4071_v46 }
 0xf50   :  { %2307 = vrot.lane.b32.xlu1 %v5394_v1, %s4534_s28 }
 0xf92   :  { %v2133_v22 = vpop.xlane.xlu2 %2132 }
 0xf93   :  { %4209 = vrcp.f32 %v2133_v22 }
 0xf99   :  { %v4210_v43 = vpop.eup %4209 }
 0xf9a   :  { %v2135_v23 = vmul.f32 %v4210_v43, %v4206_v14  ;;  %v2255_v24 = vpop.permute.xlu2 %2254  ;;  %v2453_v14 = vshll.u32 %v5405_v59, 16 }
 0xf9b   :  { %v2260_v26 = vand.u32 %v2255_v24, %v4932_v37 }
 0xf9c   :  { %v2136_v49 = vpack.c.bf16 %v2135_v23, %v2135_v23  ;;  %v2455_v36 = vrot.slane %v2453_v14, 3 }
 0xf9d   :  { %2269 = vmatpush.bf16.msra.mxu2 %v2260_v26 }
 0xf9e   :  { %3737 = vmatmul.msk.bf16.vlgmr.msrb.gmra.mxu2 %vm708_vm15, %v2136_v49  ;;  %v5468_v30 = vor.u32 %v2455_v36, %v2452_v15 }
 0xfa0   :  { %v2461_v16 = vand.u32 %v5468_v30, %v4932_v37 }
 0xfa1   :  { %2384 = vmatpush.bf16.msrb.mxu2 %v5506_v7 }
 0xfa2   :  { %v2250_v29 = vpop.xlane.xlu1 %2249  ;;  %v2306_v20 = vpop.permute.xlu2 %2305 }
 0xfa3   :  { %4211 = vrcp.f32 %v2250_v29 }
 0xfa5   :  { %2385 = vmatpush.bf16.msrb.mxu2 %v5512_v8 }
 0xfa9   :  { %v4212_v32 = vpop.eup %4211 }
 0xfaa   :  { %v2252_v34 = vmul.f32 %v4212_v32, %v4208_v54  ;;  %v2065_v35 = vpop.xlane.xlu1 %2064 }
 0xfab   :  { %v2066_v50 = vsub.f32 %v2062_v19, %v2065_v35 }
 0xfac   :  { %v2253_v38 = vpack.c.bf16 %v2252_v34, %v2252_v34 }
 0xfad   :  { %v2067_v40 = vmul.f32 1.442695, %v2066_v50 }
 0xfae   :  { %3757 = vmatmul.msk.bf16.vlgmr.msra.gmra.mxu2 %vm708_vm15, %v2253_v38 }
 0xfaf   :  { %4213 = vpow2.f32 %v2067_v40 }
 0xfb5   :  { %v4214_v1 = vpop.eup %4213 }
 0xfb6   :  { %v2069_v41 = vsel %vm695_vm14, %v4214_v1, 0.0 }
 0xfb7   :  { %2070 = vadd.xlane.f32.xlu0 %v2069_v41 }
 0xfc2   :  { %v2308_v58 = vpop.permute.xlu1 %2307 }
 0xfc3   :  { %v2313_v4 = vsel %vm674_vm13, %v2308_v58, 0 }
0x1021   :  { %v2157_v60 = vpop.f32.mrf.mxu2 }
0x1022   :  { %v2161_v61 = vpack.c.bf16 %v2157_v60, %v2157_v60 }
0x1024   :  { %3746 = vmatmul.msk.bf16.vlgmr.msrb.gmra.mxu3 %vm674_vm13, %v2161_v61 }
0x1025   :  { %2427 = vmatpush.bf16.xpose.msrb.mxu3 %v2418_v27 }
0x1029   :  { %v2159_v45 = vpop.f32.mrf.mxu2 }
0x102a   :  { %v2071_v39 = vpop.xlane.xlu0 %2070 }
0x102b   :  { %4215 = vrcp.f32 %v2071_v39 }
0x1031   :  { %v4216_v62 = vpop.eup %4215  ;;  %v2271_v63 = vpop.f32.mrf.mxu2 }
0x1032   :  { %v2073_v0 = vmul.f32 %v4216_v62, %v4214_v1  ;;  %v2275_v2 = vpack.c.bf16 %v2271_v63, %v2271_v63 }
0x1034   :  { %v2074_v3 = vpack.c.bf16 %v2073_v0, %v2073_v0  ;;  %3766 = vmatmul.msk.bf16.vlgmr.msra.gmra.mxu3 %vm674_vm13, %v2275_v2 }
0x1035   :  { %2544 = vmatpush.bf16.msra.mxu3 %v4070_v28 }
0x1036   :  { %3735 = vmatmul.msk.bf16.vlgmr.msra.gmra.mxu0 %vm708_vm15, %v2074_v3 }
0x1037   :  { %2322 = vmatpush.bf16.xpose.msra.mxu0 %v2313_v4 }
0x1039   :  { %v2273_v5 = vpop.f32.mrf.mxu2  ;;  %2545 = vmatpush.bf16.msra.mxu3 %v4069_v31 }
0x1044   :  { %3778 = vmatmul.msk.bf16.vlgmr.msrb.gmra.mxu3 %vm674_vm13, %v2402_v10 }
0x1045   :  { %2634 = vmatpush.bf16.msrb.mxu3 %v4072_v48 }
0x1049   :  { %2635 = vmatpush.bf16.msrb.mxu3 %v4071_v46 }
0x10a7   :  { %v5464_v11 = vpop.f32.mrf.mxu3 }
0x10af   :  { %v2188_v33 = vpop.f32.mrf.mxu3 }
0x10b3   :  { %v2090_v21 = vpop.f32.mrf.mxu0 }
0x10b4   :  { %v2094_v42 = vpack.c.bf16 %v2090_v21, %v2090_v21 }
0x10b6   :  { %3755 = vmatmul.msk.bf16.vlgmr.msrb.gmra.mxu0 %vm674_vm13, %v2094_v42 }
0x10b7   :  { %2470 = vmatpush.bf16.msrb.mxu0 %v2461_v16  ;;  %v5473_v54 = vpop.f32.mrf.mxu3 }
0x10bb   :  { %v2092_v17 = vpop.f32.mrf.mxu0 }
0x10bf   :  { %v2302_v19 = vpop.f32.mrf.mxu3 }
0x10c6   :  { %3767 = vmatmul.msk.bf16.vlgmr.msra.gmra.mxu0 %vm674_vm13, %v2306_v20 }
0x10c7   :  { %v2429_v59 = vpop.f32.mrf.mxu3  ;;  %2560 = vmatpush.bf16.msra.mxu0 %v4068_v25 }
0x10c8   :  { %v2433_v22 = vmul.f32 0.17677669, %v2429_v59 }
0x10ca   :  { %v2434_v43 = vsel %vm695_vm14, %v2433_v22, -inf }
0x10cb   :  { %2435 = vmax.xlane.f32.xlu2 %v2434_v43  ;;  %2561 = vmatpush.bf16.msra.mxu0 %v4067_v52 }
0x10cf   :  { %v2431_v23 = vpop.f32.mrf.mxu3 }
0x10e3   :  { %2479 = vrot.lane.b32.xlu2 %v5453_v57, %s4547_s14 }
0x10eb   :  { %2567 = vrot.lane.b32.xlu2 %v2402_v10, %s4541_s23 }
0x10f3   :  { %2642 = vrot.lane.b32.xlu2 %v2402_v10, %s4534_s28 }
0x1133   :  { %v5481_v24 = vpop.f32.mrf.mxu0 }
0x113b   :  { %v2216_v26 = vpop.f32.mrf.mxu0 }
0x113c   :  { %v2215_v26 = vadd.f32 %v5481_v24, %v5464_v11 }
0x113e   :  { %v2436_v49 = vpop.xlane.xlu2 %2435 }
0x113f   :  { %v2437_v29 = vsub.f32 %v2433_v22, %v2436_v49  ;;  %v2304_v49 = vadd.f32 %v5473_v54, %v2215_v26 }
0x1141   :  { %v2438_v28 = vmul.f32 1.442695, %v2437_v29 }
0x1143   :  { %4217 = vpow2.f32 %v2438_v28  ;;  %v2324_v31 = vpop.f32.mrf.mxu0 }
0x1144   :  { %v2328_v48 = vmul.f32 0.17677669, %v2324_v31 }
0x1146   :  { %v2329_v32 = vsel %vm695_vm14, %v2328_v48, -inf  ;;  %v2480_v27 = vpop.permute.xlu2 %2479 }
0x1147   :  { %2330 = vmax.xlane.f32.xlu0 %v2329_v32 }
0x1149   :  { %v4218_v34 = vpop.eup %4217 }
0x114a   :  { %v2440_v35 = vsel %vm695_vm14, %v4218_v34, 0.0 }
0x114b   :  { %2441 = vadd.xlane.f32.xlu1 %v2440_v35  ;;  %v2326_v50 = vpop.f32.mrf.mxu0 }
0x114e   :  { %v2568_v58 = vpop.permute.xlu2 %2567 }
0x1156   :  { %v2643_v6 = vpop.permute.xlu2 %2642 }
0x1164   :  { %2477 = vrot.lane.b32.xlu1 %v2402_v10, %s4547_s14 }
0x11ba   :  { %v2331_v38 = vpop.xlane.xlu0 %2330 }
0x11bb   :  { %v2332_v40 = vsub.f32 %v2328_v48, %v2331_v38 }
0x11bd   :  { %v2333_v1 = vmul.f32 1.442695, %v2332_v40 }
0x11be   :  { %v2442_v41 = vpop.xlane.xlu1 %2441 }
0x11bf   :  { %4219 = vpow2.f32 %v2333_v1 }
0x11c0   :  { %4221 = vrcp.f32 %v2442_v41 }
0x11c5   :  { %v4220_v46 = vpop.eup %4219 }
0x11c6   :  { %v4222_v25 = vpop.eup %4221  ;;  %v2335_v52 = vsel %vm695_vm14, %v4220_v46, 0.0 }
0x11c7   :  { %v2444_v53 = vmul.f32 %v4222_v25, %v4218_v34  ;;  %2336 = vadd.xlane.f32.xlu0 %v2335_v52 }
0x11c9   :  { %v2445_v55 = vpack.c.bf16 %v2444_v53, %v2444_v53 }
0x11cb   :  { %3779 = vmatmul.msk.bf16.vlgmr.msrb.gmra.mxu0 %vm708_vm15, %v2445_v55 }
0x11d6   :  { %v2478_v5 = vpop.permute.xlu1 %2477 }
0x11db   :  { %2341 = vrot.lane.b32.xlu0 %v5415_v51, %s4534_s28  ;;  %v2485_v51 = vsel %vm674_vm13, %v2480_v27, 0 }
0x11e3   :  { %2569 = vrot.lane.b32.xlu0 %v5453_v57, %s4541_s23 }
0x11eb   :  { %2644 = vrot.lane.b32.xlu0 %v5453_v57, %s4534_s28 }
0x123a   :  { %v2337_v47 = vpop.xlane.xlu0 %2336 }
0x123b   :  { %4223 = vrcp.f32 %v2337_v47 }
0x1241   :  { %v4224_v61 = vpop.eup %4223 }
0x1242   :  { %v2339_v45 = vmul.f32 %v4224_v61, %v4220_v46 }
0x1244   :  { %v2340_v0 = vpack.c.bf16 %v2339_v45, %v2339_v45 }
0x1248   :  { %v2472_v56 = vpop.f32.mrf.mxu0 }
0x1249   :  { %v2476_v60 = vpack.c.bf16 %v2472_v56, %v2472_v56 }
0x124b   :  { %3783 = vmatmul.msk.bf16.vlgmr.msra.gmra.mxu0 %vm674_vm13, %v2476_v60 }
0x124d   :  { %v2342_v39 = vpop.permute.xlu0 %2341 }
0x124e   :  { %v2347_v62 = vand.u32 %v2342_v39, %v4932_v37 }
0x1250   :  { %v2474_v63 = vpop.f32.mrf.mxu0  ;;  %2356 = vmatpush.bf16.msrb.mxu1 %v2347_v62 }
0x1253   :  { %3768 = vmatmul.msk.bf16.vlgmr.msrb.gmra.mxu1 %vm708_vm15, %v2340_v0 }
0x1254   :  { %2494 = vmatpush.bf16.xpose.msra.mxu1 %v2485_v51 }
0x1255   :  { %v2570_v57 = vpop.permute.xlu0 %2569 }
0x1256   :  { %v2575_v2 = vsel %vm674_vm13, %v2570_v57, 0 }
0x125c   :  { %2584 = vmatpush.bf16.xpose.msrb.mxu1 %v2575_v2 }
0x125d   :  { %v2645_v3 = vpop.permute.xlu0 %2644 }
0x125e   :  { %v2650_v4 = vsel %vm674_vm13, %v2645_v3, 0 }
0x125f   :  { %2659 = vmatpush.bf16.xpose.msrb.mxu0 %v2650_v4 }
0x1263   :  { %3780 = vmatmul.msk.bf16.vlgmr.msra.gmra.mxu1 %vm674_vm13, %v2478_v5 }
0x1266   :  { %3787 = vmatmul.msk.bf16.vlgmr.msrb.gmra.mxu0 %vm674_vm13, %v2643_v6 }
0x1273   :  { %3784 = vmatmul.msk.bf16.vlgmr.msrb.gmra.mxu1 %vm674_vm13, %v2568_v58 }
0x12c8   :  { %v5515_v9 = vpop.f32.mrf.mxu0 }
0x12d0   :  { %v2565_v10 = vpop.f32.mrf.mxu0  ;;  %v2358_v13 = vpop.f32.mrf.mxu1 }
0x12d1   :  { %v2362_v14 = vpack.c.bf16 %v2358_v13, %v2358_v13 }
0x12d3   :  { %3777 = vmatmul.msk.bf16.vlgmr.msrb.gmra.mxu2 %vm674_vm13, %v2362_v14 }
0x12d8   :  { %v2360_v15 = vpop.f32.mrf.mxu1 }
0x12e0   :  { %v2496_v36 = vpop.f32.mrf.mxu1 }
0x12e1   :  { %v2500_v33 = vmul.f32 0.17677669, %v2496_v36 }
0x12e3   :  { %v2661_v21 = vpop.f32.mrf.mxu0  ;;  %v2501_v42 = vsel %vm695_vm14, %v2500_v33, -inf }
0x12e4   :  { %v2665_v16 = vmul.f32 0.17677669, %v2661_v21  ;;  %2502 = vmax.xlane.f32.xlu1 %v2501_v42 }
0x12e6   :  { %v2666_v17 = vsel %vm695_vm14, %v2665_v16, -inf }
0x12e7   :  { %2667 = vmax.xlane.f32.xlu2 %v2666_v17 }
0x12e8   :  { %v2498_v19 = vpop.f32.mrf.mxu1 }
0x12eb   :  { %v2663_v20 = vpop.f32.mrf.mxu0 }
0x12ec   :  { %v4144_v20 = vld [vmem:[#allocation8 + $0x1] ss:$0 sm:$0xff] }
0x12f0   :  { %v2586_v59 = vpop.f32.mrf.mxu1 }
0x12f1   :  { %v2590_v22 = vmul.f32 0.17677669, %v2586_v59 }
0x12f3   :  { %v2591_v43 = vsel %vm695_vm14, %v2590_v22, -inf }
0x12f4   :  { %2592 = vmax.xlane.f32.xlu0 %v2591_v43 }
0x12f8   :  { %v2588_v23 = vpop.f32.mrf.mxu1 }
0x1308   :  { %2513 = vrot.lane.b32.xlu0 %v5468_v30, %s4547_s14 }
0x1356   :  { %v2387_v29 = vpop.f32.mrf.mxu2 }
0x1357   :  { %v5526_v28 = vadd.f32 %v2387_v29, %v2304_v49  ;;  %v2503_v31 = vpop.xlane.xlu1 %2502 }
0x1358   :  { %v2504_v48 = vsub.f32 %v2500_v33, %v2503_v31 }
0x135a   :  { %v2505_v32 = vmul.f32 1.442695, %v2504_v48  ;;  %v2668_v38 = vpop.xlane.xlu2 %2667 }
0x135b   :  { %v2669_v41 = vsub.f32 %v2665_v16, %v2668_v38  ;;  %v3865_v38 = vld [vmem:[%s5698_s13 + $0xf0] sm:$0xf] }
0x135c   :  { %4225 = vpow2.f32 %v2505_v32 }
0x135d   :  { %v2670_v11 = vmul.f32 1.442695, %v2669_v41 }
0x135e   :  { %v2389_v34 = vpop.f32.mrf.mxu2 }
0x1362   :  { %v4226_v35 = vpop.eup %4225 }
0x1363   :  { %v2507_v50 = vsel %vm695_vm14, %v4226_v35, 0.0 }
0x1364   :  { %2508 = vadd.xlane.f32.xlu1 %v2507_v50 }
0x1367   :  { %v2593_v40 = vpop.xlane.xlu0 %2592 }
0x1368   :  { %v2594_v1 = vsub.f32 %v2590_v22, %v2593_v40  ;;  %v4090_v40 = vld [vmem:[%s5698_s13 + $0xf4] sm:$0xf0] }
0x1369   :  { %v3866_v41 = vor.u32 %v4090_v40, %v3865_v38 }
0x136a   :  { %v2595_v46 = vmul.f32 1.442695, %v2594_v1  ;;  %v4089_v1 = vld [vmem:[%s5698_s13 + $0xf4] sm:$0xf] }
0x136c   :  { %4227 = vpow2.f32 %v2595_v46  ;;  %v3867_v46 = vld [vmem:[%s5698_s13 + $0xf8] sm:$0xf0] }
0x136d   :  { %4229 = vpow2.f32 %v2670_v11  ;;  %v3870_v11 = vor.u32 %v4089_v1, %v3867_v46 }
0x136f   :  { %2905 = vmatpush.bf16.msra.mxu0 %v3870_v11  ;;  %v4145_v11 = vld [vmem:[%s5696_s11 + $0x1] ss:$0 sm:$0xff] }
0x1372   :  { %v4228_v54 = vpop.eup %4227 }
0x1373   :  { %v2597_v24 = vsel %vm695_vm14, %v4228_v54, 0.0  ;;  %v4230_v25 = vpop.eup %4229 }
0x1374   :  { %2598 = vadd.xlane.f32.xlu2 %v2597_v24  ;;  %v2672_v55 = vsel %vm695_vm14, %v4230_v25, 0.0  ;;  %v4088_v24 = vld [vmem:[%s5698_s13 + $0xe4] sm:$0xf0] }
0x137a   :  { %v2514_v52 = vpop.permute.xlu0 %2513 }
0x137b   :  { %v2519_v53 = vand.u32 %v2514_v52, %v4932_v37 }
0x137c   :  { %2673 = vadd.xlane.f32.xlu2 %v2672_v55 }
0x137d   :  { %2603 = vrot.lane.b32.xlu1 %v5468_v30, %s4541_s23  ;;  %2528 = vmatpush.bf16.msra.mxu2 %v2519_v53  ;;  %v3859_v53 = vld [vmem:[%s5698_s13 + $0xe8] sm:$0xf0] }
0x1394   :  { %2678 = vrot.lane.b32.xlu2 %v5468_v30, %s4534_s28 }
0x13d7   :  { %v2509_v47 = vpop.xlane.xlu1 %2508 }
0x13d8   :  { %4231 = vrcp.f32 %v2509_v47  ;;  %v3849_v47 = vld [vmem:[%s5698_s13 + $0xd0] sm:$0xf] }
0x13de   :  { %v4232_v56 = vpop.eup %4231 }
0x13df   :  { %v2511_v60 = vmul.f32 %v4232_v56, %v4226_v35  ;;  %v4086_v56 = vld [vmem:[%s5698_s13 + $0xd4] sm:$0xf0] }
0x13e1   :  { %v2512_v61 = vpack.c.bf16 %v2511_v60, %v2511_v60  ;;  %v4085_v60 = vld [vmem:[%s5698_s13 + $0xd4] sm:$0xf] }
0x13e3   :  { %3781 = vmatmul.msk.bf16.vlgmr.msra.gmra.mxu2 %vm708_vm15, %v2512_v61  ;;  %v3850_v61 = vor.u32 %v4086_v56, %v3849_v47 }
0x13e7   :  { %v2599_v27 = vpop.xlane.xlu2 %2598 }
0x13e8   :  { %4233 = vrcp.f32 %v2599_v27  ;;  %v3851_v27 = vld [vmem:[%s5698_s13 + $0xd8] sm:$0xf0] }
0x13ee   :  { %v4234_v45 = vpop.eup %4233 }
0x13ef   :  { %v2601_v39 = vmul.f32 %v4234_v45, %v4228_v54  ;;  %v2604_v62 = vpop.permute.xlu1 %2603  ;;  %v2674_v51 = vpop.xlane.xlu2 %2673  ;;  %v3857_v54 = vld [vmem:[%s5698_s13 + $0xe0] sm:$0xf]  ;;  %v3854_v45 = vor.u32 %v4085_v60, %v3851_v27 }
0x13f0   :  { %v2609_v63 = vand.u32 %v2604_v62, %v4932_v37  ;;  %4235 = vrcp.f32 %v2674_v51  ;;  %v3858_v52 = vor.u32 %v4088_v24, %v3857_v54  ;;  %v4084_v62 = vld [vmem:[%s5698_s13 + $0xc4] sm:$0xf0]  ;;  %v4083_v51 = vld [vmem:[%s5698_s13 + $0xc4] sm:$0xf] }
0x13f1   :  { %v2602_v0 = vpack.c.bf16 %v2601_v39, %v2601_v39  ;;  %v3841_v39 = vld [vmem:[%s5698_s13 + $0xc0] sm:$0xf] }
0x13f2   :  { %2618 = vmatpush.bf16.msrb.mxu2 %v2609_v63  ;;  %v3842_v63 = vor.u32 %v4084_v62, %v3841_v39  ;;  %v4105_v39 = vld [vmem:[#allocation13 + $0xf0] sm:$0xff]  ;;  %v4098_v62 = vld [vmem:[#allocation13 + $0xb8] sm:$0xff] }
0x13f5   :  { %3785 = vmatmul.msk.bf16.vlgmr.msrb.gmra.mxu2 %vm708_vm15, %v2602_v0  ;;  %v3843_v0 = vld [vmem:[%s5698_s13 + $0xc8] sm:$0xf0] }
0x13f6   :  { %2709 = vmatpush.bf16.msra.mxu2 %v5506_v7  ;;  %v4236_v30 = vpop.eup %4235 }
0x13f7   :  { %v2676_v57 = vmul.f32 %v4236_v30, %v4230_v25  ;;  %v2679_v2 = vpop.permute.xlu2 %2678  ;;  %v4087_v25 = vld [vmem:[%s5698_s13 + $0xe4] sm:$0xf]  ;;  %v3846_v30 = vor.u32 %v4083_v51, %v3843_v0  ;;  %v4104_v51 = vld [vmem:[#allocation13 + $0xe8] sm:$0xff] }
0x13f8   :  { %v2684_v58 = vand.u32 %v2679_v2, %v4932_v37  ;;  %v3862_v55 = vor.u32 %v4087_v25, %v3859_v53  ;;  %v4082_v2 = vld [vmem:[%s5698_s13 + $0xb4] sm:$0xf0]  ;;  %v4146_v25 = vld [vmem:[#allocation10 + $0x1] ss:$0 sm:$0xff] }
0x13f9   :  { %v2677_v3 = vpack.c.bf16 %v2676_v57, %v2676_v57  ;;  %v3833_v57 = vld [vmem:[%s5698_s13 + $0xb0] sm:$0xf]  ;;  %v4102_v0 = vld [vmem:[#allocation13 + $0xd8] sm:$0xff] }
0x13fa   :  { %2710 = vmatpush.bf16.msra.mxu2 %v5512_v8  ;;  %2693 = vmatpush.bf16.msra.mxu1 %v2684_v58  ;;  %v4081_v58 = vld [vmem:[%s5698_s13 + $0xb4] sm:$0xf] }
0x13fb   :  { %2906 = vmatpush.bf16.msra.mxu0 %v3862_v55 }
0x13fd   :  { %3788 = vmatmul.msk.bf16.vlgmr.msra.gmra.mxu1 %vm708_vm15, %v2677_v3  ;;  %v3834_v3 = vor.u32 %v4082_v2, %v3833_v57  ;;  %v4101_v57 = vld [vmem:[#allocation13 + $0xd0] sm:$0xff]  ;;  %v4094_v2 = vld [vmem:[#allocation13 + $0x98] sm:$0xff] }
0x13fe   :  { %3091 = vmatpush.bf16.msrb.mxu1 %v4098_v62 }
0x13ff   :  { %2907 = vmatpush.bf16.msra.mxu0 %v3854_v45  ;;  %v4106_v45 = vld [vmem:[#allocation13 + $0xf8] sm:$0xff] }
0x1400   :  { %3104 = vmatpush.bf16.msrb.mxu2 %v4106_v45 }
0x1403   :  { %2908 = vmatpush.bf16.msra.mxu0 %v3846_v30  ;;  %v4095_v30 = vld [vmem:[#allocation13 + $0xa0] sm:$0xff] }
0x1404   :  { %3105 = vmatpush.bf16.msrb.mxu2 %v4105_v39 }
0x1408   :  { %3106 = vmatpush.bf16.msrb.mxu2 %v4104_v51  ;;  %v4147_v51 = vld [vmem:[#allocation14 + $0x1] ss:$0 sm:$0xff] }
0x1466   :  { %v2530_v4 = vpop.f32.mrf.mxu2 }
0x1467   :  { %v2534_v5 = vpack.c.bf16 %v2530_v4, %v2530_v4  ;;  %v3835_v4 = vld [vmem:[%s5698_s13 + $0xb8] sm:$0xf0] }
0x1469   :  { %3782 = vmatmul.msk.bf16.vlgmr.msra.gmra.mxu3 %vm674_vm13, %v2534_v5  ;;  %v3838_v5 = vor.u32 %v4081_v58, %v3835_v4  ;;  %v2805_v58 = vld [vmem:[#allocation11 + $0x2] sm:$0x3]  ;;  %v4093_v4 = vld [vmem:[#allocation13 + $0x90] sm:$0xff] }
0x146a   :  { %2891 = vmatpush.bf16.msra.mxu3 %v3866_v41 }
0x146b   :  { %2909 = vmatpush.bf16.msra.mxu0 %v3838_v5  ;;  %v2808_v5 = vperm.slane %v2805_v58, 1 }
0x146e   :  { %v2532_v6 = vpop.f32.mrf.mxu2  ;;  %2892 = vmatpush.bf16.msra.mxu3 %v3858_v52 }
0x146f   :  { %v3825_v6 = vld [vmem:[%s5698_s13 + $0xa0] sm:$0xf] }
0x1472   :  { %2893 = vmatpush.bf16.msra.mxu3 %v3850_v61 }
0x1476   :  { %2894 = vmatpush.bf16.msra.mxu3 %v3842_v63  ;;  %v4097_v63 = vld [vmem:[#allocation13 + $0xb0] sm:$0xff] }
0x1477   :  { %3092 = vmatpush.bf16.msrb.mxu1 %v4097_v63 }
0x1478   :  { %v2620_v10 = vpop.f32.mrf.mxu2 }
0x1479   :  { %v2624_v7 = vpack.c.bf16 %v2620_v10, %v2620_v10  ;;  %v4080_v10 = vld [vmem:[%s5698_s13 + $0xa4] sm:$0xf0] }
0x147a   :  { %v2695_v13 = vpop.f32.mrf.mxu1  ;;  %2895 = vmatpush.bf16.msra.mxu3 %v3834_v3  ;;  %v4100_v3 = vld [vmem:[#allocation13 + $0xc8] sm:$0xff] }
0x147b   :  { %v2699_v14 = vpack.c.bf16 %v2695_v13, %v2695_v13  ;;  %3786 = vmatmul.msk.bf16.vlgmr.msrb.gmra.mxu3 %vm674_vm13, %v2624_v7  ;;  %v4079_v7 = vld [vmem:[%s5698_s13 + $0xa4] sm:$0xf]  ;;  %v3826_v13 = vor.u32 %v4080_v10, %v3825_v6  ;;  %v4099_v6 = vld [vmem:[#allocation13 + $0xc0] sm:$0xff] }
0x147d   :  { %3789 = vmatmul.msk.bf16.vlgmr.msra.gmra.mxu2 %vm674_vm13, %v2699_v14  ;;  %v3827_v14 = vld [vmem:[%s5698_s13 + $0xa8] sm:$0xf0] }
0x147e   :  { %2896 = vmatpush.bf16.msra.mxu3 %v3826_v13 }
0x1480   :  { %v2622_v8 = vpop.f32.mrf.mxu2 }
0x1481   :  { %v3830_v8 = vor.u32 %v4079_v7, %v3827_v14  ;;  %v4092_v7 = vld [vmem:[#allocation13 + $0x88] sm:$0xff]  ;;  %v4091_v14 = vld [vmem:[#allocation13 + $0x80] sm:$0xff] }
0x1482   :  { %v2697_v15 = vpop.f32.mrf.mxu1 }
0x1483   :  { %2910 = vmatpush.bf16.msra.mxu0 %v3830_v8  ;;  %v3817_v15 = vld [vmem:[%s5698_s13 + $0x90] sm:$0xf] }
0x14ec   :  { %v2547_v37 = vpop.f32.mrf.mxu3 }
0x14ed   :  { %v2564_v33 = vadd.f32 %v5515_v9, %v2547_v37  ;;  %v4078_v37 = vld [vmem:[%s5698_s13 + $0x94] sm:$0xf0] }
0x14f4   :  { %v2549_v36 = vpop.f32.mrf.mxu3 }
0x14f5   :  { %v4077_v36 = vld [vmem:[%s5698_s13 + $0x94] sm:$0xf] }
0x14fe   :  { %v2637_v21 = vpop.f32.mrf.mxu3 }
0x14ff   :  { %v2641_v42 = vadd.f32 %v2637_v21, %v2564_v33  ;;  %v3818_v33 = vor.u32 %v4078_v37, %v3817_v15  ;;  %v3819_v21 = vld [vmem:[%s5698_s13 + $0x98] sm:$0xf0]  ;;  %v2807_v15 = vperm.slane %v2805_v58, 0 }
0x1500   :  { %v2712_v16 = vpop.f32.mrf.mxu2 }
0x1501   :  { %v2716_v17 = vadd.f32 %v2712_v16, %v2641_v42  ;;  %v3822_v42 = vor.u32 %v4077_v36, %v3819_v21  ;;  %2897 = vmatpush.bf16.msra.mxu3 %v3818_v33  ;;  %v3809_v16 = vld [vmem:[%s5698_s13 + $0x80] sm:$0xf] }
0x1503   :  { %v2718_v19 = vrot.slane %v2716_v17, 3  ;;  %2911 = vmatpush.bf16.msra.mxu0 %v3822_v42  ;;  %v4076_v17 = vld [vmem:[%s5698_s13 + $0x84] sm:$0xf0] }
0x1505   :  { %v2720_v59 = vsel %vm375_vm3, %v5526_v28, %v2718_v19  ;;  %v2722_v22 = vadd.f32 %v2718_v19, %v5217_v12  ;;  %v4075_v19 = vld [vmem:[%s5698_s13 + $0x84] sm:$0xf] }
0x1506   :  { %v2639_v43 = vpop.f32.mrf.mxu3  ;;  %v2721_v23 = vadd.f32 %v2720_v59, %v5213_v18  ;;  %v3811_v59 = vld [vmem:[%s5698_s13 + $0x88] sm:$0xf0] }
0x1507   :  { %v2729_v26 = vadd.f32 %v4144_v20, %v2722_v22  ;;  %v3814_v22 = vor.u32 %v4075_v19, %v3811_v59 }
0x1508   :  { %v2714_v49 = vpop.f32.mrf.mxu2  ;;  %v5551_v29 = vadd.f32 %v4144_v20, %v2721_v23  ;;  %v3810_v20 = vor.u32 %v4076_v17, %v3809_v16 }
0x1509   :  { %v2736_v9 = vsel %vm383_vm1, %v2729_v26, 0.0  ;;  %2912 = vmatpush.bf16.msra.mxu0 %v3814_v22 }
0x150a   :  { %2737 = vadd.xlane.f32.xlu0 %v2736_v9  ;;  %2734 = vadd.xlane.f32.xlu1 %v5551_v29 }
0x150b   :  { %2898 = vmatpush.bf16.msra.mxu3 %v3810_v20 }
0x157d   :  { %v2738_v31 = vpop.xlane.xlu0 %2737  ;;  %v2735_v48 = vpop.xlane.xlu1 %2734 }
0x157e   :  { %v2740_v32 = vmul.f32 %v2738_v31, %v4762_v44  ;;  %v2739_v28 = vmul.f32 %v2735_v48, %v4762_v44 }
0x1580   :  { %v5557_v34 = vsub.f32 %v2729_v26, %v2740_v32  ;;  %v5560_v12 = vsub.f32 %v5551_v29, %v2739_v28 }
0x1582   :  { %v2743_v18 = vmul.f32 %v5560_v12, %v5560_v12  ;;  %v2744_v35 = vmul.f32 %v5557_v34, %v5557_v34 }
0x1584   :  { %2745 = vadd.xlane.f32.xlu2 %v2743_v18  ;;  %v2747_v50 = vsel %vm383_vm1, %v2744_v35, 0.0 }
0x1585   :  { %2748 = vadd.xlane.f32.xlu0 %v2747_v50 }
0x15f7   :  { %v2746_v43 = vpop.xlane.xlu2 %2745 }
0x15f8   :  { %v2750_v23 = vmul.f32 %v2746_v43, %v4762_v44  ;;  %v2749_v26 = vpop.xlane.xlu0 %2748 }
0x15f9   :  { %v2751_v49 = vmul.f32 %v2749_v26, %v4762_v44 }
0x15fa   :  { %v2752_v9 = vadd.f32 1e-12, %v2750_v23 }
0x15fb   :  { %v2753_v31 = vadd.f32 1e-12, %v2751_v49 }
0x15fc   :  { %4237 = vrsqrt.f32 %v2752_v9  ;;  %vm2760_vm14 = vweird.f32 %v2752_v9 }
0x15fd   :  { %4239 = vrsqrt.f32 %v2753_v31  ;;  %vm2770_vm5 = vweird.f32 %v2753_v31 }
0x1602   :  { %v4238_v48 = vpop.eup %4237 }
0x1603   :  { %v4240_v32 = vpop.eup %4239  ;;  %v2755_v28 = vmul.f32 %v4238_v48, %v2752_v9  ;;  %vm2761_vm3 = vweird.f32 %v4238_v48 }
0x1604   :  { %v2765_v18 = vmul.f32 %v4240_v32, %v2753_v31  ;;  %vm2771_vm13 = vweird.f32 %v4240_v32  ;;  %vm2762_vm15 = vmor %vm2760_vm14, %vm2761_vm3 }
0x1605   :  { %v2756_v35 = vmul.f32 %v4238_v48, %v2755_v28  ;;  %vm2772_vm6 = vmor %vm2770_vm5, %vm2771_vm13 }
0x1606   :  { %v2766_v50 = vmul.f32 %v4240_v32, %v2765_v18 }
0x1607   :  { %v2757_v38 = vmul.f32 0.5, %v2756_v35 }
0x1608   :  { %v2767_v40 = vmul.f32 0.5, %v2766_v50 }
0x1609   :  { %v2758_v1 = vsub.f32 1.5, %v2757_v38 }
0x160a   :  { %v2768_v41 = vsub.f32 1.5, %v2767_v40 }
0x160b   :  { %v2759_v46 = vmul.f32 %v4238_v48, %v2758_v1 }
0x160c   :  { %v2769_v54 = vmul.f32 %v4240_v32, %v2768_v41 }
0x160d   :  { %v2763_v24 = vsel %vm2762_vm15, %v4238_v48, %v2759_v46 }
0x160e   :  { %v2774_v52 = vmul.f32 %v2763_v24, %v5560_v12  ;;  %v2773_v53 = vsel %vm2772_vm6, %v4240_v32, %v2769_v54  ;;  %v4103_v12 = vld [vmem:[#allocation13 + $0xe0] sm:$0xff] }
0x160f   :  { %v2775_v55 = vmul.f32 %v2773_v53, %v5557_v34  ;;  %3107 = vmatpush.bf16.msrb.mxu2 %v4103_v12  ;;  %v4096_v34 = vld [vmem:[#allocation13 + $0xa8] sm:$0xff] }
0x1610   :  { %v2779_v47 = vmul.f32 %v4145_v11, %v2774_v52  ;;  %3093 = vmatpush.bf16.msrb.mxu1 %v4096_v34 }
0x1611   :  { %v2780_v56 = vmul.f32 %v4145_v11, %v2775_v55 }
0x1612   :  { %v2784_v60 = vadd.f32 %v4146_v25, %v2779_v47 }
0x1613   :  { %v2785_v61 = vadd.f32 %v4146_v25, %v2780_v56  ;;  %3108 = vmatpush.bf16.msrb.mxu2 %v4102_v0 }
0x1614   :  { %3094 = vmatpush.bf16.msrb.mxu1 %v4095_v30 }
0x1615   :  { %v2803_v27 = vpack.c.bf16 %v2785_v61, %v2784_v60 }
0x1617   :  { %2899 = vmatmul.bf16.vlgmr.msra.gmra.mxu3 %v2803_v27  ;;  %2913 = vmatmul.bf16.vlgmr.msra.gmra.mxu0 %v2803_v27 }
0x1618   :  { %3109 = vmatpush.bf16.msrb.mxu2 %v4101_v57  ;;  %3095 = vmatpush.bf16.msrb.mxu1 %v4094_v2 }
0x161c   :  { %3110 = vmatpush.bf16.msrb.mxu2 %v4100_v3  ;;  %3096 = vmatpush.bf16.msrb.mxu1 %v4093_v4 }
0x1620   :  { %3111 = vmatpush.bf16.msrb.mxu2 %v4099_v6  ;;  %3097 = vmatpush.bf16.msrb.mxu1 %v4092_v7 }
0x1624   :  { %3098 = vmatpush.bf16.msrb.mxu1 %v4091_v14 }
0x1694   :  { %v2914_v10 = vpop.f32.mrf.mxu0 }
0x1695   :  { %v2915_v13 = vadd.f32 %v2914_v10, %v2808_v5 }
0x1697   :  { %v2924_v8 = vmul.f32 0.044715, %v2915_v13  ;;  %v2920_v11 = vmul.f32 0.5, %v2915_v13 }
0x1699   :  { %v2928_v37 = vmul.f32 %v2924_v8, %v2915_v13  ;;  %v4113_v8 = vld [vmem:[#allocation16 + $0x30] sm:$0xff] }
0x169a   :  { %v2900_v36 = vpop.f32.mrf.mxu3 }
0x169b   :  { %v2932_v33 = vmul.f32 %v2928_v37, %v2915_v13  ;;  %v2901_v21 = vadd.f32 %v2900_v36, %v2807_v15  ;;  %v4110_v37 = vld [vmem:[#allocation16 + $0x18] sm:$0xff]  ;;  %v4109_v36 = vld [vmem:[#allocation16 + $0x10] sm:$0xff] }
0x169c   :  { %v2916_v42 = vpop.f32.mrf.mxu0 }
0x169d   :  { %v2936_v16 = vadd.f32 %v2932_v33, %v2915_v13  ;;  %v2923_v17 = vmul.f32 0.044715, %v2901_v21  ;;  %v2917_v19 = vadd.f32 %v2916_v42, %v2808_v5  ;;  %v2919_v60 = vmul.f32 0.5, %v2901_v21  ;;  %v4114_v5 = vld [vmem:[#allocation16 + $0x38] sm:$0xff]  ;;  %v4108_v33 = vld [vmem:[#allocation16 + $0x8] sm:$0xff] }
0x169e   :  { %3223 = vmatpush.bf16.msrb.mxu3 %v4114_v5 }
0x169f   :  { %v2927_v20 = vmul.f32 %v2923_v17, %v2901_v21  ;;  %v2926_v59 = vmul.f32 0.044715, %v2917_v19  ;;  %v2940_v22 = vmul.f32 0.7978846, %v2936_v16  ;;  %v2922_v54 = vmul.f32 0.5, %v2917_v19 }
0x16a1   :  { %v2931_v43 = vmul.f32 %v2927_v20, %v2901_v21  ;;  %v2930_v23 = vmul.f32 %v2926_v59, %v2917_v19  ;;  %4241 = vtanh.f32 %v2940_v22 }
0x16a2   :  { %v2902_v26 = vpop.f32.mrf.mxu3  ;;  %3224 = vmatpush.bf16.msrb.mxu3 %v4113_v8 }
0x16a3   :  { %v2935_v49 = vadd.f32 %v2931_v43, %v2901_v21  ;;  %v2934_v9 = vmul.f32 %v2930_v23, %v2917_v19  ;;  %v2903_v31 = vadd.f32 %v2902_v26, %v2807_v15  ;;  %v4111_v15 = vld [vmem:[#allocation16 + $0x20] sm:$0xff]  ;;  %v4148_v26 = vld [vmem:[%s5702_s17] ss:$0 sm:$0xff] }
0x16a4   :  { %v4107_v21 = vld [vmem:[#allocation16] sm:$0xff] }
0x16a5   :  { %v2938_v48 = vadd.f32 %v2934_v9, %v2917_v19  ;;  %v2925_v32 = vmul.f32 0.044715, %v2903_v31  ;;  %v2939_v28 = vmul.f32 0.7978846, %v2935_v49  ;;  %v2921_v61 = vmul.f32 0.5, %v2903_v31 }
0x16a7   :  { %v2942_v18 = vmul.f32 0.7978846, %v2938_v48  ;;  %v2929_v35 = vmul.f32 %v2925_v32, %v2903_v31  ;;  %v4242_v38 = vpop.eup %4241 }
0x16a8   :  { %v2948_v41 = vadd.f32 1.0, %v4242_v38 }
0x16a9   :  { %4243 = vtanh.f32 %v2942_v18  ;;  %v2933_v50 = vmul.f32 %v2929_v35, %v2903_v31 }
0x16aa   :  { %4245 = vtanh.f32 %v2939_v28  ;;  %v2952_v52 = vmul.f32 %v2948_v41, %v2920_v11  ;;  %v4150_v28 = vld [vmem:[#allocation17] ss:$0 sm:$0xff] }
0x16ab   :  { %v2937_v40 = vadd.f32 %v2933_v50, %v2903_v31 }
0x16ad   :  { %v2941_v1 = vmul.f32 0.7978846, %v2937_v40 }
0x16af   :  { %v4244_v46 = vpop.eup %4243  ;;  %4247 = vtanh.f32 %v2941_v1 }
0x16b0   :  { %v2950_v24 = vadd.f32 1.0, %v4244_v46  ;;  %v4246_v25 = vpop.eup %4245 }
0x16b1   :  { %v2947_v55 = vadd.f32 1.0, %v4246_v25 }
0x16b2   :  { %v2954_v53 = vmul.f32 %v2950_v24, %v2922_v54 }
0x16b3   :  { %v2951_v45 = vmul.f32 %v2947_v55, %v2919_v60 }
0x16b4   :  { %v2989_v47 = vpack.c.bf16 %v2954_v53, %v2952_v52 }
0x16b5   :  { %v4248_v56 = vpop.eup %4247 }
0x16b6   :  { %v2949_v27 = vadd.f32 1.0, %v4248_v56  ;;  %3112 = vmatmul.bf16.vlgmr.msrb.gmra.mxu2 %v2989_v47 }
0x16b8   :  { %v2953_v39 = vmul.f32 %v2949_v27, %v2921_v61 }
0x16ba   :  { %v2988_v62 = vpack.c.bf16 %v2953_v39, %v2951_v45 }
0x16bc   :  { %3099 = vmatmul.bf16.vlgmr.msrb.gmra.mxu1 %v2988_v62 }
0x1739   :  { %v3100_v63 = vpop.f32.mrf.mxu1  ;;  %v3113_v12 = vpop.f32.mrf.mxu2 }
0x173a   :  { %v3101_v34 = vadd.f32 %v4147_v51, %v3100_v63 }
0x173c   :  { %v3114_v0 = vadd.f32 %v3113_v12, %v3101_v34 }
0x173e   :  { %v3117_v30 = vadd.f32 %v3114_v0, %v5551_v29  ;;  %v4112_v29 = vld [vmem:[#allocation16 + $0x28] sm:$0xff] }
0x173f   :  { %3225 = vmatpush.bf16.msrb.mxu3 %v4112_v29 }
0x1740   :  { %v3119_v57 = vrot.slane %v3117_v30, 4 }
0x1741   :  { %v3102_v2 = vpop.f32.mrf.mxu1  ;;  %v3115_v58 = vpop.f32.mrf.mxu2 }
0x1742   :  { %v3121_v3 = vsel %vm373_vm2, %v3117_v30, %v3119_v57 }
0x1743   :  { %v3124_v4 = vsel %vm383_vm1, %v3121_v3, 0.0  ;;  %3226 = vmatpush.bf16.msrb.mxu3 %v4111_v15 }
0x1744   :  { %3125 = vadd.xlane.f32.xlu0 %v3124_v4 }
0x1747   :  { %3227 = vmatpush.bf16.msrb.mxu3 %v4110_v37 }
0x174b   :  { %3228 = vmatpush.bf16.msrb.mxu3 %v4109_v36 }
0x174f   :  { %3229 = vmatpush.bf16.msrb.mxu3 %v4108_v33 }
0x1753   :  { %3230 = vmatpush.bf16.msrb.mxu3 %v4107_v21 }
0x17b7   :  { %v3126_v6 = vpop.xlane.xlu0 %3125 }
0x17b8   :  { %v3127_v10 = vmul.f32 %v3126_v6, %v4762_v44 }
0x17ba   :  { %v3128_v7 = vsub.f32 %v3121_v3, %v3127_v10 }
0x17bc   :  { %v3129_v13 = vmul.f32 %v3128_v7, %v3128_v7 }
0x17be   :  { %v3130_v14 = vsel %vm383_vm1, %v3129_v13, 0.0 }
0x17bf   :  { %3131 = vadd.xlane.f32.xlu1 %v3130_v14 }
0x1832   :  { %v3132_v42 = vpop.xlane.xlu1 %3131 }
0x1833   :  { %v3133_v16 = vmul.f32 %v3132_v42, %v4762_v44  ;;  %v4149_v44 = vld [vmem:[%s5703_s18] ss:$0 sm:$0xff] }
0x1835   :  { %v3134_v17 = vadd.f32 1e-12, %v3133_v16 }
0x1837   :  { %4249 = vrsqrt.f32 %v3134_v17  ;;  %vm3141_vm2 = vweird.f32 %v3134_v17 }
0x183d   :  { %v4250_v19 = vpop.eup %4249 }
0x183e   :  { %v3136_v20 = vmul.f32 %v4250_v19, %v3134_v17  ;;  %vm3142_vm1 = vweird.f32 %v4250_v19 }
0x183f   :  { %vm3143_vm7 = vmor %vm3141_vm2, %vm3142_vm1 }
0x1840   :  { %v3137_v59 = vmul.f32 %v4250_v19, %v3136_v20 }
0x1842   :  { %v3138_v22 = vmul.f32 0.5, %v3137_v59 }
0x1844   :  { %v3139_v43 = vsub.f32 1.5, %v3138_v22 }
0x1846   :  { %v3140_v23 = vmul.f32 %v4250_v19, %v3139_v43 }
0x1848   :  { %v3144_v49 = vsel %vm3143_vm7, %v4250_v19, %v3140_v23 }
0x1849   :  { %v3145_v9 = vmul.f32 %v3144_v49, %v3128_v7 }
0x184b   :  { %v3149_v31 = vmul.f32 %v4148_v26, %v3145_v9 }
0x184d   :  { %v3153_v48 = vadd.f32 %v4149_v44, %v3149_v31 }
0x184f   :  { %v3170_v32 = vpack.c.bf16 %v3153_v48, %v3153_v48 }
0x1851   :  { %3231 = vmatmul.bf16.vlgmr.msrb.gmra.mxu3 %v3170_v32 }
0x18d4   :  { %v3232_v18 = vpop.f32.mrf.mxu3 }
0x18d5   :  { %v3233_v35 = vadd.f32 %v4150_v28, %v3232_v18 }
0x18d7   :  { %3236 = vst [vmem:[#allocation19] sm:$0x3] %v3233_v35 }
0x18d8   :  { %3247 = dma.vmem_to_hbm [thread:$0]  %s3243_s30, 32, %s3245_s4, [#allocation4]  }
0x18dc   :  { %v3234_v50 = vpop.f32.mrf.mxu3 }
0x18dd   :  { %4527 = dma.done.wait [#allocation4], 32  }
0x18de   :  { %4528 = vsyncadd [#allocation4], 4294967264 }
0x18df   :  { %3252 = vsyncpa [#allocation3], 1 }
0x18e0   :  { %3253 = vsyncpa [#allocation6], 1 }
0x18e1   :  { %3254 = vsyncpa [#allocation9], 1 }
0x18e2   :  { %3255 = vsyncpa [#allocation12], 1 }
0x18e3   :  { %3256 = vsyncpa [#allocation15], 1 }
0x18e4   :  { %3257 = vsyncpa [#allocation18], 1 }
0x18e5   :  { %3258 = vsyncpa [#allocation4], 1 }

</bundles_post_ra>
